<compile_context>
chip_gen: v7x
topology: tpu7x:2x2x1
jax: 0.10.0
libtpu: 0.0.40
codegen_flags: <defaults>
</compile_context>

<pallas_src>
import jax
import jax.numpy as jnp
import numpy as np
from jax.experimental import pallas as pl
from jax.experimental.pallas import tpu as pltpu


def ppeg_conv_kernel(feat_ref, w_ref, bias_ref, out_ref, xpad_ref):
    # feat_ref: (1, H, W, C)       unpadded feature map block (one batch)
    # w_ref:    (49, C)            merged effective 7x7 depthwise weight
    #                              (w7 + pad(w5) + pad(w3) + identity at tap (3,3))
    # bias_ref: (1, C)             summed biases b7 + b5 + b3
    # out_ref:  (1, H, W, C)
    # xpad_ref: (H+6, W+6, C)      VMEM scratch, zero-padded copy of the block
    H, W, C = out_ref.shape[1], out_ref.shape[2], out_ref.shape[3]

    # Build the zero-padded slab in VMEM (no extra HBM round-trip).
    xpad_ref[...] = jnp.zeros_like(xpad_ref)
    xpad_ref[3:3 + H, 3:3 + W, :] = feat_ref[0]

    w = w_ref[...].astype(jnp.float32)             # (49, C)
    bias = bias_ref[...].astype(jnp.float32)       # (1, C)

    # Four partial accumulators to expose VALU-level parallelism.
    zeros = jnp.zeros((H, W, C), jnp.float32)
    accs = [zeros, zeros, zeros, zeros]

    # Effective 7x7 depthwise conv (cross-correlation, matches torch.nn.Conv2d).
    # kw outer: one sublane-shifted slab load per kw, reused over all kh
    # (kh offsets are cheap major-dim row slices).
    t = 0
    for kw in range(7):
        slab = xpad_ref[:, kw:kw + W, :].astype(jnp.float32)   # (H+6, W, C)
        for kh in range(7):
            term = slab[kh:kh + H] * w[7 * kh + kw]
            accs[t % 4] = accs[t % 4] + term
            t += 1

    acc = (accs[0] + accs[1]) + (accs[2] + accs[3])
    acc = acc + bias.reshape(1, 1, C)
    out_ref[0] = acc.astype(out_ref.dtype)


def ppeg_forward(x, H, W, params):
    """x: (B, 1 + H*W, C) -> (B, 1 + H*W, C)."""
    B, N, C = x.shape
    assert N == 1 + H * W
    cls_token = x[:, :1, :]                                   # (B, 1, C)
    feat = x[:, 1:, :].reshape(B, H, W, C)                    # NHWC, no padding

    # Fold the three depthwise kernels + identity skip into one 7x7 weight.
    w_eff = params["w7"].astype(jnp.float32)
    w_eff = w_eff + jnp.pad(params["w5"].astype(jnp.float32),
                            ((1, 1), (1, 1), (0, 0)))
    w_eff = w_eff + jnp.pad(params["w3"].astype(jnp.float32),
                            ((2, 2), (2, 2), (0, 0)))
    w_eff = w_eff.at[3, 3, :].add(1.0)                        # identity (skip) term
    w_eff = w_eff.reshape(49, C)                              # tap-major (49, C)

    bias_sum = (params["b7"] + params["b5"]
                + params["b3"]).astype(jnp.float32)[None, :]  # (1, C)

    # NOTE: for very large H*W*C (e.g. H=W~96, C=512 on v7x with 64 MiB VMEM
    # and 2 TCs) add a tiled-H "parallel" grid axis with 6-row halos; at the
    # test/typical TransMIL shapes one block per batch fits comfortably.
    out = pl.pallas_call(
        ppeg_conv_kernel,
        out_shape=jax.ShapeDtypeStruct((B, H, W, C), x.dtype),
        grid_spec=pltpu.PrefetchScalarGridSpec(
            num_scalar_prefetch=0,
            grid=(B,),
            in_specs=[
                pl.BlockSpec((1, H, W, C), lambda b: (b, 0, 0, 0)),
                pl.BlockSpec((49, C), lambda b: (0, 0)),
                pl.BlockSpec((1, C), lambda b: (0, 0)),
            ],
            out_specs=pl.BlockSpec((1, H, W, C), lambda b: (b, 0, 0, 0)),
            scratch_shapes=[pltpu.VMEM((H + 6, W + 6, C), x.dtype)],
        ),
        compiler_params=pltpu.CompilerParams(
            dimension_semantics=("parallel",),
            vmem_limit_bytes=64 * 1024 * 1024),
    )(feat, w_eff, bias_sum)

    out_seq = out.reshape(B, H * W, C)
    return jnp.concatenate([cls_token, out_seq], axis=1)


def _depthwise_ref(feat_nhwc, w, b, pad):
    """Pure-JAX reference depthwise conv (NHWC), for correctness check."""
    C = feat_nhwc.shape[-1]
    k = w.shape[0]
    kernel = w.reshape(k, k, 1, C)  # HWIO with I=1 (grouped)
    out = jax.lax.conv_general_dilated(
        feat_nhwc, kernel, window_strides=(1, 1),
        padding=[(pad, pad), (pad, pad)],
        dimension_numbers=("NHWC", "HWIO", "NHWC"),
        feature_group_count=C)
    return out + b


def ppeg_reference(x, H, W, params):
    B, N, C = x.shape
    cls_token = x[:, :1, :]
    feat = x[:, 1:, :].reshape(B, H, W, C)
    out = (_depthwise_ref(feat, params["w7"], params["b7"], 3)
           + feat
           + _depthwise_ref(feat, params["w5"], params["b5"], 2)
           + _depthwise_ref(feat, params["w3"], params["b3"], 1))
    return jnp.concatenate([cls_token, out.reshape(B, H * W, C)], axis=1)


def init_params(key, dim):
    """Deterministic parameter init.  Depthwise Conv2d(dim, dim, k, groups=dim)
    has weight (dim, 1, k, k) in torch; we store it channels-last as (k, k, dim)."""
    ks = jax.random.split(key, 6)
    def w(k, ksz):
        return (jax.random.normal(k, (ksz, ksz, dim), jnp.float32)
                / float(ksz * ksz))
    def b(k):
        return jax.random.normal(k, (dim,), jnp.float32) * 0.1
    return {
        "w7": w(ks[0], 7), "b7": b(ks[1]),
        "w5": w(ks[2], 5), "b5": b(ks[3]),
        "w3": w(ks[4], 3), "b3": b(ks[5]),
    }


if __name__ == "__main__":
    B, C, H, W = 2, 128, 8, 8          # dim=128 (small stand-in for 512)
    N = 1 + H * W

    key = jax.random.PRNGKey(0)
    kx, kp = jax.random.split(key)
    x = jax.random.normal(kx, (B, N, C), jnp.float32)
    params = init_params(kp, C)

    out = ppeg_forward(x, H, W, params)
    out = jax.block_until_ready(out)

    ref = jax.block_until_ready(ppeg_reference(x, H, W, params))
    np.testing.assert_allclose(np.asarray(out), np.asarray(ref),
                               rtol=1e-5, atol=1e-5)
    assert out.shape == (B, N, C)
    print("KERNEL_OK")
</pallas_src>

<mosaic_0001>
module attributes {stable_mosaic.version = 11 : i64} {
  func.func @ppeg_conv_kernel(%arg0: i32, %arg1: memref<1x8x8x128xf32, #tpu.memory_space<vmem>>, %arg2: memref<49x128xf32, #tpu.memory_space<vmem>>, %arg3: memref<1x128xf32, #tpu.memory_space<vmem>>, %arg4: memref<1x8x8x128xf32, #tpu.memory_space<vmem>>, %arg5: memref<14x14x128xf32, #tpu.memory_space<vmem>>) attributes {dimension_semantics = [#tpu.dimension_semantics<parallel>], iteration_bounds = array<i64: 2>, scalar_prefetch = 0 : i64, scratch_operands = 1 : i64, tpu.core_type = #tpu.core_type<tc>, window_params = [{transform_indices = @transform_0, window_bounds = array<i64: 1, 8, 8, 128>}, {pipeline_mode = #tpu.pipeline_mode<synchronous>, transform_indices = @transform_1, window_bounds = array<i64: 49, 128>}, {pipeline_mode = #tpu.pipeline_mode<synchronous>, transform_indices = @transform_2, window_bounds = array<i64: 1, 128>}, {transform_indices = @transform_3, window_bounds = array<i64: 1, 8, 8, 128>}]} {
    %cst = arith.constant 0.000000e+00 : f32
    %0 = vector.broadcast %cst : f32 to vector<14x14x128xf32>
    %c0 = arith.constant 0 : index
    %c0_0 = arith.constant 0 : index
    %c0_1 = arith.constant 0 : index
    %1 = vector.load %arg5[%c0, %c0_0, %c0_1] : memref<14x14x128xf32, #tpu.memory_space<vmem>>, vector<14x14x128xf32>
    tpu.vector_store %arg5[%c0, %c0_0, %c0_1], %0 {strides = array<i32>} : memref<14x14x128xf32, #tpu.memory_space<vmem>>, vector<14x14x128xf32>,
    %c0_2 = arith.constant 0 : index
    %c0_3 = arith.constant 0 : index
    %c0_4 = arith.constant 0 : index
    %c0_5 = arith.constant 0 : index
    %2 = vector.load %arg1[%c0_2, %c0_3, %c0_4, %c0_5] : memref<1x8x8x128xf32, #tpu.memory_space<vmem>>, vector<1x8x8x128xf32>
    %3 = vector.shape_cast %2 : vector<1x8x8x128xf32> to vector<8x8x128xf32>
    %c3 = arith.constant 3 : index
    %c3_6 = arith.constant 3 : index
    %c0_7 = arith.constant 0 : index
    %4 = vector.load %arg5[%c3, %c3_6, %c0_7] : memref<14x14x128xf32, #tpu.memory_space<vmem>>, vector<8x8x128xf32>
    tpu.vector_store %arg5[%c3, %c3_6, %c0_7], %3 {strides = array<i32>} : memref<14x14x128xf32, #tpu.memory_space<vmem>>, vector<8x8x128xf32>,
    %c0_8 = arith.constant 0 : index
    %c0_9 = arith.constant 0 : index
    %5 = vector.load %arg2[%c0_8, %c0_9] : memref<49x128xf32, #tpu.memory_space<vmem>>, vector<49x128xf32>
    %c0_10 = arith.constant 0 : index
    %c0_11 = arith.constant 0 : index
    %6 = vector.load %arg3[%c0_10, %c0_11] : memref<1x128xf32, #tpu.memory_space<vmem>>, vector<1x128xf32>
    %cst_12 = arith.constant 0.000000e+00 : f32
    %7 = vector.broadcast %cst_12 : f32 to vector<8x8x128xf32>
    %c0_13 = arith.constant 0 : index
    %c0_14 = arith.constant 0 : index
    %c0_15 = arith.constant 0 : index
    %8 = vector.load %arg5[%c0_13, %c0_14, %c0_15] : memref<14x14x128xf32, #tpu.memory_space<vmem>>, vector<14x8x128xf32>
    %9 = vector.extract_strided_slice %8 {offsets = [0, 0, 0], sizes = [8, 8, 128], strides = [1, 1, 1]} : vector<14x8x128xf32> to vector<8x8x128xf32>
    %10 = vector.extract_strided_slice %5 {offsets = [0, 0], sizes = [1, 128], strides = [1, 1]} : vector<49x128xf32> to vector<1x128xf32>
    %11 = vector.shape_cast %10 : vector<1x128xf32> to vector<128xf32>
    %12 = vector.shape_cast %11 : vector<128xf32> to vector<1x1x128xf32>
    %13 = vector.broadcast %12 : vector<1x1x128xf32> to vector<8x8x128xf32>
    %14 = arith.mulf %9, %13 : vector<8x8x128xf32>
    %15 = arith.addf %7, %14 : vector<8x8x128xf32>
    %16 = vector.extract_strided_slice %8 {offsets = [1, 0, 0], sizes = [8, 8, 128], strides = [1, 1, 1]} : vector<14x8x128xf32> to vector<8x8x128xf32>
    %17 = vector.extract_strided_slice %5 {offsets = [7, 0], sizes = [1, 128], strides = [1, 1]} : vector<49x128xf32> to vector<1x128xf32>
    %18 = vector.shape_cast %17 : vector<1x128xf32> to vector<128xf32>
    %19 = vector.shape_cast %18 : vector<128xf32> to vector<1x1x128xf32>
    %20 = vector.broadcast %19 : vector<1x1x128xf32> to vector<8x8x128xf32>
    %21 = arith.mulf %16, %20 : vector<8x8x128xf32>
    %22 = arith.addf %7, %21 : vector<8x8x128xf32>
    %23 = vector.extract_strided_slice %8 {offsets = [2, 0, 0], sizes = [8, 8, 128], strides = [1, 1, 1]} : vector<14x8x128xf32> to vector<8x8x128xf32>
    %24 = vector.extract_strided_slice %5 {offsets = [14, 0], sizes = [1, 128], strides = [1, 1]} : vector<49x128xf32> to vector<1x128xf32>
    %25 = vector.shape_cast %24 : vector<1x128xf32> to vector<128xf32>
    %26 = vector.shape_cast %25 : vector<128xf32> to vector<1x1x128xf32>
    %27 = vector.broadcast %26 : vector<1x1x128xf32> to vector<8x8x128xf32>
    %28 = arith.mulf %23, %27 : vector<8x8x128xf32>
    %29 = arith.addf %7, %28 : vector<8x8x128xf32>
    %30 = vector.extract_strided_slice %8 {offsets = [3, 0, 0], sizes = [8, 8, 128], strides = [1, 1, 1]} : vector<14x8x128xf32> to vector<8x8x128xf32>
    %31 = vector.extract_strided_slice %5 {offsets = [21, 0], sizes = [1, 128], strides = [1, 1]} : vector<49x128xf32> to vector<1x128xf32>
    %32 = vector.shape_cast %31 : vector<1x128xf32> to vector<128xf32>
    %33 = vector.shape_cast %32 : vector<128xf32> to vector<1x1x128xf32>
    %34 = vector.broadcast %33 : vector<1x1x128xf32> to vector<8x8x128xf32>
    %35 = arith.mulf %30, %34 : vector<8x8x128xf32>
    %36 = arith.addf %7, %35 : vector<8x8x128xf32>
    %37 = vector.extract_strided_slice %8 {offsets = [4, 0, 0], sizes = [8, 8, 128], strides = [1, 1, 1]} : vector<14x8x128xf32> to vector<8x8x128xf32>
    %38 = vector.extract_strided_slice %5 {offsets = [28, 0], sizes = [1, 128], strides = [1, 1]} : vector<49x128xf32> to vector<1x128xf32>
    %39 = vector.shape_cast %38 : vector<1x128xf32> to vector<128xf32>
    %40 = vector.shape_cast %39 : vector<128xf32> to vector<1x1x128xf32>
    %41 = vector.broadcast %40 : vector<1x1x128xf32> to vector<8x8x128xf32>
    %42 = arith.mulf %37, %41 : vector<8x8x128xf32>
    %43 = arith.addf %15, %42 : vector<8x8x128xf32>
    %44 = vector.extract_strided_slice %8 {offsets = [5, 0, 0], sizes = [8, 8, 128], strides = [1, 1, 1]} : vector<14x8x128xf32> to vector<8x8x128xf32>
    %45 = vector.extract_strided_slice %5 {offsets = [35, 0], sizes = [1, 128], strides = [1, 1]} : vector<49x128xf32> to vector<1x128xf32>
    %46 = vector.shape_cast %45 : vector<1x128xf32> to vector<128xf32>
    %47 = vector.shape_cast %46 : vector<128xf32> to vector<1x1x128xf32>
    %48 = vector.broadcast %47 : vector<1x1x128xf32> to vector<8x8x128xf32>
    %49 = arith.mulf %44, %48 : vector<8x8x128xf32>
    %50 = arith.addf %22, %49 : vector<8x8x128xf32>
    %51 = vector.extract_strided_slice %8 {offsets = [6, 0, 0], sizes = [8, 8, 128], strides = [1, 1, 1]} : vector<14x8x128xf32> to vector<8x8x128xf32>
    %52 = vector.extract_strided_slice %5 {offsets = [42, 0], sizes = [1, 128], strides = [1, 1]} : vector<49x128xf32> to vector<1x128xf32>
    %53 = vector.shape_cast %52 : vector<1x128xf32> to vector<128xf32>
    %54 = vector.shape_cast %53 : vector<128xf32> to vector<1x1x128xf32>
    %55 = vector.broadcast %54 : vector<1x1x128xf32> to vector<8x8x128xf32>
    %56 = arith.mulf %51, %55 : vector<8x8x128xf32>
    %57 = arith.addf %29, %56 : vector<8x8x128xf32>
    %c0_16 = arith.constant 0 : index
    %c1 = arith.constant 1 : index
    %c0_17 = arith.constant 0 : index
    %58 = vector.load %arg5[%c0_16, %c1, %c0_17] : memref<14x14x128xf32, #tpu.memory_space<vmem>>, vector<14x8x128xf32>
    %59 = vector.extract_strided_slice %58 {offsets = [0, 0, 0], sizes = [8, 8, 128], strides = [1, 1, 1]} : vector<14x8x128xf32> to vector<8x8x128xf32>
    %60 = vector.extract_strided_slice %5 {offsets = [1, 0], sizes = [1, 128], strides = [1, 1]} : vector<49x128xf32> to vector<1x128xf32>
    %61 = vector.shape_cast %60 : vector<1x128xf32> to vector<128xf32>
    %62 = vector.shape_cast %61 : vector<128xf32> to vector<1x1x128xf32>
    %63 = vector.broadcast %62 : vector<1x1x128xf32> to vector<8x8x128xf32>
    %64 = arith.mulf %59, %63 : vector<8x8x128xf32>
    %65 = arith.addf %36, %64 : vector<8x8x128xf32>
    %66 = vector.extract_strided_slice %58 {offsets = [1, 0, 0], sizes = [8, 8, 128], strides = [1, 1, 1]} : vector<14x8x128xf32> to vector<8x8x128xf32>
    %67 = vector.extract_strided_slice %5 {offsets = [8, 0], sizes = [1, 128], strides = [1, 1]} : vector<49x128xf32> to vector<1x128xf32>
    %68 = vector.shape_cast %67 : vector<1x128xf32> to vector<128xf32>
    %69 = vector.shape_cast %68 : vector<128xf32> to vector<1x1x128xf32>
    %70 = vector.broadcast %69 : vector<1x1x128xf32> to vector<8x8x128xf32>
    %71 = arith.mulf %66, %70 : vector<8x8x128xf32>
    %72 = arith.addf %43, %71 : vector<8x8x128xf32>
    %73 = vector.extract_strided_slice %58 {offsets = [2, 0, 0], sizes = [8, 8, 128], strides = [1, 1, 1]} : vector<14x8x128xf32> to vector<8x8x128xf32>
    %74 = vector.extract_strided_slice %5 {offsets = [15, 0], sizes = [1, 128], strides = [1, 1]} : vector<49x128xf32> to vector<1x128xf32>
    %75 = vector.shape_cast %74 : vector<1x128xf32> to vector<128xf32>
    %76 = vector.shape_cast %75 : vector<128xf32> to vector<1x1x128xf32>
    %77 = vector.broadcast %76 : vector<1x1x128xf32> to vector<8x8x128xf32>
    %78 = arith.mulf %73, %77 : vector<8x8x128xf32>
    %79 = arith.addf %50, %78 : vector<8x8x128xf32>
    %80 = vector.extract_strided_slice %58 {offsets = [3, 0, 0], sizes = [8, 8, 128], strides = [1, 1, 1]} : vector<14x8x128xf32> to vector<8x8x128xf32>
    %81 = vector.extract_strided_slice %5 {offsets = [22, 0], sizes = [1, 128], strides = [1, 1]} : vector<49x128xf32> to vector<1x128xf32>
    %82 = vector.shape_cast %81 : vector<1x128xf32> to vector<128xf32>
    %83 = vector.shape_cast %82 : vector<128xf32> to vector<1x1x128xf32>
    %84 = vector.broadcast %83 : vector<1x1x128xf32> to vector<8x8x128xf32>
    %85 = arith.mulf %80, %84 : vector<8x8x128xf32>
    %86 = arith.addf %57, %85 : vector<8x8x128xf32>
    %87 = vector.extract_strided_slice %58 {offsets = [4, 0, 0], sizes = [8, 8, 128], strides = [1, 1, 1]} : vector<14x8x128xf32> to vector<8x8x128xf32>
    %88 = vector.extract_strided_slice %5 {offsets = [29, 0], sizes = [1, 128], strides = [1, 1]} : vector<49x128xf32> to vector<1x128xf32>
    %89 = vector.shape_cast %88 : vector<1x128xf32> to vector<128xf32>
    %90 = vector.shape_cast %89 : vector<128xf32> to vector<1x1x128xf32>
    %91 = vector.broadcast %90 : vector<1x1x128xf32> to vector<8x8x128xf32>
    %92 = arith.mulf %87, %91 : vector<8x8x128xf32>
    %93 = arith.addf %65, %92 : vector<8x8x128xf32>
    %94 = vector.extract_strided_slice %58 {offsets = [5, 0, 0], sizes = [8, 8, 128], strides = [1, 1, 1]} : vector<14x8x128xf32> to vector<8x8x128xf32>
    %95 = vector.extract_strided_slice %5 {offsets = [36, 0], sizes = [1, 128], strides = [1, 1]} : vector<49x128xf32> to vector<1x128xf32>
    %96 = vector.shape_cast %95 : vector<1x128xf32> to vector<128xf32>
    %97 = vector.shape_cast %96 : vector<128xf32> to vector<1x1x128xf32>
    %98 = vector.broadcast %97 : vector<1x1x128xf32> to vector<8x8x128xf32>
    %99 = arith.mulf %94, %98 : vector<8x8x128xf32>
    %100 = arith.addf %72, %99 : vector<8x8x128xf32>
    %101 = vector.extract_strided_slice %58 {offsets = [6, 0, 0], sizes = [8, 8, 128], strides = [1, 1, 1]} : vector<14x8x128xf32> to vector<8x8x128xf32>
    %102 = vector.extract_strided_slice %5 {offsets = [43, 0], sizes = [1, 128], strides = [1, 1]} : vector<49x128xf32> to vector<1x128xf32>
    %103 = vector.shape_cast %102 : vector<1x128xf32> to vector<128xf32>
    %104 = vector.shape_cast %103 : vector<128xf32> to vector<1x1x128xf32>
    %105 = vector.broadcast %104 : vector<1x1x128xf32> to vector<8x8x128xf32>
    %106 = arith.mulf %101, %105 : vector<8x8x128xf32>
    %107 = arith.addf %79, %106 : vector<8x8x128xf32>
    %c0_18 = arith.constant 0 : index
    %c2 = arith.constant 2 : index
    %c0_19 = arith.constant 0 : index
    %108 = vector.load %arg5[%c0_18, %c2, %c0_19] : memref<14x14x128xf32, #tpu.memory_space<vmem>>, vector<14x8x128xf32>
    %109 = vector.extract_strided_slice %108 {offsets = [0, 0, 0], sizes = [8, 8, 128], strides = [1, 1, 1]} : vector<14x8x128xf32> to vector<8x8x128xf32>
    %110 = vector.extract_strided_slice %5 {offsets = [2, 0], sizes = [1, 128], strides = [1, 1]} : vector<49x128xf32> to vector<1x128xf32>
    %111 = vector.shape_cast %110 : vector<1x128xf32> to vector<128xf32>
    %112 = vector.shape_cast %111 : vector<128xf32> to vector<1x1x128xf32>
    %113 = vector.broadcast %112 : vector<1x1x128xf32> to vector<8x8x128xf32>
    %114 = arith.mulf %109, %113 : vector<8x8x128xf32>
    %115 = arith.addf %86, %114 : vector<8x8x128xf32>
    %116 = vector.extract_strided_slice %108 {offsets = [1, 0, 0], sizes = [8, 8, 128], strides = [1, 1, 1]} : vector<14x8x128xf32> to vector<8x8x128xf32>
    %117 = vector.extract_strided_slice %5 {offsets = [9, 0], sizes = [1, 128], strides = [1, 1]} : vector<49x128xf32> to vector<1x128xf32>
    %118 = vector.shape_cast %117 : vector<1x128xf32> to vector<128xf32>
    %119 = vector.shape_cast %118 : vector<128xf32> to vector<1x1x128xf32>
    %120 = vector.broadcast %119 : vector<1x1x128xf32> to vector<8x8x128xf32>
    %121 = arith.mulf %116, %120 : vector<8x8x128xf32>
    %122 = arith.addf %93, %121 : vector<8x8x128xf32>
    %123 = vector.extract_strided_slice %108 {offsets = [2, 0, 0], sizes = [8, 8, 128], strides = [1, 1, 1]} : vector<14x8x128xf32> to vector<8x8x128xf32>
    %124 = vector.extract_strided_slice %5 {offsets = [16, 0], sizes = [1, 128], strides = [1, 1]} : vector<49x128xf32> to vector<1x128xf32>
    %125 = vector.shape_cast %124 : vector<1x128xf32> to vector<128xf32>
    %126 = vector.shape_cast %125 : vector<128xf32> to vector<1x1x128xf32>
    %127 = vector.broadcast %126 : vector<1x1x128xf32> to vector<8x8x128xf32>
    %128 = arith.mulf %123, %127 : vector<8x8x128xf32>
    %129 = arith.addf %100, %128 : vector<8x8x128xf32>
    %130 = vector.extract_strided_slice %108 {offsets = [3, 0, 0], sizes = [8, 8, 128], strides = [1, 1, 1]} : vector<14x8x128xf32> to vector<8x8x128xf32>
    %131 = vector.extract_strided_slice %5 {offsets = [23, 0], sizes = [1, 128], strides = [1, 1]} : vector<49x128xf32> to vector<1x128xf32>
    %132 = vector.shape_cast %131 : vector<1x128xf32> to vector<128xf32>
    %133 = vector.shape_cast %132 : vector<128xf32> to vector<1x1x128xf32>
    %134 = vector.broadcast %133 : vector<1x1x128xf32> to vector<8x8x128xf32>
    %135 = arith.mulf %130, %134 : vector<8x8x128xf32>
    %136 = arith.addf %107, %135 : vector<8x8x128xf32>
    %137 = vector.extract_strided_slice %108 {offsets = [4, 0, 0], sizes = [8, 8, 128], strides = [1, 1, 1]} : vector<14x8x128xf32> to vector<8x8x128xf32>
    %138 = vector.extract_strided_slice %5 {offsets = [30, 0], sizes = [1, 128], strides = [1, 1]} : vector<49x128xf32> to vector<1x128xf32>
    %139 = vector.shape_cast %138 : vector<1x128xf32> to vector<128xf32>
    %140 = vector.shape_cast %139 : vector<128xf32> to vector<1x1x128xf32>
    %141 = vector.broadcast %140 : vector<1x1x128xf32> to vector<8x8x128xf32>
    %142 = arith.mulf %137, %141 : vector<8x8x128xf32>
    %143 = arith.addf %115, %142 : vector<8x8x128xf32>
    %144 = vector.extract_strided_slice %108 {offsets = [5, 0, 0], sizes = [8, 8, 128], strides = [1, 1, 1]} : vector<14x8x128xf32> to vector<8x8x128xf32>
    %145 = vector.extract_strided_slice %5 {offsets = [37, 0], sizes = [1, 128], strides = [1, 1]} : vector<49x128xf32> to vector<1x128xf32>
    %146 = vector.shape_cast %145 : vector<1x128xf32> to vector<128xf32>
    %147 = vector.shape_cast %146 : vector<128xf32> to vector<1x1x128xf32>
    %148 = vector.broadcast %147 : vector<1x1x128xf32> to vector<8x8x128xf32>
    %149 = arith.mulf %144, %148 : vector<8x8x128xf32>
    %150 = arith.addf %122, %149 : vector<8x8x128xf32>
    %151 = vector.extract_strided_slice %108 {offsets = [6, 0, 0], sizes = [8, 8, 128], strides = [1, 1, 1]} : vector<14x8x128xf32> to vector<8x8x128xf32>
    %152 = vector.extract_strided_slice %5 {offsets = [44, 0], sizes = [1, 128], strides = [1, 1]} : vector<49x128xf32> to vector<1x128xf32>
    %153 = vector.shape_cast %152 : vector<1x128xf32> to vector<128xf32>
    %154 = vector.shape_cast %153 : vector<128xf32> to vector<1x1x128xf32>
    %155 = vector.broadcast %154 : vector<1x1x128xf32> to vector<8x8x128xf32>
    %156 = arith.mulf %151, %155 : vector<8x8x128xf32>
    %157 = arith.addf %129, %156 : vector<8x8x128xf32>
    %c0_20 = arith.constant 0 : index
    %c3_21 = arith.constant 3 : index
    %c0_22 = arith.constant 0 : index
    %158 = vector.load %arg5[%c0_20, %c3_21, %c0_22] : memref<14x14x128xf32, #tpu.memory_space<vmem>>, vector<14x8x128xf32>
    %159 = vector.extract_strided_slice %158 {offsets = [0, 0, 0], sizes = [8, 8, 128], strides = [1, 1, 1]} : vector<14x8x128xf32> to vector<8x8x128xf32>
    %160 = vector.extract_strided_slice %5 {offsets = [3, 0], sizes = [1, 128], strides = [1, 1]} : vector<49x128xf32> to vector<1x128xf32>
    %161 = vector.shape_cast %160 : vector<1x128xf32> to vector<128xf32>
    %162 = vector.shape_cast %161 : vector<128xf32> to vector<1x1x128xf32>
    %163 = vector.broadcast %162 : vector<1x1x128xf32> to vector<8x8x128xf32>
    %164 = arith.mulf %159, %163 : vector<8x8x128xf32>
    %165 = arith.addf %136, %164 : vector<8x8x128xf32>
    %166 = vector.extract_strided_slice %158 {offsets = [1, 0, 0], sizes = [8, 8, 128], strides = [1, 1, 1]} : vector<14x8x128xf32> to vector<8x8x128xf32>
    %167 = vector.extract_strided_slice %5 {offsets = [10, 0], sizes = [1, 128], strides = [1, 1]} : vector<49x128xf32> to vector<1x128xf32>
    %168 = vector.shape_cast %167 : vector<1x128xf32> to vector<128xf32>
    %169 = vector.shape_cast %168 : vector<128xf32> to vector<1x1x128xf32>
    %170 = vector.broadcast %169 : vector<1x1x128xf32> to vector<8x8x128xf32>
    %171 = arith.mulf %166, %170 : vector<8x8x128xf32>
    %172 = arith.addf %143, %171 : vector<8x8x128xf32>
    %173 = vector.extract_strided_slice %158 {offsets = [2, 0, 0], sizes = [8, 8, 128], strides = [1, 1, 1]} : vector<14x8x128xf32> to vector<8x8x128xf32>
    %174 = vector.extract_strided_slice %5 {offsets = [17, 0], sizes = [1, 128], strides = [1, 1]} : vector<49x128xf32> to vector<1x128xf32>
    %175 = vector.shape_cast %174 : vector<1x128xf32> to vector<128xf32>
    %176 = vector.shape_cast %175 : vector<128xf32> to vector<1x1x128xf32>
    %177 = vector.broadcast %176 : vector<1x1x128xf32> to vector<8x8x128xf32>
    %178 = arith.mulf %173, %177 : vector<8x8x128xf32>
    %179 = arith.addf %150, %178 : vector<8x8x128xf32>
    %180 = vector.extract_strided_slice %158 {offsets = [3, 0, 0], sizes = [8, 8, 128], strides = [1, 1, 1]} : vector<14x8x128xf32> to vector<8x8x128xf32>
    %181 = vector.extract_strided_slice %5 {offsets = [24, 0], sizes = [1, 128], strides = [1, 1]} : vector<49x128xf32> to vector<1x128xf32>
    %182 = vector.shape_cast %181 : vector<1x128xf32> to vector<128xf32>
    %183 = vector.shape_cast %182 : vector<128xf32> to vector<1x1x128xf32>
    %184 = vector.broadcast %183 : vector<1x1x128xf32> to vector<8x8x128xf32>
    %185 = arith.mulf %180, %184 : vector<8x8x128xf32>
    %186 = arith.addf %157, %185 : vector<8x8x128xf32>
    %187 = vector.extract_strided_slice %158 {offsets = [4, 0, 0], sizes = [8, 8, 128], strides = [1, 1, 1]} : vector<14x8x128xf32> to vector<8x8x128xf32>
    %188 = vector.extract_strided_slice %5 {offsets = [31, 0], sizes = [1, 128], strides = [1, 1]} : vector<49x128xf32> to vector<1x128xf32>
    %189 = vector.shape_cast %188 : vector<1x128xf32> to vector<128xf32>
    %190 = vector.shape_cast %189 : vector<128xf32> to vector<1x1x128xf32>
    %191 = vector.broadcast %190 : vector<1x1x128xf32> to vector<8x8x128xf32>
    %192 = arith.mulf %187, %191 : vector<8x8x128xf32>
    %193 = arith.addf %165, %192 : vector<8x8x128xf32>
    %194 = vector.extract_strided_slice %158 {offsets = [5, 0, 0], sizes = [8, 8, 128], strides = [1, 1, 1]} : vector<14x8x128xf32> to vector<8x8x128xf32>
    %195 = vector.extract_strided_slice %5 {offsets = [38, 0], sizes = [1, 128], strides = [1, 1]} : vector<49x128xf32> to vector<1x128xf32>
    %196 = vector.shape_cast %195 : vector<1x128xf32> to vector<128xf32>
    %197 = vector.shape_cast %196 : vector<128xf32> to vector<1x1x128xf32>
    %198 = vector.broadcast %197 : vector<1x1x128xf32> to vector<8x8x128xf32>
    %199 = arith.mulf %194, %198 : vector<8x8x128xf32>
    %200 = arith.addf %172, %199 : vector<8x8x128xf32>
    %201 = vector.extract_strided_slice %158 {offsets = [6, 0, 0], sizes = [8, 8, 128], strides = [1, 1, 1]} : vector<14x8x128xf32> to vector<8x8x128xf32>
    %202 = vector.extract_strided_slice %5 {offsets = [45, 0], sizes = [1, 128], strides = [1, 1]} : vector<49x128xf32> to vector<1x128xf32>
    %203 = vector.shape_cast %202 : vector<1x128xf32> to vector<128xf32>
    %204 = vector.shape_cast %203 : vector<128xf32> to vector<1x1x128xf32>
    %205 = vector.broadcast %204 : vector<1x1x128xf32> to vector<8x8x128xf32>
    %206 = arith.mulf %201, %205 : vector<8x8x128xf32>
    %207 = arith.addf %179, %206 : vector<8x8x128xf32>
    %c0_23 = arith.constant 0 : index
    %c4 = arith.constant 4 : index
    %c0_24 = arith.constant 0 : index
    %208 = vector.load %arg5[%c0_23, %c4, %c0_24] : memref<14x14x128xf32, #tpu.memory_space<vmem>>, vector<14x8x128xf32>
    %209 = vector.extract_strided_slice %208 {offsets = [0, 0, 0], sizes = [8, 8, 128], strides = [1, 1, 1]} : vector<14x8x128xf32> to vector<8x8x128xf32>
    %210 = vector.extract_strided_slice %5 {offsets = [4, 0], sizes = [1, 128], strides = [1, 1]} : vector<49x128xf32> to vector<1x128xf32>
    %211 = vector.shape_cast %210 : vector<1x128xf32> to vector<128xf32>
    %212 = vector.shape_cast %211 : vector<128xf32> to vector<1x1x128xf32>
    %213 = vector.broadcast %212 : vector<1x1x128xf32> to vector<8x8x128xf32>
    %214 = arith.mulf %209, %213 : vector<8x8x128xf32>
    %215 = arith.addf %186, %214 : vector<8x8x128xf32>
    %216 = vector.extract_strided_slice %208 {offsets = [1, 0, 0], sizes = [8, 8, 128], strides = [1, 1, 1]} : vector<14x8x128xf32> to vector<8x8x128xf32>
    %217 = vector.extract_strided_slice %5 {offsets = [11, 0], sizes = [1, 128], strides = [1, 1]} : vector<49x128xf32> to vector<1x128xf32>
    %218 = vector.shape_cast %217 : vector<1x128xf32> to vector<128xf32>
    %219 = vector.shape_cast %218 : vector<128xf32> to vector<1x1x128xf32>
    %220 = vector.broadcast %219 : vector<1x1x128xf32> to vector<8x8x128xf32>
    %221 = arith.mulf %216, %220 : vector<8x8x128xf32>
    %222 = arith.addf %193, %221 : vector<8x8x128xf32>
    %223 = vector.extract_strided_slice %208 {offsets = [2, 0, 0], sizes = [8, 8, 128], strides = [1, 1, 1]} : vector<14x8x128xf32> to vector<8x8x128xf32>
    %224 = vector.extract_strided_slice %5 {offsets = [18, 0], sizes = [1, 128], strides = [1, 1]} : vector<49x128xf32> to vector<1x128xf32>
    %225 = vector.shape_cast %224 : vector<1x128xf32> to vector<128xf32>
    %226 = vector.shape_cast %225 : vector<128xf32> to vector<1x1x128xf32>
    %227 = vector.broadcast %226 : vector<1x1x128xf32> to vector<8x8x128xf32>
    %228 = arith.mulf %223, %227 : vector<8x8x128xf32>
    %229 = arith.addf %200, %228 : vector<8x8x128xf32>
    %230 = vector.extract_strided_slice %208 {offsets = [3, 0, 0], sizes = [8, 8, 128], strides = [1, 1, 1]} : vector<14x8x128xf32> to vector<8x8x128xf32>
    %231 = vector.extract_strided_slice %5 {offsets = [25, 0], sizes = [1, 128], strides = [1, 1]} : vector<49x128xf32> to vector<1x128xf32>
    %232 = vector.shape_cast %231 : vector<1x128xf32> to vector<128xf32>
    %233 = vector.shape_cast %232 : vector<128xf32> to vector<1x1x128xf32>
    %234 = vector.broadcast %233 : vector<1x1x128xf32> to vector<8x8x128xf32>
    %235 = arith.mulf %230, %234 : vector<8x8x128xf32>
    %236 = arith.addf %207, %235 : vector<8x8x128xf32>
    %237 = vector.extract_strided_slice %208 {offsets = [4, 0, 0], sizes = [8, 8, 128], strides = [1, 1, 1]} : vector<14x8x128xf32> to vector<8x8x128xf32>
    %238 = vector.extract_strided_slice %5 {offsets = [32, 0], sizes = [1, 128], strides = [1, 1]} : vector<49x128xf32> to vector<1x128xf32>
    %239 = vector.shape_cast %238 : vector<1x128xf32> to vector<128xf32>
    %240 = vector.shape_cast %239 : vector<128xf32> to vector<1x1x128xf32>
    %241 = vector.broadcast %240 : vector<1x1x128xf32> to vector<8x8x128xf32>
    %242 = arith.mulf %237, %241 : vector<8x8x128xf32>
    %243 = arith.addf %215, %242 : vector<8x8x128xf32>
    %244 = vector.extract_strided_slice %208 {offsets = [5, 0, 0], sizes = [8, 8, 128], strides = [1, 1, 1]} : vector<14x8x128xf32> to vector<8x8x128xf32>
    %245 = vector.extract_strided_slice %5 {offsets = [39, 0], sizes = [1, 128], strides = [1, 1]} : vector<49x128xf32> to vector<1x128xf32>
    %246 = vector.shape_cast %245 : vector<1x128xf32> to vector<128xf32>
    %247 = vector.shape_cast %246 : vector<128xf32> to vector<1x1x128xf32>
    %248 = vector.broadcast %247 : vector<1x1x128xf32> to vector<8x8x128xf32>
    %249 = arith.mulf %244, %248 : vector<8x8x128xf32>
    %250 = arith.addf %222, %249 : vector<8x8x128xf32>
    %251 = vector.extract_strided_slice %208 {offsets = [6, 0, 0], sizes = [8, 8, 128], strides = [1, 1, 1]} : vector<14x8x128xf32> to vector<8x8x128xf32>
    %252 = vector.extract_strided_slice %5 {offsets = [46, 0], sizes = [1, 128], strides = [1, 1]} : vector<49x128xf32> to vector<1x128xf32>
    %253 = vector.shape_cast %252 : vector<1x128xf32> to vector<128xf32>
    %254 = vector.shape_cast %253 : vector<128xf32> to vector<1x1x128xf32>
    %255 = vector.broadcast %254 : vector<1x1x128xf32> to vector<8x8x128xf32>
    %256 = arith.mulf %251, %255 : vector<8x8x128xf32>
    %257 = arith.addf %229, %256 : vector<8x8x128xf32>
    %c0_25 = arith.constant 0 : index
    %c5 = arith.constant 5 : index
    %c0_26 = arith.constant 0 : index
    %258 = vector.load %arg5[%c0_25, %c5, %c0_26] : memref<14x14x128xf32, #tpu.memory_space<vmem>>, vector<14x8x128xf32>
    %259 = vector.extract_strided_slice %258 {offsets = [0, 0, 0], sizes = [8, 8, 128], strides = [1, 1, 1]} : vector<14x8x128xf32> to vector<8x8x128xf32>
    %260 = vector.extract_strided_slice %5 {offsets = [5, 0], sizes = [1, 128], strides = [1, 1]} : vector<49x128xf32> to vector<1x128xf32>
    %261 = vector.shape_cast %260 : vector<1x128xf32> to vector<128xf32>
    %262 = vector.shape_cast %261 : vector<128xf32> to vector<1x1x128xf32>
    %263 = vector.broadcast %262 : vector<1x1x128xf32> to vector<8x8x128xf32>
    %264 = arith.mulf %259, %263 : vector<8x8x128xf32>
    %265 = arith.addf %236, %264 : vector<8x8x128xf32>
    %266 = vector.extract_strided_slice %258 {offsets = [1, 0, 0], sizes = [8, 8, 128], strides = [1, 1, 1]} : vector<14x8x128xf32> to vector<8x8x128xf32>
    %267 = vector.extract_strided_slice %5 {offsets = [12, 0], sizes = [1, 128], strides = [1, 1]} : vector<49x128xf32> to vector<1x128xf32>
    %268 = vector.shape_cast %267 : vector<1x128xf32> to vector<128xf32>
    %269 = vector.shape_cast %268 : vector<128xf32> to vector<1x1x128xf32>
    %270 = vector.broadcast %269 : vector<1x1x128xf32> to vector<8x8x128xf32>
    %271 = arith.mulf %266, %270 : vector<8x8x128xf32>
    %272 = arith.addf %243, %271 : vector<8x8x128xf32>
    %273 = vector.extract_strided_slice %258 {offsets = [2, 0, 0], sizes = [8, 8, 128], strides = [1, 1, 1]} : vector<14x8x128xf32> to vector<8x8x128xf32>
    %274 = vector.extract_strided_slice %5 {offsets = [19, 0], sizes = [1, 128], strides = [1, 1]} : vector<49x128xf32> to vector<1x128xf32>
    %275 = vector.shape_cast %274 : vector<1x128xf32> to vector<128xf32>
    %276 = vector.shape_cast %275 : vector<128xf32> to vector<1x1x128xf32>
    %277 = vector.broadcast %276 : vector<1x1x128xf32> to vector<8x8x128xf32>
    %278 = arith.mulf %273, %277 : vector<8x8x128xf32>
    %279 = arith.addf %250, %278 : vector<8x8x128xf32>
    %280 = vector.extract_strided_slice %258 {offsets = [3, 0, 0], sizes = [8, 8, 128], strides = [1, 1, 1]} : vector<14x8x128xf32> to vector<8x8x128xf32>
    %281 = vector.extract_strided_slice %5 {offsets = [26, 0], sizes = [1, 128], strides = [1, 1]} : vector<49x128xf32> to vector<1x128xf32>
    %282 = vector.shape_cast %281 : vector<1x128xf32> to vector<128xf32>
    %283 = vector.shape_cast %282 : vector<128xf32> to vector<1x1x128xf32>
    %284 = vector.broadcast %283 : vector<1x1x128xf32> to vector<8x8x128xf32>
    %285 = arith.mulf %280, %284 : vector<8x8x128xf32>
    %286 = arith.addf %257, %285 : vector<8x8x128xf32>
    %287 = vector.extract_strided_slice %258 {offsets = [4, 0, 0], sizes = [8, 8, 128], strides = [1, 1, 1]} : vector<14x8x128xf32> to vector<8x8x128xf32>
    %288 = vector.extract_strided_slice %5 {offsets = [33, 0], sizes = [1, 128], strides = [1, 1]} : vector<49x128xf32> to vector<1x128xf32>
    %289 = vector.shape_cast %288 : vector<1x128xf32> to vector<128xf32>
    %290 = vector.shape_cast %289 : vector<128xf32> to vector<1x1x128xf32>
    %291 = vector.broadcast %290 : vector<1x1x128xf32> to vector<8x8x128xf32>
    %292 = arith.mulf %287, %291 : vector<8x8x128xf32>
    %293 = arith.addf %265, %292 : vector<8x8x128xf32>
    %294 = vector.extract_strided_slice %258 {offsets = [5, 0, 0], sizes = [8, 8, 128], strides = [1, 1, 1]} : vector<14x8x128xf32> to vector<8x8x128xf32>
    %295 = vector.extract_strided_slice %5 {offsets = [40, 0], sizes = [1, 128], strides = [1, 1]} : vector<49x128xf32> to vector<1x128xf32>
    %296 = vector.shape_cast %295 : vector<1x128xf32> to vector<128xf32>
    %297 = vector.shape_cast %296 : vector<128xf32> to vector<1x1x128xf32>
    %298 = vector.broadcast %297 : vector<1x1x128xf32> to vector<8x8x128xf32>
    %299 = arith.mulf %294, %298 : vector<8x8x128xf32>
    %300 = arith.addf %272, %299 : vector<8x8x128xf32>
    %301 = vector.extract_strided_slice %258 {offsets = [6, 0, 0], sizes = [8, 8, 128], strides = [1, 1, 1]} : vector<14x8x128xf32> to vector<8x8x128xf32>
    %302 = vector.extract_strided_slice %5 {offsets = [47, 0], sizes = [1, 128], strides = [1, 1]} : vector<49x128xf32> to vector<1x128xf32>
    %303 = vector.shape_cast %302 : vector<1x128xf32> to vector<128xf32>
    %304 = vector.shape_cast %303 : vector<128xf32> to vector<1x1x128xf32>
    %305 = vector.broadcast %304 : vector<1x1x128xf32> to vector<8x8x128xf32>
    %306 = arith.mulf %301, %305 : vector<8x8x128xf32>
    %307 = arith.addf %279, %306 : vector<8x8x128xf32>
    %c0_27 = arith.constant 0 : index
    %c6 = arith.constant 6 : index
    %c0_28 = arith.constant 0 : index
    %308 = vector.load %arg5[%c0_27, %c6, %c0_28] : memref<14x14x128xf32, #tpu.memory_space<vmem>>, vector<14x8x128xf32>
    %309 = vector.extract_strided_slice %308 {offsets = [0, 0, 0], sizes = [8, 8, 128], strides = [1, 1, 1]} : vector<14x8x128xf32> to vector<8x8x128xf32>
    %310 = vector.extract_strided_slice %5 {offsets = [6, 0], sizes = [1, 128], strides = [1, 1]} : vector<49x128xf32> to vector<1x128xf32>
    %311 = vector.shape_cast %310 : vector<1x128xf32> to vector<128xf32>
    %312 = vector.shape_cast %311 : vector<128xf32> to vector<1x1x128xf32>
    %313 = vector.broadcast %312 : vector<1x1x128xf32> to vector<8x8x128xf32>
    %314 = arith.mulf %309, %313 : vector<8x8x128xf32>
    %315 = arith.addf %286, %314 : vector<8x8x128xf32>
    %316 = vector.extract_strided_slice %308 {offsets = [1, 0, 0], sizes = [8, 8, 128], strides = [1, 1, 1]} : vector<14x8x128xf32> to vector<8x8x128xf32>
    %317 = vector.extract_strided_slice %5 {offsets = [13, 0], sizes = [1, 128], strides = [1, 1]} : vector<49x128xf32> to vector<1x128xf32>
    %318 = vector.shape_cast %317 : vector<1x128xf32> to vector<128xf32>
    %319 = vector.shape_cast %318 : vector<128xf32> to vector<1x1x128xf32>
    %320 = vector.broadcast %319 : vector<1x1x128xf32> to vector<8x8x128xf32>
    %321 = arith.mulf %316, %320 : vector<8x8x128xf32>
    %322 = arith.addf %293, %321 : vector<8x8x128xf32>
    %323 = vector.extract_strided_slice %308 {offsets = [2, 0, 0], sizes = [8, 8, 128], strides = [1, 1, 1]} : vector<14x8x128xf32> to vector<8x8x128xf32>
    %324 = vector.extract_strided_slice %5 {offsets = [20, 0], sizes = [1, 128], strides = [1, 1]} : vector<49x128xf32> to vector<1x128xf32>
    %325 = vector.shape_cast %324 : vector<1x128xf32> to vector<128xf32>
    %326 = vector.shape_cast %325 : vector<128xf32> to vector<1x1x128xf32>
    %327 = vector.broadcast %326 : vector<1x1x128xf32> to vector<8x8x128xf32>
    %328 = arith.mulf %323, %327 : vector<8x8x128xf32>
    %329 = arith.addf %300, %328 : vector<8x8x128xf32>
    %330 = vector.extract_strided_slice %308 {offsets = [3, 0, 0], sizes = [8, 8, 128], strides = [1, 1, 1]} : vector<14x8x128xf32> to vector<8x8x128xf32>
    %331 = vector.extract_strided_slice %5 {offsets = [27, 0], sizes = [1, 128], strides = [1, 1]} : vector<49x128xf32> to vector<1x128xf32>
    %332 = vector.shape_cast %331 : vector<1x128xf32> to vector<128xf32>
    %333 = vector.shape_cast %332 : vector<128xf32> to vector<1x1x128xf32>
    %334 = vector.broadcast %333 : vector<1x1x128xf32> to vector<8x8x128xf32>
    %335 = arith.mulf %330, %334 : vector<8x8x128xf32>
    %336 = arith.addf %307, %335 : vector<8x8x128xf32>
    %337 = vector.extract_strided_slice %308 {offsets = [4, 0, 0], sizes = [8, 8, 128], strides = [1, 1, 1]} : vector<14x8x128xf32> to vector<8x8x128xf32>
    %338 = vector.extract_strided_slice %5 {offsets = [34, 0], sizes = [1, 128], strides = [1, 1]} : vector<49x128xf32> to vector<1x128xf32>
    %339 = vector.shape_cast %338 : vector<1x128xf32> to vector<128xf32>
    %340 = vector.shape_cast %339 : vector<128xf32> to vector<1x1x128xf32>
    %341 = vector.broadcast %340 : vector<1x1x128xf32> to vector<8x8x128xf32>
    %342 = arith.mulf %337, %341 : vector<8x8x128xf32>
    %343 = arith.addf %315, %342 : vector<8x8x128xf32>
    %344 = vector.extract_strided_slice %308 {offsets = [5, 0, 0], sizes = [8, 8, 128], strides = [1, 1, 1]} : vector<14x8x128xf32> to vector<8x8x128xf32>
    %345 = vector.extract_strided_slice %5 {offsets = [41, 0], sizes = [1, 128], strides = [1, 1]} : vector<49x128xf32> to vector<1x128xf32>
    %346 = vector.shape_cast %345 : vector<1x128xf32> to vector<128xf32>
    %347 = vector.shape_cast %346 : vector<128xf32> to vector<1x1x128xf32>
    %348 = vector.broadcast %347 : vector<1x1x128xf32> to vector<8x8x128xf32>
    %349 = arith.mulf %344, %348 : vector<8x8x128xf32>
    %350 = arith.addf %322, %349 : vector<8x8x128xf32>
    %351 = vector.extract_strided_slice %308 {offsets = [6, 0, 0], sizes = [8, 8, 128], strides = [1, 1, 1]} : vector<14x8x128xf32> to vector<8x8x128xf32>
    %352 = vector.extract_strided_slice %5 {offsets = [48, 0], sizes = [1, 128], strides = [1, 1]} : vector<49x128xf32> to vector<1x128xf32>
    %353 = vector.shape_cast %352 : vector<1x128xf32> to vector<128xf32>
    %354 = vector.shape_cast %353 : vector<128xf32> to vector<1x1x128xf32>
    %355 = vector.broadcast %354 : vector<1x1x128xf32> to vector<8x8x128xf32>
    %356 = arith.mulf %351, %355 : vector<8x8x128xf32>
    %357 = arith.addf %329, %356 : vector<8x8x128xf32>
    %358 = arith.addf %357, %336 : vector<8x8x128xf32>
    %359 = arith.addf %343, %350 : vector<8x8x128xf32>
    %360 = arith.addf %358, %359 : vector<8x8x128xf32>
    %361 = vector.shape_cast %6 : vector<1x128xf32> to vector<1x1x128xf32>
    %362 = vector.broadcast %361 : vector<1x1x128xf32> to vector<8x8x128xf32>
    %363 = arith.addf %360, %362 : vector<8x8x128xf32>
    %c0_29 = arith.constant 0 : index
    %c0_30 = arith.constant 0 : index
    %c0_31 = arith.constant 0 : index
    %c0_32 = arith.constant 0 : index
    %364 = vector.load %arg4[%c0_29, %c0_30, %c0_31, %c0_32] : memref<1x8x8x128xf32, #tpu.memory_space<vmem>>, vector<1x8x8x128xf32>
    %365 = vector.shape_cast %364 : vector<1x8x8x128xf32> to vector<8x8x128xf32>
    %366 = vector.shape_cast %363 : vector<8x8x128xf32> to vector<1x8x8x128xf32>
    tpu.vector_store %arg4[%c0_29, %c0_30, %c0_31, %c0_32], %366 {strides = array<i32>} : memref<1x8x8x128xf32, #tpu.memory_space<vmem>>, vector<1x8x8x128xf32>,
    return
  }
  func.func @transform_0(%arg0: i32) -> (i32, i32, i32, i32) {
    %c0_i32 = arith.constant 0 : i32
    %c0_i32_0 = arith.constant 0 : i32
    %c0_i32_1 = arith.constant 0 : i32
    %c0_i32_2 = arith.constant 0 : i32
    return %arg0, %c0_i32, %c0_i32_0, %c0_i32_1 : i32, i32, i32, i32
  }
  func.func @transform_1(%arg0: i32) -> (i32, i32) {
    %c0_i32 = arith.constant 0 : i32
    %c0_i32_0 = arith.constant 0 : i32
    %c0_i32_1 = arith.constant 0 : i32
    return %c0_i32, %c0_i32_0 : i32, i32
  }
  func.func @transform_2(%arg0: i32) -> (i32, i32) {
    %c0_i32 = arith.constant 0 : i32
    %c0_i32_0 = arith.constant 0 : i32
    %c0_i32_1 = arith.constant 0 : i32
    return %c0_i32, %c0_i32_0 : i32, i32
  }
  func.func @transform_3(%arg0: i32) -> (i32, i32, i32, i32) {
    %c0_i32 = arith.constant 0 : i32
    %c0_i32_0 = arith.constant 0 : i32
    %c0_i32_1 = arith.constant 0 : i32
    %c0_i32_2 = arith.constant 0 : i32
    return %arg0, %c0_i32, %c0_i32_0, %c0_i32_1 : i32, i32, i32, i32
  }
}

</mosaic_0001>

<bundles_post_ra>
// kernel: tpu_custom_call.1
= control target key start
LH: loop header
LB: loop body
LE: loop exit
PB: predicated region body
PF: predicated region fallthrough
CT: control target
= control target key end

     0   :  { %8 = vsyncpa [#allocation4], 0  ;;  %s3282_s0 = inlined_call_operand.hbm [shape: f32[2,8,8,128], index: 0, kind: input, shape index: {}]   ;;  %s3283_s1 = inlined_call_operand.hbm [shape: f32[49,128], index: 1, kind: input, shape index: {}]   ;;  %s3284_s2 = inlined_call_operand.hbm [shape: f32[1,128], index: 2, kind: input, shape index: {}]   ;;  %s3285_s3 = inlined_call_operand.hbm [shape: f32[2,8,8,128], index: 3, kind: output, shape index: {}]  }
   0x1   :  { %10 = vsyncpa [#allocation4 + $0x1], 0 }
   0x2   :  { %11 = vsyncpa [#allocation7], 0 }
   0x3   :  { %12 = vsyncpa [#allocation5], 0 }
   0x4   :  { %14 = vsyncpa [#allocation5 + $0x1], 0  ;;  %s1813_s12 = smov 0   ;;  %s1815_s13 = smov 0  }
   0x5   :  { %s1817_s14 = smov 0   ;;  %s1819_s15 = smov 0  }
   0x6 LB: > { %s1834_s16 = sadd.s32 4294967295, %s1782_s15   ;;  %s1499_s17 = sadd.s32 4294967294, %s1782_s15   ;;  %s1782_s15 = sphi %s1819_s15, %s4026_s15   ;;  %s1778_s14 = sphi %s1817_s14, %s4025_s14   ;;  %s1774_s13 = sphi %s1815_s13, %s4024_s13   ;;  %s1770_s12 = sphi %s1813_s12, %s4023_s12  }
   0x7   : > { %p40_p0 = scmp.ne.s32.totalorder %s1774_s13, %s1770_s12  ;;  %p3286_p1 = scmp.eq.s32.totalorder %s1834_s16, 0 }
   0x8   : > { %p112_p3 = scmp.eq.s32.totalorder %s1499_s17, 1  ;;  %p1500_p5 = scmp.ge.s32.totalorder %s1782_s15, 1 }
   0x9   : > { %p1843_p4 = por %p3286_p1, %p40_p0  ;;  %p119_p7 = scmp.lt.s32.totalorder %s1782_s15, 3 }
   0xa   : > { %p1848_p6 = por %p112_p3, %p40_p0  ;;  %s1784_s21 = smov [#allocation6]  }
   0xb   : > { %s3553_s18 = scalar_select %p1843_p4, 1, 0 }
   0xc   : > { %s3554_s19 = scalar_select %p1848_p6, 1, 0 }
   0xd   : > { %p1853_p8 = pnand %p1500_p5, %p119_p7  ;;  %s131_s22 = sshll.u32 %s1784_s21, 4  ;;  %s1857_s22 = int_to_ptr.vmem [resolvable:$true] %s131_s22 }
   0xe   : > { %s1785_s24 = smov [#allocation8]   ;;  %s1626_s28 = scalar_lea.hbm %s3283_s1, 896 }
   0xf   : > { %p1533_p9 = pneg %p1853_p8  ;;  %s145_s25 = sshll.u32 %s1785_s24, 4  ;;  %s1868_s25 = int_to_ptr.vmem [resolvable:$true] %s145_s25 }
  0x10   : > { %p1627_p12 = scmp.ne.s32.totalorder %s3283_s1, %s1626_s28  ;;  %p1633_p5 = scmp.lt.u32.totalorder %s1626_s28, %s3283_s1 }
  0x11   : > { %p1864_p11 = pnand %p1533_p9, %p3286_p1 }
  0x13   : > { %p1628_p13 = pneg %p1864_p11 }
  0x15   : > { %p1629_p0 = pnand %p1628_p13, %p1627_p12 }
  0x17   : > { %p1630_p3 = pneg %p1629_p0 }
  0x19   : > { %p1635_p7 = pnand %p1633_p5, %p1630_p3 }
  0x1b   : > { %1638 = shalt.err (!%p1635_p7)
}
  0x1c   : > { %s1639_s6 = scalar_lea.vmem %s1857_s22, 896  ;;  %p1647_p2 = scmp.lt.s32.totalorder %s1857_s22, %s1857_s22 }
  0x1d   : > { %p1640_p9 = scmp.ne.s32.totalorder %s1857_s22, %s1639_s6  ;;  %p1648_p12 = scmp.lt.s32.totalorder %s1639_s6, %s1639_s6 }
  0x1f   : > { %p1642_p10 = pnand %p1640_p9, %p1628_p13  ;;  %p1649_p0 = por %p1648_p12, %p1647_p2 }
  0x21   : > { %p1643_p1 = pneg %p1642_p10 }
  0x23   : > { %p1650_p6 = pnand %p1649_p0, %p1643_p1 }
  0x25   : > { %1653 = shalt.err (!%p1650_p6)
}
  0x26   : > { %s1786_s7 = smov 128   ;;  %s1787_s8 = smov 8  }
  0x27   : > { %1536 = dma.hbm_to_vmem [thread:$0]  (!%p1864_p11), %s3283_s1, 896, %s1857_s22, [#allocation7], %s1786_s7, %s1786_s7, %s1787_s8  }
  0x28   : > { %s1654_s21 = scalar_lea.hbm %s3284_s2, 16 }
  0x29   : > { %p1655_p1 = scmp.ne.s32.totalorder %s3284_s2, %s1654_s21  ;;  %p1661_p10 = scmp.lt.u32.totalorder %s1654_s21, %s3284_s2 }
  0x2b   : > { %p1657_p2 = pnand %p1655_p1, %p1628_p13 }
  0x2d   : > { %p1658_p6 = pneg %p1657_p2 }
  0x2f   : > { %p1663_p3 = pnand %p1661_p10, %p1658_p6 }
  0x31   : > { %1666 = shalt.err (!%p1663_p3)
}
  0x32   : > { %s1667_s22 = scalar_lea.vmem %s1868_s25, 16  ;;  %s1674_s29 = scalar_lea.vmem %s1868_s25, 32 }
  0x33   : > { %p1668_p5 = scmp.ne.s32.totalorder %s1868_s25, %s1667_s22  ;;  %p1675_p12 = scmp.lt.s32.totalorder %s1868_s25, %s1868_s25 }
  0x34   : > { %p1676_p0 = scmp.lt.s32.totalorder %s1674_s29, %s1667_s22 }
  0x35   : > { %p1670_p7 = pnand %p1668_p5, %p1628_p13 }
  0x36   : > { %p1677_p1 = por %p1676_p0, %p1675_p12 }
  0x37   : > { %p1671_p9 = pneg %p1670_p7 }
  0x39   : > { %p1678_p2 = pnand %p1677_p1, %p1671_p9 }
  0x3b   : > { %1681 = shalt.err (!%p1678_p2)
}
  0x3c   : > { %1539 = dma.hbm_to_vmem [thread:$0]  (!%p1864_p11), %s3284_s2, 16, %s1868_s25, [#allocation7]  }
  0x3d   : > { %s1927_s5 = sadd.s32 1, %s1782_s15   ;;  %s27_s23 = sadd.s32 1, %s1778_s14 }
  0x3e   : > { %s24_s6 = ssub.s32 %s1782_s15, %s1927_s5  ;;  %p34_p13 = scmp.ne.s32.totalorder %s1778_s14, %s1774_s13 }
  0x3f   : > { %p25_p6 = scmp.eq.s32.totalorder %s24_s6, 0  ;;  %p35_p10 = scmp.eq.s32.totalorder %s1782_s15, 0 }
  0x40   : > { %p3557_p3 = scmp.eq.s32.totalorder %s1834_s16, 1  ;;  %p1550_p7 = scmp.lt.s32.totalorder %s1782_s15, 2 }
  0x41   : > { %s1943_s10 = scalar_select %p25_p6, %s1778_s14, %s27_s23  }
  0x42   : > { %p1937_p5 = por %p3557_p3, %p34_p13  ;;  %p36_p9 = por %p35_p10, %p34_p13 }
  0x43   : > { %s156_s11 = sand.u32 1, %s1778_s14   ;;  %s1519_s25 = sshll.u32 %s1782_s15, 10 }
  0x44   : > { %s3558_s9 = scalar_select %p1937_p5, 1, 0 }
  0x45   : > { %s1504_s17 = sshll.u32 %s156_s11, 6  ;;  %s1950_s26 = scalar_lea.hbm %s3282_s0, %s1519_s25 }
  0x46   : > { %s160_s27 = scalar_lea.vmem [#allocation3], %s1504_s17  ;;  %p1954_p11 = pnand %p1550_p7, %p36_p9 }
  0x47   : > { %s167_s28 = sshll.u32 %s160_s27, 4  ;;  %s1958_s29 = scalar_lea.sflag [#allocation4], %s156_s11  ;;  %s1952_s28 = int_to_ptr.vmem [resolvable:$true] %s167_s28 }
  0x48   : > { %s1682_s30 = scalar_lea.hbm %s1950_s26, 1024  ;;  %p1684_p0 = pneg %p1954_p11 }
  0x49   : > { %p1683_p12 = scmp.ne.s32.totalorder %s1950_s26, %s1682_s30  ;;  %s1687_s6 = scalar_lea.hbm %s3282_s0, 2048 }
  0x4a   : > { %p1688_p13 = scmp.lt.u32.totalorder %s1950_s26, %s3282_s0  ;;  %p1689_p6 = scmp.lt.u32.totalorder %s1687_s6, %s1682_s30 }
  0x4b   : > { %p1685_p1 = pnand %p1684_p0, %p1683_p12  ;;  %p1691_p3 = scmp.lt.u32.totalorder %s1682_s30, %s1950_s26 }
  0x4c   : > { %p1690_p10 = por %p1689_p6, %p1688_p13 }
  0x4d   : > { %p1686_p2 = pneg %p1685_p1 }
  0x4e   : > { %p1692_p7 = por %p1691_p3, %p1690_p10 }
  0x50   : > { %p1693_p9 = pnand %p1692_p7, %p1686_p2 }
  0x52   : > { %1696 = shalt.err (!%p1693_p9)
}
  0x53   : > { %s1697_s11 = scalar_lea.vmem %s1952_s28, 1024  ;;  %s1788_s21 = smov [#allocation3]  }
  0x54   : > { %p1698_p12 = scmp.ne.s32.totalorder %s1952_s28, %s1697_s11  ;;  %s1702_s24 = sshll.u32 %s1788_s21, 4  ;;  %s1703_s24 = int_to_ptr.vmem [resolvable:$false] %s1702_s24 }
  0x55   : > { %s1704_s27 = scalar_lea.vmem %s1703_s24, 2048  ;;  %p1705_p4 = scmp.lt.s32.totalorder %s1952_s28, %s1703_s24 }
  0x56   : > { %p1700_p1 = pnand %p1698_p12, %p1684_p0  ;;  %p1706_p13 = scmp.lt.s32.totalorder %s1704_s27, %s1697_s11 }
  0x58   : > { %p1701_p5 = pneg %p1700_p1  ;;  %p1707_p6 = por %p1706_p13, %p1705_p4 }
  0x5a   : > { %p1708_p10 = pnand %p1707_p6, %p1701_p5 }
  0x5c   : > { %1711 = shalt.err (!%p1708_p10)
}
  0x5d   : > { %1543 = dma.hbm_to_vmem [thread:$0]  (!%p1954_p11), %s1950_s26, 1024, %s1952_s28, %s1958_s29, %s1786_s7, %s1786_s7, %s1787_s8  }
  0x5e   : > { %179 = sbr.rel (%p1853_p8) target bundleno = 378 (0x17a), region = 32 }
  0x65   : > { %s1992_s30 = sand.u32 1, %s1774_s13   ;;  %p3560_p4 = scmp.ne.s32.totalorder %s3553_s18, 0 }
  0x66   : > { %s1508_s4 = sshll.u32 %s1992_s30, 6  ;;  %s182_s23 = scalar_lea.sflag [#allocation4], %s1992_s30 }
  0x67   : > { %s1998_s22 = scalar_lea.vmem [#allocation3], %s1508_s4 }
  0x68   : > { %1757 = dma.done.wait (%p3560_p4), %s182_s23, 1024  }
  0x69   : > { %1759 = vsyncadd (%p3560_p4), %s182_s23, 4294966272  ;;  %p3561_p5 = scmp.eq.s32.totalorder %s1834_s16, 0 }
  0x6b   : > { %1761 = dma.done.wait (%p3561_p5), [#allocation7], 912   ;;  %p3562_p8 = pmov %p3561_p5 }
  0x6c   : > { %v283_v0 = vlaneseq  ;;  %v1789_v1 = vmov 0.0   ;;  %v2022_v10 = vld [vmem:[#allocation6] sm:$0xff]  ;;  %v2024_v11 = vld [vmem:[#allocation6 + $0x18] sm:$0xff]  ;;  %v2049_v19 = vld [vmem:[%s1998_s22 + $0x8] sm:$0xff]  ;;  %s2476_s18 = scalar_lea.vmem [#allocation9], %s1508_s4  ;;  %s1520_s7 = sshll.u32 %s1834_s16, 10 }
  0x6d   : > { %1763 = vsyncadd (%p3562_p8), [#allocation7], 4294966384  ;;  %222 = vst [vmem:[#allocation2 + $0x30] sm:$0xff] %v1789_v1  ;;  %v2027_v12 = vld [vmem:[%s1998_s22] sm:$0xff]  ;;  %v2052_v20 = vld [vmem:[%s1998_s22 + $0x10] sm:$0xff]  ;;  %s1407_s20 = sshll.u32 %s2476_s18, 4  ;;  %s3236_s28 = scalar_lea.hbm %s3285_s3, %s1520_s7  ;;  %s3231_s20 = int_to_ptr.vmem [resolvable:$true] %s1407_s20 }
  0x6e   : > { %216 = vst [vmem:[#allocation2] sm:$0xff] %v1789_v1  ;;  %217 = vst [vmem:[#allocation2 + $0x8] sm:$0x3f] %v1789_v1  ;;  %v284_v2 = vshrl.u32 %v283_v0, 7  ;;  %v2055_v21 = vld [vmem:[%s1998_s22 + $0x18] sm:$0xff]  ;;  %v2083_v28 = vld [vmem:[%s1998_s22 + $0x20] sm:$0xff] }
  0x6f   : > { %218 = vst [vmem:[#allocation2 + $0x10] sm:$0xff] %v1789_v1  ;;  %219 = vst [vmem:[#allocation2 + $0x18] sm:$0x3f] %v1789_v1  ;;  %v2086_v29 = vld [vmem:[%s1998_s22 + $0x28] sm:$0xff]  ;;  %v2089_v30 = vld [vmem:[%s1998_s22 + $0x30] sm:$0xff]  ;;  %s1394_s29 = scalar_lea.sflag [#allocation5], %s1992_s30 }
  0x70   : > { %220 = vst [vmem:[#allocation2 + $0x20] sm:$0xff] %v1789_v1  ;;  %221 = vst [vmem:[#allocation2 + $0x28] sm:$0x3f] %v1789_v1  ;;  %v2008_v3 = vsub.s32 0, %v284_v2  ;;  %v2010_v4 = vsub.s32 4, %v284_v2  ;;  %v2012_v5 = vsub.s32 7, %v284_v2 }
  0x71   : > { %223 = vst [vmem:[#allocation2 + $0x38] sm:$0x3f] %v1789_v1  ;;  %224 = vst [vmem:[#allocation2 + $0x40] sm:$0xff] %v1789_v1  ;;  %v2014_v6 = vsub.s32 6, %v284_v2  ;;  %v2016_v7 = vsub.s32 5, %v284_v2  ;;  %v2018_v8 = vsub.s32 2, %v284_v2 }
  0x72   : > { %225 = vst [vmem:[#allocation2 + $0x48] sm:$0x3f] %v1789_v1  ;;  %226 = vst [vmem:[#allocation2 + $0x50] sm:$0xff] %v1789_v1  ;;  %v2020_v9 = vsub.s32 1, %v284_v2  ;;  %v2029_v13 = vsub.s32 3, %v284_v2  ;;  %v2033_v14 = vrot.slane %v2022_v10, %v2008_v3  ;;  %v2037_v15 = vrot.slane %v2024_v11, %v2010_v4  ;;  %v251_v33 = vld [vmem:[%s1998_s22 + $0x38] sm:$0xff] }
  0x73   : > { %227 = vst [vmem:[#allocation2 + $0x58] sm:$0x3f] %v1789_v1  ;;  %228 = vst [vmem:[#allocation2 + $0x60] sm:$0xff] %v1789_v1  ;;  %v2042_v17 = vrot.slane %v2022_v10, %v2012_v5  ;;  %v2059_v22 = vrot.slane %v2024_v11, %v2016_v7  ;;  %v2063_v23 = vrot.slane %v2022_v10, %v2018_v8  ;;  %v2099_v34 = vld [vmem:[#allocation6 + $0x8] sm:$0xff]  ;;  %v2101_v35 = vld [vmem:[#allocation6 + $0x10] sm:$0xff]  ;;  %s1712_s6 = scalar_lea.vmem %s3231_s20, 1024 }
  0x74   : > { %229 = vst [vmem:[#allocation2 + $0x68] sm:$0x3f] %v1789_v1  ;;  %230 = vst [vmem:[#allocation2 + $0x70] sm:$0xff] %v1789_v1  ;;  %v2046_v18 = vrot.slane %v2022_v10, %v2020_v9  ;;  %v2067_v24 = vrot.slane %v2024_v11, %v2014_v6  ;;  %v2071_v25 = vrot.slane %v2022_v10, %v2029_v13  ;;  %v2074_v26 = vmul.f32 0.0, %v2033_v14  ;;  %v2119_v40 = vld [vmem:[#allocation6 + $0x20] sm:$0xff]  ;;  %v2121_v41 = vld [vmem:[#allocation6 + $0x28] sm:$0xff]  ;;  %p1713_p11 = scmp.ne.s32.totalorder %s3231_s20, %s1712_s6 }
  0x75   : > { %231 = vst [vmem:[#allocation2 + $0x78] sm:$0x3f] %v1789_v1  ;;  %232 = vst [vmem:[#allocation2 + $0x80] sm:$0xff] %v1789_v1  ;;  %v423_v16 = vld [vmem:[#allocation2 + $0x1] sm:$0xff]  ;;  %v2077_v27 = vmul.f32 0.0, %v2037_v15  ;;  %v2092_v31 = vmul.f32 0.0, %v2042_v17  ;;  %v2105_v36 = vrot.slane %v2024_v11, %v2008_v3  ;;  %v2109_v37 = vrot.slane %v2024_v11, %v2012_v5 }
  0x76   : > { %233 = vst [vmem:[#allocation2 + $0x88] sm:$0x3f] %v1789_v1  ;;  %234 = vst [vmem:[#allocation2 + $0x90] sm:$0xff] %v1789_v1  ;;  %v441_v32 = vmul.f32 %v2046_v18, %v423_v16  ;;  %v2113_v38 = vrot.slane %v2022_v10, %v2010_v4  ;;  %v2117_v39 = vrot.slane %v2024_v11, %v2020_v9  ;;  %v2139_v46 = vld [vmem:[#allocation2 + $0x11] sm:$0xff]  ;;  %v577_v52 = vld [vmem:[#allocation2 + $0x2] sm:$0xff]  ;;  %p4020_p0 = scmp.ne.s32.totalorder %s3558_s9, 0 }
  0x77   : > { %235 = vst [vmem:[#allocation2 + $0x98] sm:$0x3f] %v1789_v1  ;;  %236 = vst [vmem:[#allocation2 + $0xa0] sm:$0xff] %v1789_v1  ;;  %v2125_v42 = vrot.slane %v2099_v34, %v2014_v6  ;;  %v2129_v43 = vrot.slane %v2101_v35, %v2016_v7  ;;  %v2133_v44 = vrot.slane %v2099_v34, %v2008_v3  ;;  %v2141_v47 = vld [vmem:[#allocation2 + $0x21] sm:$0xff]  ;;  %v2168_v57 = vld [vmem:[#allocation2 + $0x12] sm:$0xff]  ;;  %s1790_s16 = smov [#allocation9]  }
  0x78   : > { %237 = vst [vmem:[#allocation2 + $0xa8] sm:$0x3f] %v1789_v1  ;;  %238 = vst [vmem:[#allocation2 + $0xb0] sm:$0xff] %v1789_v1  ;;  %v2137_v45 = vrot.slane %v2099_v34, %v2012_v5  ;;  %v2145_v48 = vrot.slane %v2119_v40, %v2029_v13  ;;  %v2149_v49 = vrot.slane %v2121_v41, %v2018_v8  ;;  %v2170_v58 = vld [vmem:[#allocation2 + $0x22] sm:$0xff]  ;;  %p1714_p2 = pnand %p1713_p11, %p4020_p0  ;;  %s1716_s17 = sshll.u32 %s1790_s16, 4  ;;  %s1717_s17 = int_to_ptr.vmem [resolvable:$false] %s1716_s17 }
  0x79   : > { %239 = vst [vmem:[#allocation2 + $0xb8] sm:$0x3f] %v1789_v1  ;;  %240 = vst [vmem:[#allocation2 + $0xc0] sm:$0xff] %v1789_v1  ;;  %v2153_v50 = vrot.slane %v2101_v35, %v2014_v6  ;;  %v2157_v51 = vrot.slane %v2119_v40, %v2010_v4  ;;  %v327_v53 = vmul.f32 0.0, %v2125_v42  ;;  %v461_v54 = vmul.f32 %v2133_v44, %v2139_v46  ;;  %v731_v59 = vld [vmem:[#allocation2 + $0x3] sm:$0xff]  ;;  %s1718_s25 = scalar_lea.vmem %s1717_s17, 2048  ;;  %p1719_p7 = scmp.lt.s32.totalorder %s3231_s20, %s1717_s17 }
  0x7a   : > { %241 = vst [vmem:[#allocation2 + $0xc8] sm:$0x3f] %v1789_v1  ;;  %242 = vst [vmem:[#allocation2 + $0xd0] sm:$0xff] %v1789_v1  ;;  %v481_v55 = vmul.f32 %v2137_v45, %v2141_v47  ;;  %v2166_v56 = vrot.slane %v2121_v41, %v2029_v13  ;;  %v595_v63 = vmul.f32 %v2063_v23, %v577_v52  ;;  %p1715_p3 = pneg %p1714_p2  ;;  %p1720_p9 = scmp.lt.s32.totalorder %s1718_s25, %s1712_s6 }
  0x7b   : > { %243 = vst [vmem:[#allocation2 + $0xd8] sm:$0x3f] %v1789_v1  ;;  %3563 = vst [vmem:[#allocation13_spill] sm:$0xff] %v2033_v14  ;;  %v2181_v0 = vrot.slane %v2099_v34, %v2020_v9  ;;  %v2185_v1 = vrot.slane %v2101_v35, %v2008_v3  ;;  %v2189_v2 = vrot.slane %v2101_v35, %v2012_v5 }
  0x7c   : > { %3564 = vst [vmem:[#allocation14_spill] sm:$0xff] %v2037_v15  ;;  %253 = vst [vmem:[#allocation2 + $0x33] sm:$0xff] %v2027_v12  ;;  %v2197_v52 = vrot.slane %v2119_v40, %v2016_v7  ;;  %p1721_p12 = por %p1720_p9, %p1719_p7 }
  0x7d   : > { %3565 = vst [vmem:[#allocation15_spill] sm:$0xff] %v2042_v17  ;;  %3566 = vst [vmem:[#allocation16_spill] sm:$0xff] %v2046_v18 }
  0x7e   : > { %3567 = vst [vmem:[#allocation17_spill] sm:$0xff] %v2055_v21  ;;  %3568 = vst [vmem:[#allocation18_spill] sm:$0xff] %v2059_v22  ;;  %p1722_p1 = pnand %p1721_p12, %p1715_p3 }
  0x7f   : > { %3569 = vst [vmem:[#allocation19_spill] sm:$0xff] %v2063_v23  ;;  %3570 = vst [vmem:[#allocation20_spill] sm:$0xff] %v2067_v24  ;;  %v635_v23 = vmul.f32 %v2185_v1, %v2170_v58 }
  0x80   : > { %3571 = vst [vmem:[#allocation21_spill] sm:$0xff] %v2071_v25  ;;  %3572 = vst [vmem:[#allocation22_spill] sm:$0xff] %v2074_v26 }
  0x81   : > { %3573 = vst [vmem:[#allocation23_spill] sm:$0xff] %v2077_v27  ;;  %254 = vst [vmem:[#allocation2 + $0x43] sm:$0xff] %v2049_v19  ;;  %v2201_v27 = vrot.slane %v2121_v41, %v2010_v4 }
  0x82   : > { %255 = vst [vmem:[#allocation2 + $0x53] sm:$0xff] %v2052_v20  ;;  %256 = vst [vmem:[#allocation2 + $0x63] sm:$0xff] %v2055_v21 }
  0x83   : > { %3574 = vst [vmem:[#allocation24_spill] sm:$0xff] %v2083_v28  ;;  %3575 = vst [vmem:[#allocation25_spill] sm:$0xff] %v2086_v29  ;;  %v2172_v60 = vld [vmem:[#allocation2 + $0x30] sm:$0xff] }
  0x84   : > { %3576 = vst [vmem:[#allocation26_spill] sm:$0xff] %v2089_v30  ;;  %257 = vst [vmem:[#allocation2 + $0x73] sm:$0xff] %v2083_v28  ;;  %v2174_v61 = vld [vmem:[#allocation2 + $0x31] sm:$0xff]  ;;  %v347_v16 = vmul.f32 %v2129_v43, %v2172_v60  ;;  %v615_v28 = vmul.f32 %v2181_v0, %v2168_v57 }
  0x85   : > { %258 = vst [vmem:[#allocation2 + $0x83] sm:$0xff] %v2086_v29  ;;  %259 = vst [vmem:[#allocation2 + $0x93] sm:$0xff] %v2089_v30  ;;  %v2176_v62 = vld [vmem:[#allocation2 + $0x32] sm:$0xff] }
  0x86   : > { %3577 = vst [vmem:[#allocation27_spill] sm:$0xff] %v2105_v36  ;;  %3578 = vst [vmem:[#allocation28_spill] sm:$0xff] %v2109_v37  ;;  %v2203_v30 = vld [vmem:[#allocation2 + $0x13] sm:$0xff] }
  0x87   : > { %3579 = vst [vmem:[#allocation29_spill] sm:$0xff] %v2113_v38  ;;  %3580 = vst [vmem:[#allocation30_spill] sm:$0xff] %v2117_v39 }
  0x88   : > { %260 = vst [vmem:[#allocation2 + $0xa3] sm:$0xff] %v251_v33  ;;  %3581 = vst [vmem:[#allocation31_spill] sm:$0xff] %v2125_v42  ;;  %v501_v33 = vmul.f32 %v2153_v50, %v2174_v61  ;;  %v2205_v14 = vld [vmem:[#allocation2 + $0x40] sm:$0xff] }
  0x89   : > { %3582 = vst [vmem:[#allocation32_spill] sm:$0xff] %v2129_v43  ;;  %3583 = vst [vmem:[#allocation33_spill] sm:$0xff] %v2133_v44  ;;  %v2207_v29 = vld [vmem:[#allocation2 + $0x41] sm:$0xff]  ;;  %v2220_v44 = vld [vmem:[#allocation2 + $0x51] sm:$0xff]  ;;  %v367_v18 = vmul.f32 %v2037_v15, %v2205_v14 }
  0x8a   : > { %3584 = vst [vmem:[#allocation34_spill] sm:$0xff] %v2137_v45  ;;  %3585 = vst [vmem:[#allocation35_spill] sm:$0xff] %v2139_v46  ;;  %v2209_v17 = vld [vmem:[#allocation2 + $0x42] sm:$0xff]  ;;  %v749_v45 = vmul.f32 %v2071_v25, %v731_v59  ;;  %v449_v46 = vadd.f32 %v441_v32, %v347_v16  ;;  %v2244_v16 = vrot.slane %v2099_v34, %v2018_v8 }
  0x8b   : > { %3586 = vst [vmem:[#allocation36_spill] sm:$0xff] %v2141_v47  ;;  %3587 = vst [vmem:[#allocation37_spill] sm:$0xff] %v2145_v48  ;;  %v2222_v47 = vld [vmem:[#allocation2 + $0x52] sm:$0xff]  ;;  %v2234_v59 = vld [vmem:[#allocation2 + $0x62] sm:$0xff] }
  0x8c   : > { %3588 = vst [vmem:[#allocation38_spill] sm:$0xff] %v2149_v49  ;;  %3589 = vst [vmem:[#allocation39_spill] sm:$0xff] %v2153_v50  ;;  %v655_v50 = vmul.f32 %v2189_v2, %v2176_v62  ;;  %v695_v32 = vmul.f32 %v2197_v52, %v2222_v47 }
  0x8d   : > { %3590 = vst [vmem:[#allocation40_spill] sm:$0xff] %v2157_v51  ;;  %3591 = vst [vmem:[#allocation41_spill] sm:$0xff] %v2166_v56 }
  0x8e   : > { %3592 = vst [vmem:[#allocation42_spill] sm:$0xff] %v2168_v57  ;;  %3593 = vst [vmem:[#allocation43_spill] sm:$0xff] %v2170_v58  ;;  %v2230_v58 = vld [vmem:[#allocation2 + $0x60] sm:$0xff] }
  0x8f   : > { %3594 = vst [vmem:[#allocation44_spill] sm:$0xff] %v2172_v60  ;;  %3595 = vst [vmem:[#allocation45_spill] sm:$0xff] %v2174_v61  ;;  %v2218_v61 = vld [vmem:[#allocation2 + $0x50] sm:$0xff] }
  0x90   : > { %3596 = vst [vmem:[#allocation46_spill] sm:$0xff] %v2176_v62  ;;  %3597 = vst [vmem:[#allocation47_spill] sm:$0xff] %v2181_v0  ;;  %v521_v0 = vmul.f32 %v2059_v22, %v2207_v29  ;;  %v387_v25 = vmul.f32 %v2145_v48, %v2218_v61  ;;  %v541_v62 = vmul.f32 %v2157_v51, %v2220_v44 }
  0x91   : > { %3598 = vst [vmem:[#allocation48_spill] sm:$0xff] %v2185_v1  ;;  %3599 = vst [vmem:[#allocation49_spill] sm:$0xff] %v2189_v2  ;;  %v675_v1 = vmul.f32 %v2067_v24, %v2209_v17  ;;  %v2232_v2 = vld [vmem:[#allocation2 + $0x61] sm:$0xff]  ;;  %v375_v24 = vadd.f32 %v367_v18, %v2074_v26  ;;  %v2260_v18 = vrot.slane %v2101_v35, %v2020_v9 }
  0x92   : > { %3600 = vst [vmem:[#allocation50_spill] sm:$0xff] %v2197_v52  ;;  %3601 = vst [vmem:[#allocation51_spill] sm:$0xff] %v2201_v27  ;;  %v529_v57 = vadd.f32 %v521_v0, %v449_v46  ;;  %v561_v22 = vmul.f32 %v2166_v56, %v2232_v2  ;;  %v395_v51 = vadd.f32 %v387_v25, %v2092_v31  ;;  %v885_v56 = vld [vmem:[#allocation2 + $0x4] sm:$0xff] }
  0x93   : > { %3602 = vst [vmem:[#allocation52_spill] sm:$0xff] %v2203_v30  ;;  %3603 = vst [vmem:[#allocation53_spill] sm:$0xff] %v2205_v14  ;;  %v715_v52 = vmul.f32 %v2201_v27, %v2234_v59  ;;  %v469_v26 = vadd.f32 %v461_v54, %v375_v24  ;;  %v809_v0 = vmul.f32 %v2105_v36, %v2027_v12 }
  0x94   : > { %3604 = vst [vmem:[#allocation54_spill] sm:$0xff] %v2207_v29  ;;  %3605 = vst [vmem:[#allocation55_spill] sm:$0xff] %v2209_v17  ;;  %v407_v17 = vmul.f32 %v2149_v49, %v2230_v58  ;;  %v2251_v29 = vld [vmem:[#allocation2 + $0x23] sm:$0xff]  ;;  %v623_v46 = vadd.f32 %v615_v28, %v529_v57  ;;  %v829_v27 = vmul.f32 %v2109_v37, %v2049_v19  ;;  %v2276_v28 = vld [vmem:[#allocation2 + $0x14] sm:$0xff] }
  0x95   : > { %3606 = vst [vmem:[#allocation56_spill] sm:$0xff] %v2218_v61  ;;  %3607 = vst [vmem:[#allocation57_spill] sm:$0xff] %v2220_v44  ;;  %v789_v25 = vmul.f32 %v2260_v18, %v2251_v29  ;;  %v2274_v24 = vrot.slane %v2121_v41, %v2016_v7  ;;  %v2285_v57 = vrot.slane %v2099_v34, %v2029_v13  ;;  %v2291_v37 = vld [vmem:[#allocation2 + $0x44] sm:$0xff] }
  0x96   : > { %3608 = vst [vmem:[#allocation58_spill] sm:$0xff] %v2222_v47  ;;  %3609 = vst [vmem:[#allocation59_spill] sm:$0xff] %v2230_v58  ;;  %v769_v47 = vmul.f32 %v2244_v16, %v2203_v30  ;;  %v415_v44 = vadd.f32 %v407_v17, %v327_v53  ;;  %v703_v17 = vadd.f32 %v695_v32, %v623_v46  ;;  %v2289_v32 = vld [vmem:[#allocation2 + $0x24] sm:$0xff] }
  0x97   : > { %3610 = vst [vmem:[#allocation60_spill] sm:$0xff] %v2232_v2  ;;  %3611 = vst [vmem:[#allocation61_spill] sm:$0xff] %v2234_v59  ;;  %v489_v2 = vadd.f32 %v481_v55, %v395_v51  ;;  %v549_v59 = vadd.f32 %v541_v62, %v469_v26  ;;  %v2278_v51 = vld [vmem:[#allocation2 + $0x34] sm:$0xff]  ;;  %v903_v55 = vmul.f32 %v2113_v38, %v885_v56 }
  0x98   : > { %3612 = vst [vmem:[#allocation62_spill] sm:$0xff] %v2244_v16  ;;  %3613 = vst [vmem:[#allocation63_spill] sm:$0xff] %v2260_v18  ;;  %v2270_v16 = vrot.slane %v2119_v40, %v2014_v6  ;;  %v509_v30 = vadd.f32 %v501_v33, %v415_v44  ;;  %v797_v62 = vadd.f32 %v789_v25, %v703_v17  ;;  %v2303_v25 = vld [vmem:[#allocation2 + $0x64] sm:$0xff] }
  0x99   : > { %3615 = vst [vmem:[#allocation65_spill] sm:$0xff] %v2274_v24  ;;  %3616 = vst [vmem:[#allocation66_spill] sm:$0xff] %v2278_v51  ;;  %v569_v53 = vadd.f32 %v561_v22, %v489_v2  ;;  %v643_v44 = vadd.f32 %v635_v23, %v549_v59  ;;  %v869_v33 = vmul.f32 %v2274_v24, %v2055_v21  ;;  %v2301_v59 = vld [vmem:[#allocation2 + $0x54] sm:$0xff] }
  0x9a   : > { %3614 = vst [vmem:[#allocation64_spill] sm:$0xff] %v2270_v16  ;;  %v849_v54 = vmul.f32 %v2270_v16, %v2052_v20  ;;  %3617 = vst [vmem:[#allocation67_spill] sm:$0xff] %v2285_v57  ;;  %v603_v26 = vadd.f32 %v595_v63, %v509_v30  ;;  %v923_v22 = vmul.f32 %v2285_v57, %v2276_v28 }
  0x9b   : > { %v663_v46 = vadd.f32 %v655_v50, %v569_v53  ;;  %v2297_v56 = vrot.slane %v2101_v35, %v2018_v8  ;;  %v963_v30 = vmul.f32 %v2117_v39, %v2278_v51  ;;  %v723_v63 = vadd.f32 %v715_v52, %v643_v44  ;;  %3619 = vst [vmem:[#allocation69_spill] sm:$0xff] %v2301_v59  ;;  %v2327_v51 = vld [vmem:[#allocation2 + $0x25] sm:$0xff] }
  0x9c   : > { %v683_v23 = vadd.f32 %v675_v1, %v603_v26  ;;  %v877_v2 = vadd.f32 %v869_v33, %v797_v62  ;;  %3620 = vst [vmem:[#allocation70_spill] sm:$0xff] %v2303_v25  ;;  %v2307_v50 = vrot.slane %v2119_v40, %v2008_v3  ;;  %v2313_v57 = vrot.slane %v2119_v40, %v2012_v5  ;;  %v1039_v33 = vld [vmem:[#allocation2 + $0x5] sm:$0xff] }
  0x9d   : > { %3618 = vst [vmem:[#allocation68_spill] sm:$0xff] %v2297_v56  ;;  %v757_v17 = vadd.f32 %v749_v45, %v663_v46  ;;  %v943_v53 = vmul.f32 %v2297_v56, %v2289_v32  ;;  %v2317_v1 = vrot.slane %v2121_v41, %v2014_v6  ;;  %v817_v26 = vadd.f32 %v809_v0, %v723_v63  ;;  %v2325_v56 = vld [vmem:[#allocation2 + $0x15] sm:$0xff]  ;;  %v2335_v63 = vld [vmem:[#allocation2 + $0x45] sm:$0xff] }
  0x9e   : > { %3621 = vst [vmem:[#allocation71_spill] sm:$0xff] %v2307_v50  ;;  %3622 = vst [vmem:[#allocation72_spill] sm:$0xff] %v2313_v57  ;;  %v777_v52 = vadd.f32 %v769_v47, %v683_v23  ;;  %v971_v44 = vadd.f32 %v963_v30, %v877_v2  ;;  %v983_v62 = vmul.f32 %v2307_v50, %v2291_v37  ;;  %v2333_v23 = vld [vmem:[#allocation2 + $0x35] sm:$0xff] }
  0x9f   : > { %3623 = vst [vmem:[#allocation73_spill] sm:$0xff] %v2317_v1  ;;  %v837_v39 = vadd.f32 %v829_v27, %v757_v17  ;;  %v1003_v45 = vmul.f32 %v2313_v57, %v2301_v59  ;;  %v1023_v46 = vmul.f32 %v2317_v1, %v2303_v25  ;;  %v2331_v47 = vrot.slane %v2022_v10, %v2016_v7 }
  0xa0   : > { %v857_v0 = vadd.f32 %v849_v54, %v777_v52  ;;  %v911_v30 = vadd.f32 %v903_v55, %v817_v26  ;;  %3625 = vst [vmem:[#allocation75_spill] sm:$0xff] %v2335_v63  ;;  %v2339_v27 = vrot.slane %v2099_v34, %v2010_v4  ;;  %v2343_v2 = vrot.slane %v2101_v35, %v2029_v13 }
  0xa1   : > { %3624 = vst [vmem:[#allocation74_spill] sm:$0xff] %v2331_v47  ;;  %v931_v17 = vadd.f32 %v923_v22, %v837_v39  ;;  %v1057_v1 = vmul.f32 %v2331_v47, %v1039_v33  ;;  %v2348_v57 = vrot.slane %v2024_v11, %v2018_v8  ;;  %v2352_v54 = vrot.slane %v2119_v40, %v2020_v9  ;;  %v2358_v39 = vld [vmem:[#allocation2 + $0x55] sm:$0xff]  ;;  %v2360_v22 = vld [vmem:[#allocation2 + $0x65] sm:$0xff] }
  0xa2   : > { %3626 = vst [vmem:[#allocation76_spill] sm:$0xff] %v2339_v27  ;;  %3627 = vst [vmem:[#allocation77_spill] sm:$0xff] %v2343_v2  ;;  %v951_v55 = vadd.f32 %v943_v53, %v857_v0  ;;  %v991_v52 = vadd.f32 %v983_v62, %v911_v30  ;;  %v1077_v26 = vmul.f32 %v2339_v27, %v2325_v56  ;;  %v1193_v30 = vld [vmem:[#allocation2 + $0x6] sm:$0xff] }
  0xa3   : > { %3628 = vst [vmem:[#allocation78_spill] sm:$0xff] %v2348_v57  ;;  %3629 = vst [vmem:[#allocation79_spill] sm:$0xff] %v2352_v54  ;;  %v1097_v25 = vmul.f32 %v2343_v2, %v2327_v51  ;;  %v1011_v50 = vadd.f32 %v1003_v45, %v931_v17  ;;  %v1065_v33 = vadd.f32 %v1057_v1, %v971_v44  ;;  %v2374_v17 = vld [vmem:[#allocation2 + $0x16] sm:$0xff]  ;;  %v2376_v2 = vld [vmem:[#allocation2 + $0x26] sm:$0xff] }
  0xa4   : > { %3630 = vst [vmem:[#allocation80_spill] sm:$0xff] %v2358_v39  ;;  %3631 = vst [vmem:[#allocation81_spill] sm:$0xff] %v2360_v22  ;;  %v1117_v47 = vmul.f32 %v2348_v57, %v2333_v23  ;;  %v1137_v59 = vmul.f32 %v2352_v54, %v2335_v63  ;;  %v1031_v53 = vadd.f32 %v1023_v46, %v951_v55 }
  0xa5   : > { %v1085_v62 = vadd.f32 %v1077_v26, %v991_v52  ;;  %v2368_v0 = vrot.slane %v2121_v41, %v2008_v3  ;;  %v2372_v45 = vrot.slane %v2121_v41, %v2012_v5  ;;  %v1105_v1 = vadd.f32 %v1097_v25, %v1011_v50  ;;  %3634 = vst [vmem:[#allocation84_spill] sm:$0xff] %v2376_v2  ;;  %v2390_v52 = vld [vmem:[#allocation2 + $0x36] sm:$0xff] }
  0xa6   : > { %v1145_v44 = vadd.f32 %v1137_v59, %v1065_v33  ;;  %v2380_v54 = vrot.slane %v2022_v10, %v2014_v6  ;;  %v2384_v46 = vrot.slane %v2099_v34, %v2016_v7  ;;  %v1125_v3 = vadd.f32 %v1117_v47, %v1031_v53  ;;  %3637 = vst [vmem:[#allocation87_spill] sm:$0xff] %v2390_v52  ;;  %v2392_v59 = vld [vmem:[#allocation2 + $0x46] sm:$0xff]  ;;  %v2398_v6 = vld [vmem:[#allocation6 + $0x30] ss:$0 sm:$0xff]  ;;  %v2400_v10 = vld [vmem:[#allocation2 + $0x56] sm:$0xff] }
  0xa7   : > { %3632 = vst [vmem:[#allocation82_spill] sm:$0xff] %v2368_v0  ;;  %3633 = vst [vmem:[#allocation83_spill] sm:$0xff] %v2372_v45  ;;  %v1157_v5 = vmul.f32 %v2368_v0, %v2358_v39  ;;  %v1177_v55 = vmul.f32 %v2372_v45, %v2360_v22  ;;  %v2396_v25 = vrot.slane %v2101_v35, %v2010_v4  ;;  %v2402_v7 = vld [vmem:[#allocation2 + $0x66] sm:$0xff] }
  0xa8   : > { %3635 = vst [vmem:[#allocation85_spill] sm:$0xff] %v2380_v54  ;;  %3636 = vst [vmem:[#allocation86_spill] sm:$0xff] %v2384_v46  ;;  %v1211_v34 = vmul.f32 %v2380_v54, %v1193_v30  ;;  %v1231_v50 = vmul.f32 %v2384_v46, %v2374_v17  ;;  %v2409_v47 = vrot.slane %v2024_v11, %v2029_v13  ;;  %v2421_v30 = vld [vmem:[#allocation2 + $0x70] sm:$0xff] }
  0xa9   : > { %3638 = vst [vmem:[#allocation88_spill] sm:$0xff] %v2392_v59  ;;  %3639 = vst [vmem:[#allocation89_spill] sm:$0xff] %v2396_v25  ;;  %v2413_v26 = vrot.slane %v2119_v40, %v2018_v8  ;;  %v1165_v4 = vadd.f32 %v1157_v5, %v1085_v62  ;;  %v1185_v35 = vadd.f32 %v1177_v55, %v1105_v1 }
  0xaa   : > { %3640 = vst [vmem:[#allocation90_spill] sm:$0xff] %v2398_v6  ;;  %3641 = vst [vmem:[#allocation91_spill] sm:$0xff] %v2400_v10  ;;  %v1251_v33 = vmul.f32 %v2396_v25, %v2376_v2  ;;  %v2419_v53 = vrot.slane %v2121_v41, %v2020_v9  ;;  %v1219_v46 = vadd.f32 %v1211_v34, %v1125_v3 }
  0xab   : > { %3642 = vst [vmem:[#allocation92_spill] sm:$0xff] %v2402_v7  ;;  %3643 = vst [vmem:[#allocation93_spill] sm:$0xff] %v2409_v47  ;;  %v1239_v54 = vadd.f32 %v1231_v50, %v1145_v44  ;;  %v1271_v11 = vmul.f32 %v2409_v47, %v2390_v52  ;;  %v1291_v8 = vmul.f32 %v2413_v26, %v2392_v59 }
  0xac   : > { %3644 = vst [vmem:[#allocation94_spill] sm:$0xff] %v2413_v26  ;;  %3645 = vst [vmem:[#allocation95_spill] sm:$0xff] %v2419_v53  ;;  %v1259_v13 = vadd.f32 %v1251_v33, %v1165_v4  ;;  %v1311_v40 = vmul.f32 %v2419_v53, %v2400_v10  ;;  %v1331_v62 = vmul.f32 %v2398_v6, %v2402_v7  ;;  %v2441_v4 = vld [vmem:[#allocation2 + $0x71] sm:$0xff]  ;;  %v3648_v33 = vld [vmem:[#allocation22_spill] sm:$0xff] }
  0xad   : > { %3646 = vst [vmem:[#allocation96_spill] sm:$0xff] %v2421_v30  ;;  %v328_v9 = vmul.f32 %v2125_v42, %v2172_v60  ;;  %v1279_v41 = vadd.f32 %v1271_v11, %v1185_v35  ;;  %v1299_v1 = vadd.f32 %v1291_v8, %v1219_v46  ;;  %v348_v44 = vmul.f32 %v2129_v43, %v2205_v14  ;;  %v3649_v35 = vld [vmem:[#allocation35_spill] sm:$0xff]  ;;  %v3650_v46 = vld [vmem:[#allocation16_spill] sm:$0xff]  ;;  %v3652_v43 = vld [vmem:[#allocation33_spill] sm:$0xff] }
  0xae   : > { %v368_v3 = vmul.f32 %v2037_v15, %v2218_v61  ;;  %v1319_v5 = vadd.f32 %v1311_v40, %v1239_v54  ;;  %v1339_v55 = vadd.f32 %v1331_v62, %v1259_v13  ;;  %v388_v34 = vmul.f32 %v2145_v48, %v2230_v58  ;;  %3647 = vst [vmem:[#allocation97_spill] sm:$0xff] %v2441_v4  ;;  %v3651_v8 = vld [vmem:[#allocation36_spill] sm:$0xff]  ;;  %v3653_v60 = vld [vmem:[#allocation45_spill] sm:$0xff]  ;;  %v3654_v15 = vld [vmem:[#allocation34_spill] sm:$0xff] }
  0xaf   : > { %v408_v50 = vmul.f32 %v2149_v49, %v2421_v30  ;;  %v442_v11 = vmul.f32 %v3650_v46, %v3649_v35  ;;  %v462_v14 = vmul.f32 %v3652_v43, %v3651_v8  ;;  %v482_v54 = vmul.f32 %v3654_v15, %v3653_v60  ;;  %v2451_v58 = vld [vmem:[#allocation8] ss:$0 sm:$0xff]  ;;  %v3655_v61 = vld [vmem:[#allocation54_spill] sm:$0xff]  ;;  %v3657_v6 = vld [vmem:[#allocation57_spill] sm:$0xff] }
  0xb0   : > { %v376_v42 = vadd.f32 %v368_v3, %v3648_v33  ;;  %v1347_v13 = vadd.f32 %v1339_v55, %v1279_v41  ;;  %v1355_v40 = vadd.f32 %v1319_v5, %v1299_v1  ;;  %v396_v62 = vadd.f32 %v388_v34, %v2092_v31  ;;  %v3656_v3 = vld [vmem:[#allocation39_spill] sm:$0xff]  ;;  %v3658_v35 = vld [vmem:[#allocation18_spill] sm:$0xff]  ;;  %v3659_v8 = vld [vmem:[#allocation60_spill] sm:$0xff] }
  0xb1   : > { %v416_v48 = vadd.f32 %v408_v50, %v328_v9  ;;  %v450_v49 = vadd.f32 %v442_v11, %v348_v44  ;;  %v502_v33 = vmul.f32 %v3656_v3, %v3655_v61  ;;  %v522_v46 = vmul.f32 %v3658_v35, %v3657_v6  ;;  %v3660_v7 = vld [vmem:[#allocation40_spill] sm:$0xff]  ;;  %v3661_v1 = vld [vmem:[#allocation41_spill] sm:$0xff]  ;;  %v3665_v34 = vld [vmem:[#allocation43_spill] sm:$0xff] }
  0xb2   : > { %v470_v30 = vadd.f32 %v462_v14, %v376_v42  ;;  %v1363_v53 = vadd.f32 %v1355_v40, %v1347_v13  ;;  %v490_v43 = vadd.f32 %v482_v54, %v396_v62  ;;  %v542_v41 = vmul.f32 %v3660_v7, %v3659_v8  ;;  %v2461_v9 = vld [vmem:[#allocation2 + $0x72] sm:$0xff]  ;;  %v3663_v14 = vld [vmem:[#allocation42_spill] sm:$0xff]  ;;  %v3664_v42 = vld [vmem:[#allocation19_spill] sm:$0xff] }
  0xb3   : > { %v562_v31 = vmul.f32 %v3661_v1, %v2441_v4  ;;  %3662 = vst [vmem:[#allocation35_spill] sm:$0xff] %v2461_v9  ;;  %v510_v5 = vadd.f32 %v502_v33, %v416_v48  ;;  %v530_v44 = vadd.f32 %v522_v46, %v450_v49  ;;  %v596_v55 = vmul.f32 %v3664_v42, %v3663_v14  ;;  %v3666_v50 = vld [vmem:[#allocation47_spill] sm:$0xff]  ;;  %v3667_v62 = vld [vmem:[#allocation46_spill] sm:$0xff]  ;;  %v3668_v35 = vld [vmem:[#allocation48_spill] sm:$0xff] }
  0xb4   : > { %v616_v11 = vmul.f32 %v3666_v50, %v3665_v34  ;;  %v1377_v13 = vadd.f32 %v2451_v58, %v1363_v53  ;;  %v550_v54 = vadd.f32 %v542_v41, %v470_v30  ;;  %v636_v7 = vmul.f32 %v3668_v35, %v3667_v62  ;;  %v3669_v1 = vld [vmem:[#allocation55_spill] sm:$0xff]  ;;  %v3670_v4 = vld [vmem:[#allocation49_spill] sm:$0xff]  ;;  %v3671_v48 = vld [vmem:[#allocation58_spill] sm:$0xff] }
  0xb5   : > { %v570_v40 = vadd.f32 %v562_v31, %v490_v43  ;;  %v604_v8 = vadd.f32 %v596_v55, %v510_v5  ;;  %v656_v6 = vmul.f32 %v3670_v4, %v3669_v1  ;;  %v3672_v49 = vld [vmem:[#allocation20_spill] sm:$0xff]  ;;  %v3673_v53 = vld [vmem:[#allocation61_spill] sm:$0xff]  ;;  %v3674_v30 = vld [vmem:[#allocation50_spill] sm:$0xff] }
  0xb6   : > { %v624_v3 = vadd.f32 %v616_v11, %v530_v44  ;;  %v676_v33 = vmul.f32 %v3672_v49, %v3671_v48  ;;  %1385 = vst [vmem:[%s2476_s18] sm:$0xff] %v1377_v13  ;;  %v644_v46 = vadd.f32 %v636_v7, %v550_v54  ;;  %v696_v43 = vmul.f32 %v3674_v30, %v3673_v53  ;;  %v3675_v41 = vld [vmem:[#allocation51_spill] sm:$0xff]  ;;  %v3676_v5 = vld [vmem:[#allocation52_spill] sm:$0xff]  ;;  %v3677_v44 = vld [vmem:[#allocation21_spill] sm:$0xff] }
  0xb7   : > { %v716_v31 = vmul.f32 %v3675_v41, %v2461_v9  ;;  %v750_v14 = vmul.f32 %v3677_v44, %v3676_v5  ;;  %v664_v55 = vadd.f32 %v656_v6, %v570_v40  ;;  %v3678_v4 = vld [vmem:[#allocation62_spill] sm:$0xff]  ;;  %v790_v48 = vmul.f32 %v2260_v18, %v2027_v12  ;;  %v3679_v54 = vld [vmem:[#allocation28_spill] sm:$0xff] }
  0xb8   : > { %v684_v11 = vadd.f32 %v676_v33, %v604_v8  ;;  %v770_v49 = vmul.f32 %v3678_v4, %v2251_v29  ;;  %v704_v35 = vadd.f32 %v696_v43, %v624_v3  ;;  %v810_v7 = vmul.f32 %v2105_v36, %v2049_v19  ;;  %v3680_v8 = vld [vmem:[#allocation24_spill] sm:$0xff] }
  0xb9   : > { %v724_v13 = vadd.f32 %v716_v31, %v644_v46  ;;  %v830_v30 = vmul.f32 %v3679_v54, %v2052_v20  ;;  %v758_v41 = vadd.f32 %v750_v14, %v664_v55  ;;  %v850_v6 = vmul.f32 %v2270_v16, %v2055_v21  ;;  %v2497_v4 = vld [vmem:[#allocation2 + $0x74] sm:$0xff]  ;;  %v3682_v46 = vld [vmem:[#allocation67_spill] sm:$0xff]  ;;  %v3683_v14 = vld [vmem:[#allocation66_spill] sm:$0xff] }
  0xba   : > { %v778_v9 = vadd.f32 %v770_v49, %v684_v11  ;;  %v870_v40 = vmul.f32 %v2274_v24, %v3680_v8  ;;  %v798_v33 = vadd.f32 %v790_v48, %v704_v35  ;;  %3681 = vst [vmem:[#allocation42_spill] sm:$0xff] %v2497_v4  ;;  %v904_v3 = vmul.f32 %v2113_v38, %v2276_v28  ;;  %v3684_v49 = vld [vmem:[#allocation68_spill] sm:$0xff]  ;;  %v3685_v11 = vld [vmem:[#allocation30_spill] sm:$0xff]  ;;  %v3686_v35 = vld [vmem:[#allocation69_spill] sm:$0xff] }
  0xbb   : > { %v818_v5 = vadd.f32 %v810_v7, %v724_v13  ;;  %v924_v43 = vmul.f32 %v3682_v46, %v2289_v32  ;;  %v838_v31 = vadd.f32 %v830_v30, %v758_v41  ;;  %v944_v55 = vmul.f32 %v3684_v49, %v3683_v14  ;;  %v3687_v48 = vld [vmem:[#allocation71_spill] sm:$0xff]  ;;  %v3688_v7 = vld [vmem:[#allocation70_spill] sm:$0xff]  ;;  %v3689_v8 = vld [vmem:[#allocation72_spill] sm:$0xff] }
  0xbc   : > { %v858_v54 = vadd.f32 %v850_v6, %v778_v9  ;;  %v964_v16 = vmul.f32 %v3685_v11, %v2291_v37  ;;  %v878_v21 = vadd.f32 %v870_v40, %v798_v33  ;;  %v984_v13 = vmul.f32 %v3687_v48, %v3686_v35  ;;  %v3690_v46 = vld [vmem:[#allocation73_spill] sm:$0xff]  ;;  %v3692_v41 = vld [vmem:[#allocation74_spill] sm:$0xff] }
  0xbd   : > { %v912_v24 = vadd.f32 %v904_v3, %v818_v5  ;;  %v1004_v36 = vmul.f32 %v3689_v8, %v3688_v7  ;;  %v932_v28 = vadd.f32 %v924_v43, %v838_v31  ;;  %v1024_v30 = vmul.f32 %v3690_v46, %v2497_v4  ;;  %v2513_v9 = vld [vmem:[#allocation2 + $0x75] sm:$0xff]  ;;  %v3694_v43 = vld [vmem:[#allocation79_spill] sm:$0xff] }
  0xbe   : > { %v952_v38 = vadd.f32 %v944_v55, %v858_v54  ;;  %3691 = vst [vmem:[#allocation43_spill] sm:$0xff] %v2513_v9  ;;  %v1058_v6 = vmul.f32 %v3692_v41, %v2325_v56  ;;  %v972_v49 = vadd.f32 %v964_v16, %v878_v21  ;;  %v1078_v40 = vmul.f32 %v2339_v27, %v2327_v51  ;;  %v3693_v33 = vld [vmem:[#allocation77_spill] sm:$0xff] }
  0xbf   : > { %v992_v11 = vadd.f32 %v984_v13, %v912_v24  ;;  %v1098_v5 = vmul.f32 %v3693_v33, %v2333_v23  ;;  %v1012_v3 = vadd.f32 %v1004_v36, %v932_v28  ;;  %v1118_v54 = vmul.f32 %v2348_v57, %v2335_v63  ;;  %v2529_v13 = vld [vmem:[#allocation2 + $0x76] sm:$0xff]  ;;  %v3697_v28 = vld [vmem:[#allocation86_spill] sm:$0xff] }
  0xc0   : > { %v1032_v8 = vadd.f32 %v1024_v30, %v952_v38  ;;  %v1138_v31 = vmul.f32 %v3694_v43, %v2358_v39  ;;  %v1066_v55 = vadd.f32 %v1058_v6, %v972_v49  ;;  %v1158_v21 = vmul.f32 %v2368_v0, %v2360_v22  ;;  %3695 = vst [vmem:[#allocation46_spill] sm:$0xff] %v2529_v13  ;;  %v3696_v36 = vld [vmem:[#allocation85_spill] sm:$0xff] }
  0xc1   : > { %v1086_v46 = vadd.f32 %v1078_v40, %v992_v11  ;;  %v1178_v16 = vmul.f32 %v2372_v45, %v2513_v9  ;;  %v1106_v24 = vadd.f32 %v1098_v5, %v1012_v3  ;;  %v1212_v38 = vmul.f32 %v3696_v36, %v2374_v17  ;;  %v3698_v5 = vld [vmem:[#allocation92_spill] sm:$0xff]  ;;  %v3699_v3 = vld [vmem:[#allocation95_spill] sm:$0xff]  ;;  %v2543_v17 = vld [vmem:[#allocation2 + $0x80] sm:$0xff] }
  0xc2   : > { %v1126_v56 = vadd.f32 %v1118_v54, %v1032_v8  ;;  %v1232_v30 = vmul.f32 %v3697_v28, %v2376_v2  ;;  %v1146_v57 = vadd.f32 %v1138_v31, %v1066_v55  ;;  %v1252_v49 = vmul.f32 %v2396_v25, %v2390_v52  ;;  %3700 = vst [vmem:[#allocation55_spill] sm:$0xff] %v2543_v17  ;;  %v3702_v55 = vld [vmem:[#allocation44_spill] sm:$0xff]  ;;  %v3709_v2 = vld [vmem:[#allocation14_spill] sm:$0xff] }
  0xc3   : > { %v1166_v43 = vadd.f32 %v1158_v21, %v1086_v46  ;;  %v1272_v11 = vmul.f32 %v2409_v47, %v2392_v59  ;;  %v1186_v6 = vadd.f32 %v1178_v16, %v1106_v24  ;;  %v1292_v8 = vmul.f32 %v2413_v26, %v2400_v10  ;;  %v3701_v46 = vld [vmem:[#allocation90_spill] sm:$0xff]  ;;  %v3703_v21 = vld [vmem:[#allocation15_spill] sm:$0xff]  ;;  %v3704_v16 = vld [vmem:[#allocation53_spill] sm:$0xff] }
  0xc4   : > { %v1220_v40 = vadd.f32 %v1212_v38, %v1126_v56  ;;  %v1312_v54 = vmul.f32 %v3699_v3, %v3698_v5  ;;  %v1240_v36 = vadd.f32 %v1232_v30, %v1146_v57  ;;  %v1332_v31 = vmul.f32 %v3701_v46, %v2529_v13  ;;  %v3705_v24 = vld [vmem:[#allocation31_spill] sm:$0xff]  ;;  %v3706_v38 = vld [vmem:[#allocation56_spill] sm:$0xff]  ;;  %v3711_v30 = vld [vmem:[#allocation37_spill] sm:$0xff] }
  0xc5   : > { %v1260_v28 = vadd.f32 %v1252_v49, %v1166_v43  ;;  %v309_v25 = vmul.f32 %v3703_v21, %v3702_v55  ;;  %v1280_v52 = vadd.f32 %v1272_v11, %v1186_v6  ;;  %v329_v56 = vmul.f32 %v3705_v24, %v3704_v16  ;;  %v3707_v26 = vld [vmem:[#allocation32_spill] sm:$0xff]  ;;  %v3708_v5 = vld [vmem:[#allocation59_spill] sm:$0xff]  ;;  %v3712_v46 = vld [vmem:[#allocation38_spill] sm:$0xff] }
  0xc6   : > { %v1300_v47 = vadd.f32 %v1292_v8, %v1220_v40  ;;  %v349_v10 = vmul.f32 %v3707_v26, %v3706_v38  ;;  %v1320_v59 = vadd.f32 %v1312_v54, %v1240_v36  ;;  %v369_v57 = vmul.f32 %v3709_v2, %v3708_v5  ;;  %v3710_v43 = vld [vmem:[#allocation96_spill] sm:$0xff]  ;;  %v3715_v40 = vld [vmem:[#allocation33_spill] sm:$0xff] }
  0xc7   : > { %v1340_v3 = vadd.f32 %v1332_v31, %v1260_v28  ;;  %v389_v49 = vmul.f32 %v3711_v30, %v3710_v43  ;;  %v409_v13 = vmul.f32 %v3712_v46, %v2543_v17  ;;  %v3713_v21 = vld [vmem:[#allocation36_spill] sm:$0xff]  ;;  %v463_v8 = vmul.f32 %v3715_v40, %v3653_v60  ;;  %v2565_v36 = vld [vmem:[#allocation2 + $0x81] sm:$0xff]  ;;  %v3718_v46 = vld [vmem:[#allocation39_spill] sm:$0xff] }
  0xc8   : > { %v3714_v11 = vld [vmem:[#allocation16_spill] sm:$0xff]  ;;  %v483_v26 = vmul.f32 %v3654_v15, %v3655_v61  ;;  %v1356_v54 = vadd.f32 %v1320_v59, %v1300_v47  ;;  %v3716_v31 = vld [vmem:[#allocation22_spill] sm:$0xff]  ;;  %v3717_v24 = vld [vmem:[#allocation57_spill] sm:$0xff] }
  0xc9   : > { %v443_v6 = vmul.f32 %v3714_v11, %v3713_v21  ;;  %v1348_v28 = vadd.f32 %v1340_v3, %v1280_v52  ;;  %v377_v2 = vadd.f32 %v369_v57, %v3716_v31  ;;  %v397_v5 = vadd.f32 %v389_v49, %v309_v25  ;;  %v3719_v38 = vld [vmem:[#allocation60_spill] sm:$0xff]  ;;  %v3720_v21 = vld [vmem:[#allocation18_spill] sm:$0xff]  ;;  %v3721_v15 = vld [vmem:[#allocation97_spill] sm:$0xff] }
  0xca   : > { %v417_v30 = vadd.f32 %v409_v13, %v329_v56  ;;  %v503_v17 = vmul.f32 %v3718_v46, %v3717_v24  ;;  %v523_v11 = vmul.f32 %v3720_v21, %v3719_v38  ;;  %v3722_v61 = vld [vmem:[#allocation40_spill] sm:$0xff]  ;;  %v2574_v52 = vld [vmem:[#allocation2 + $0x82] sm:$0xff]  ;;  %v3724_v25 = vld [vmem:[#allocation41_spill] sm:$0xff]  ;;  %v597_v13 = vmul.f32 %v3664_v42, %v3665_v34 }
  0xcb   : > { %v451_v43 = vadd.f32 %v443_v6, %v349_v10  ;;  %v1364_v16 = vadd.f32 %v1356_v54, %v1348_v28  ;;  %v471_v40 = vadd.f32 %v463_v8, %v377_v2  ;;  %v491_v60 = vadd.f32 %v483_v26, %v397_v5  ;;  %3723 = vst [vmem:[#allocation61_spill] sm:$0xff] %v2574_v52  ;;  %v3725_v26 = vld [vmem:[#allocation48_spill] sm:$0xff]  ;;  %v3726_v6 = vld [vmem:[#allocation58_spill] sm:$0xff]  ;;  %v3729_v28 = vld [vmem:[#allocation35_spill] sm:$0xff] }
  0xcc   : > { %v543_v55 = vmul.f32 %v3722_v61, %v3721_v15  ;;  %v511_v59 = vadd.f32 %v503_v17, %v417_v30  ;;  %v563_v10 = vmul.f32 %v3724_v25, %v2565_v36  ;;  %v617_v2 = vmul.f32 %v3666_v50, %v3667_v62  ;;  %v3727_v17 = vld [vmem:[#allocation49_spill] sm:$0xff]  ;;  %v3728_v30 = vld [vmem:[#allocation20_spill] sm:$0xff] }
  0xcd   : > { %v531_v47 = vadd.f32 %v523_v11, %v451_v43  ;;  %v1378_v3 = vadd.f32 %v2451_v58, %v1364_v16  ;;  %v637_v5 = vmul.f32 %v3725_v26, %v3669_v1  ;;  %v657_v43 = vmul.f32 %v3727_v17, %v3726_v6  ;;  %v3730_v16 = vld [vmem:[#allocation50_spill] sm:$0xff] }
  0xce   : > { %v551_v56 = vadd.f32 %v543_v55, %v471_v40  ;;  %v571_v57 = vadd.f32 %v563_v10, %v491_v60  ;;  %v605_v49 = vadd.f32 %v597_v13, %v511_v59  ;;  %v677_v11 = vmul.f32 %v3728_v30, %v3673_v53  ;;  %v3731_v40 = vld [vmem:[#allocation51_spill] sm:$0xff]  ;;  %v3732_v59 = vld [vmem:[#allocation62_spill] sm:$0xff] }
  0xcf   : > { %1386 = vst [vmem:[%s2476_s18 + $0x8] sm:$0xff] %v1378_v3  ;;  %v625_v8 = vadd.f32 %v617_v2, %v531_v47  ;;  %v697_v55 = vmul.f32 %v3730_v16, %v3729_v28  ;;  %v717_v54 = vmul.f32 %v3731_v40, %v2574_v52  ;;  %v751_v60 = vmul.f32 %v3677_v44, %v2251_v29  ;;  %v3733_v3 = vld [vmem:[#allocation27_spill] sm:$0xff]  ;;  %v3734_v16 = vld [vmem:[#allocation17_spill] sm:$0xff]  ;;  %v3735_v40 = vld [vmem:[#allocation28_spill] sm:$0xff] }
  0xd0   : > { %v645_v34 = vadd.f32 %v637_v5, %v551_v56  ;;  %v665_v31 = vadd.f32 %v657_v43, %v571_v57  ;;  %v685_v50 = vadd.f32 %v677_v11, %v605_v49  ;;  %v771_v10 = vmul.f32 %v3732_v59, %v2027_v12  ;;  %v3736_v49 = vld [vmem:[#allocation24_spill] sm:$0xff]  ;;  %v3738_v52 = vld [vmem:[#allocation25_spill] sm:$0xff] }
  0xd1   : > { %v705_v13 = vadd.f32 %v697_v55, %v625_v8  ;;  %v791_v47 = vmul.f32 %v2260_v18, %v2049_v19  ;;  %v811_v56 = vmul.f32 %v3733_v3, %v2052_v20  ;;  %v831_v57 = vmul.f32 %v3735_v40, %v3734_v16  ;;  %v3737_v43 = vld [vmem:[#allocation64_spill] sm:$0xff]  ;;  %v3739_v59 = vld [vmem:[#allocation65_spill] sm:$0xff] }
  0xd2   : > { %v725_v17 = vadd.f32 %v717_v54, %v645_v34  ;;  %v759_v2 = vadd.f32 %v751_v60, %v665_v31  ;;  %v779_v5 = vadd.f32 %v771_v10, %v685_v50  ;;  %v851_v11 = vmul.f32 %v3737_v43, %v3736_v49  ;;  %v2608_v34 = vld [vmem:[#allocation2 + $0x84] sm:$0xff]  ;;  %v3741_v55 = vld [vmem:[#allocation29_spill] sm:$0xff]  ;;  %v3743_v60 = vld [vmem:[#allocation68_spill] sm:$0xff] }
  0xd3   : > { %v799_v29 = vadd.f32 %v791_v47, %v705_v13  ;;  %v871_v8 = vmul.f32 %v3739_v59, %v3738_v52  ;;  %3740 = vst [vmem:[#allocation52_spill] sm:$0xff] %v2608_v34  ;;  %v905_v54 = vmul.f32 %v3741_v55, %v2289_v32  ;;  %v3742_v50 = vld [vmem:[#allocation67_spill] sm:$0xff]  ;;  %v945_v10 = vmul.f32 %v3743_v60, %v2291_v37  ;;  %v3745_v32 = vld [vmem:[#allocation72_spill] sm:$0xff] }
  0xd4   : > { %v819_v44 = vadd.f32 %v811_v56, %v725_v17  ;;  %v839_v18 = vadd.f32 %v831_v57, %v759_v2  ;;  %v859_v3 = vadd.f32 %v851_v11, %v779_v5  ;;  %v925_v31 = vmul.f32 %v3742_v50, %v3683_v14  ;;  %v3744_v17 = vld [vmem:[#allocation30_spill] sm:$0xff]  ;;  %v3746_v5 = vld [vmem:[#allocation73_spill] sm:$0xff] }
  0xd5   : > { %v879_v40 = vadd.f32 %v871_v8, %v799_v29  ;;  %v965_v13 = vmul.f32 %v3744_v17, %v3686_v35  ;;  %v985_v47 = vmul.f32 %v3687_v48, %v3688_v7  ;;  %v1005_v2 = vmul.f32 %v3745_v32, %v2497_v4  ;;  %v2624_v55 = vld [vmem:[#allocation2 + $0x85] sm:$0xff] }
  0xd6   : > { %v913_v43 = vadd.f32 %v905_v54, %v819_v44  ;;  %v933_v56 = vadd.f32 %v925_v31, %v839_v18  ;;  %v953_v59 = vadd.f32 %v945_v10, %v859_v3  ;;  %v1025_v57 = vmul.f32 %v3746_v5, %v2608_v34  ;;  %3747 = vst [vmem:[#allocation66_spill] sm:$0xff] %v2624_v55  ;;  %v3748_v3 = vld [vmem:[#allocation78_spill] sm:$0xff] }
  0xd7   : > { %v973_v11 = vadd.f32 %v965_v13, %v879_v40  ;;  %v1059_v44 = vmul.f32 %v3692_v41, %v2327_v51  ;;  %v1079_v29 = vmul.f32 %v2339_v27, %v2333_v23  ;;  %v1099_v18 = vmul.f32 %v3693_v33, %v2335_v63  ;;  %v3749_v40 = vld [vmem:[#allocation79_spill] sm:$0xff] }
  0xd8   : > { %v993_v50 = vadd.f32 %v985_v47, %v913_v43  ;;  %v1013_v8 = vadd.f32 %v1005_v2, %v933_v56  ;;  %v1033_v54 = vadd.f32 %v1025_v57, %v953_v59  ;;  %v1119_v31 = vmul.f32 %v3748_v3, %v2358_v39  ;;  %v2640_v59 = vld [vmem:[#allocation2 + $0x86] sm:$0xff]  ;;  %v3751_v2 = vld [vmem:[#allocation84_spill] sm:$0xff]  ;;  %v3752_v57 = vld [vmem:[#allocation85_spill] sm:$0xff] }
  0xd9   : > { %v1067_v10 = vadd.f32 %v1059_v44, %v973_v11  ;;  %v1139_v43 = vmul.f32 %v3749_v40, %v2360_v22  ;;  %v1159_v13 = vmul.f32 %v2368_v0, %v2513_v9  ;;  %v1179_v56 = vmul.f32 %v2372_v45, %v2624_v55  ;;  %3750 = vst [vmem:[#allocation69_spill] sm:$0xff] %v2640_v59  ;;  %v3753_v11 = vld [vmem:[#allocation87_spill] sm:$0xff]  ;;  %v3756_v40 = vld [vmem:[#allocation89_spill] sm:$0xff]  ;;  %v3760_v45 = vld [vmem:[#allocation94_spill] sm:$0xff] }
  0xda   : > { %v1087_v5 = vadd.f32 %v1079_v29, %v993_v50  ;;  %v1107_v51 = vadd.f32 %v1099_v18, %v1013_v8  ;;  %v1127_v47 = vadd.f32 %v1119_v31, %v1033_v54  ;;  %v1213_v33 = vmul.f32 %v3752_v57, %v3751_v2  ;;  %v3754_v50 = vld [vmem:[#allocation86_spill] sm:$0xff]  ;;  %v3755_v29 = vld [vmem:[#allocation88_spill] sm:$0xff]  ;;  %v3757_v8 = vld [vmem:[#allocation91_spill] sm:$0xff] }
  0xdb   : > { %v1147_v27 = vadd.f32 %v1139_v43, %v1067_v10  ;;  %v1233_v44 = vmul.f32 %v3754_v50, %v3753_v11  ;;  %v1253_v22 = vmul.f32 %v3756_v40, %v3755_v29  ;;  %v3758_v54 = vld [vmem:[#allocation93_spill] sm:$0xff]  ;;  %v3759_v31 = vld [vmem:[#allocation92_spill] sm:$0xff]  ;;  %v3762_v10 = vld [vmem:[#allocation46_spill] sm:$0xff] }
  0xdc   : > { %v1167_v3 = vadd.f32 %v1159_v13, %v1087_v5  ;;  %v1187_v39 = vadd.f32 %v1179_v56, %v1107_v51  ;;  %v1221_v0 = vadd.f32 %v1213_v33, %v1127_v47  ;;  %v1273_v18 = vmul.f32 %v3758_v54, %v3757_v8  ;;  %v2652_v9 = vld [vmem:[#allocation2 + $0x90] sm:$0xff]  ;;  %v3764_v13 = vld [vmem:[#allocation90_spill] sm:$0xff]  ;;  %v3766_v33 = vld [vmem:[#allocation13_spill] sm:$0xff] }
  0xdd   : > { %v1293_v55 = vmul.f32 %v3760_v45, %v3759_v31  ;;  %3761 = vst [vmem:[#allocation70_spill] sm:$0xff] %v2652_v9  ;;  %v1241_v63 = vadd.f32 %v1233_v44, %v1147_v27  ;;  %v3763_v5 = vld [vmem:[#allocation95_spill] sm:$0xff]  ;;  %v1333_v50 = vmul.f32 %v3764_v13, %v2640_v59  ;;  %v3765_v51 = vld [vmem:[#allocation44_spill] sm:$0xff]  ;;  %v3767_v56 = vld [vmem:[#allocation53_spill] sm:$0xff] }
  0xde   : > { %v1261_v2 = vadd.f32 %v1253_v22, %v1167_v3  ;;  %v1313_v43 = vmul.f32 %v3763_v5, %v3762_v10  ;;  %v1281_v57 = vadd.f32 %v1273_v18, %v1187_v39  ;;  %v290_v47 = vmul.f32 %v3766_v33, %v3765_v51  ;;  %v3768_v54 = vld [vmem:[#allocation15_spill] sm:$0xff]  ;;  %v3769_v31 = vld [vmem:[#allocation56_spill] sm:$0xff]  ;;  %v3774_v10 = vld [vmem:[#allocation14_spill] sm:$0xff] }
  0xdf   : > { %v1301_v40 = vadd.f32 %v1293_v55, %v1221_v0  ;;  %v310_v8 = vmul.f32 %v3768_v54, %v3767_v56  ;;  %v3770_v11 = vld [vmem:[#allocation31_spill] sm:$0xff]  ;;  %v3772_v3 = vld [vmem:[#allocation32_spill] sm:$0xff]  ;;  %v3776_v39 = vld [vmem:[#allocation37_spill] sm:$0xff] }
  0xe0   : > { %v1321_v29 = vadd.f32 %v1313_v43, %v1241_v63  ;;  %v1341_v45 = vadd.f32 %v1333_v50, %v1261_v2  ;;  %v330_v27 = vmul.f32 %v3770_v11, %v3769_v31  ;;  %v3771_v22 = vld [vmem:[#allocation59_spill] sm:$0xff]  ;;  %v3773_v5 = vld [vmem:[#allocation96_spill] sm:$0xff]  ;;  %v3777_v55 = vld [vmem:[#allocation38_spill] sm:$0xff] }
  0xe1   : > { %v350_v44 = vmul.f32 %v3772_v3, %v3771_v22  ;;  %v370_v41 = vmul.f32 %v3774_v10, %v3773_v5  ;;  %v3775_v13 = vld [vmem:[#allocation55_spill] sm:$0xff]  ;;  %v410_v18 = vmul.f32 %v3777_v55, %v2652_v9  ;;  %v3778_v51 = vld [vmem:[#allocation45_spill] sm:$0xff]  ;;  %v3779_v33 = vld [vmem:[#allocation16_spill] sm:$0xff]  ;;  %v504_v55 = vmul.f32 %v3718_v46, %v3719_v38 }
  0xe2   : > { %v390_v0 = vmul.f32 %v3776_v39, %v3775_v13  ;;  %v444_v54 = vmul.f32 %v3779_v33, %v3778_v51  ;;  %v2674_v63 = vld [vmem:[#allocation2 + $0x91] sm:$0xff]  ;;  %v1349_v50 = vadd.f32 %v1341_v45, %v1281_v57  ;;  %v1357_v2 = vadd.f32 %v1321_v29, %v1301_v40  ;;  %v3780_v43 = vld [vmem:[#allocation54_spill] sm:$0xff]  ;;  %v3781_v11 = vld [vmem:[#allocation33_spill] sm:$0xff] }
  0xe3   : > { %v464_v31 = vmul.f32 %v3781_v11, %v3780_v43  ;;  %v3782_v3 = vld [vmem:[#allocation34_spill] sm:$0xff]  ;;  %v378_v10 = vadd.f32 %v370_v41, %v290_v47  ;;  %v418_v56 = vadd.f32 %v410_v18, %v330_v27  ;;  %v524_v51 = vmul.f32 %v3720_v21, %v3721_v15 }
  0xe4   : > { %v484_v22 = vmul.f32 %v3782_v3, %v3717_v24  ;;  %v398_v5 = vadd.f32 %v390_v0, %v310_v8  ;;  %v452_v39 = vadd.f32 %v444_v54, %v350_v44  ;;  %v1365_v13 = vadd.f32 %v1357_v2, %v1349_v50  ;;  %v2690_v8 = vld [vmem:[#allocation2 + $0x92] sm:$0xff]  ;;  %v3784_v44 = vld [vmem:[#allocation47_spill] sm:$0xff] }
  0xe5   : > { %v544_v45 = vmul.f32 %v3722_v61, %v2565_v36  ;;  %v472_v40 = vadd.f32 %v464_v31, %v378_v10  ;;  %v564_v29 = vmul.f32 %v3724_v25, %v2674_v63  ;;  %v598_v41 = vmul.f32 %v3664_v42, %v3667_v62  ;;  %3783 = vst [vmem:[#allocation36_spill] sm:$0xff] %v2690_v8  ;;  %v3785_v10 = vld [vmem:[#allocation49_spill] sm:$0xff] }
  0xe6   : > { %v492_v57 = vadd.f32 %v484_v22, %v398_v5  ;;  %v1379_v54 = vadd.f32 %v2451_v58, %v1365_v13  ;;  %v512_v47 = vadd.f32 %v504_v55, %v418_v56  ;;  %v532_v27 = vadd.f32 %v524_v51, %v452_v39  ;;  %v3786_v13 = vld [vmem:[#allocation61_spill] sm:$0xff]  ;;  %v3787_v56 = vld [vmem:[#allocation50_spill] sm:$0xff] }
  0xe7   : > { %v618_v0 = vmul.f32 %v3784_v44, %v3669_v1  ;;  %v552_v18 = vadd.f32 %v544_v45, %v472_v40  ;;  %v638_v31 = vmul.f32 %v3725_v26, %v3726_v6  ;;  %v658_v5 = vmul.f32 %v3785_v10, %v3673_v53  ;;  %v3788_v45 = vld [vmem:[#allocation51_spill] sm:$0xff] }
  0xe8   : > { %v572_v50 = vadd.f32 %v564_v29, %v492_v57  ;;  %1387 = vst [vmem:[%s2476_s18 + $0x10] sm:$0xff] %v1379_v54  ;;  %v606_v22 = vadd.f32 %v598_v41, %v512_v47  ;;  %v678_v2 = vmul.f32 %v3728_v30, %v3729_v28  ;;  %v698_v39 = vmul.f32 %v3787_v56, %v3786_v13  ;;  %v3789_v57 = vld [vmem:[#allocation21_spill] sm:$0xff]  ;;  %v3790_v54 = vld [vmem:[#allocation62_spill] sm:$0xff]  ;;  %v3791_v47 = vld [vmem:[#allocation63_spill] sm:$0xff] }
  0xe9   : > { %v626_v62 = vadd.f32 %v618_v0, %v532_v27  ;;  %v646_v55 = vadd.f32 %v638_v31, %v552_v18  ;;  %v718_v40 = vmul.f32 %v3788_v45, %v2690_v8  ;;  %v752_v29 = vmul.f32 %v3789_v57, %v2027_v12  ;;  %v3792_v56 = vld [vmem:[#allocation27_spill] sm:$0xff]  ;;  %v3794_v12 = vld [vmem:[#allocation64_spill] sm:$0xff] }
  0xea   : > { %v666_v51 = vadd.f32 %v658_v5, %v572_v50  ;;  %v686_v26 = vadd.f32 %v678_v2, %v606_v22  ;;  %v772_v41 = vmul.f32 %v3790_v54, %v2049_v19  ;;  %v792_v27 = vmul.f32 %v3791_v47, %v2052_v20  ;;  %v3793_v50 = vld [vmem:[#allocation28_spill] sm:$0xff]  ;;  %v3796_v2 = vld [vmem:[#allocation65_spill] sm:$0xff] }
  0xeb   : > { %v706_v44 = vadd.f32 %v698_v39, %v626_v62  ;;  %v726_v0 = vadd.f32 %v718_v40, %v646_v55  ;;  %v812_v18 = vmul.f32 %v3792_v56, %v3734_v16  ;;  %v832_v31 = vmul.f32 %v3793_v50, %v3736_v49  ;;  %v3795_v62 = vld [vmem:[#allocation26_spill] sm:$0xff]  ;;  %v2720_v57 = vld [vmem:[#allocation2 + $0x94] sm:$0xff]  ;;  %v3799_v16 = vld [vmem:[#allocation67_spill] sm:$0xff] }
  0xec   : > { %v760_v30 = vadd.f32 %v752_v29, %v666_v51  ;;  %v780_v5 = vadd.f32 %v772_v41, %v686_v26  ;;  %v852_v22 = vmul.f32 %v3794_v12, %v3738_v52  ;;  %v872_v39 = vmul.f32 %v3796_v2, %v3795_v62  ;;  %3797 = vst [vmem:[#allocation22_spill] sm:$0xff] %v2720_v57  ;;  %v3798_v20 = vld [vmem:[#allocation29_spill] sm:$0xff] }
  0xed   : > { %v800_v45 = vadd.f32 %v792_v27, %v706_v44  ;;  %v820_v19 = vadd.f32 %v812_v18, %v726_v0  ;;  %v906_v55 = vmul.f32 %v3798_v20, %v3683_v14  ;;  %v926_v51 = vmul.f32 %v3799_v16, %v2291_v37  ;;  %v3800_v0 = vld [vmem:[#allocation73_spill] sm:$0xff] }
  0xee   : > { %v840_v54 = vadd.f32 %v832_v31, %v760_v30  ;;  %v860_v40 = vadd.f32 %v852_v22, %v780_v5  ;;  %v946_v26 = vmul.f32 %v3743_v60, %v3686_v35  ;;  %v966_v52 = vmul.f32 %v3744_v17, %v3688_v7  ;;  %v3802_v31 = vld [vmem:[#allocation74_spill] sm:$0xff] }
  0xef   : > { %v880_v49 = vadd.f32 %v872_v39, %v800_v45  ;;  %v914_v44 = vadd.f32 %v906_v55, %v820_v19  ;;  %v986_v30 = vmul.f32 %v3687_v48, %v2497_v4  ;;  %v1006_v41 = vmul.f32 %v3745_v32, %v2608_v34  ;;  %v2736_v45 = vld [vmem:[#allocation2 + $0x95] sm:$0xff]  ;;  %v3803_v39 = vld [vmem:[#allocation75_spill] sm:$0xff]  ;;  %v3811_v60 = vld [vmem:[#allocation66_spill] sm:$0xff] }
  0xf0   : > { %v934_v29 = vadd.f32 %v926_v51, %v840_v54  ;;  %v954_v14 = vadd.f32 %v946_v26, %v860_v40  ;;  %v1026_v18 = vmul.f32 %v3800_v0, %v2720_v57  ;;  %3801 = vst [vmem:[#allocation57_spill] sm:$0xff] %v2736_v45  ;;  %v1060_v5 = vmul.f32 %v3802_v31, %v2333_v23  ;;  %v3804_v54 = vld [vmem:[#allocation76_spill] sm:$0xff]  ;;  %v3806_v51 = vld [vmem:[#allocation77_spill] sm:$0xff]  ;;  %v3810_v0 = vld [vmem:[#allocation79_spill] sm:$0xff] }
  0xf1   : > { %v974_v27 = vadd.f32 %v966_v52, %v880_v49  ;;  %v994_v22 = vadd.f32 %v986_v30, %v914_v44  ;;  %v1080_v19 = vmul.f32 %v3804_v54, %v3803_v39  ;;  %v3805_v55 = vld [vmem:[#allocation80_spill] sm:$0xff]  ;;  %v3807_v40 = vld [vmem:[#allocation81_spill] sm:$0xff]  ;;  %v3808_v49 = vld [vmem:[#allocation78_spill] sm:$0xff] }
  0xf2   : > { %v1014_v62 = vadd.f32 %v1006_v41, %v934_v29  ;;  %v1100_v48 = vmul.f32 %v3806_v51, %v3805_v55  ;;  %v1034_v17 = vadd.f32 %v1026_v18, %v954_v14  ;;  %v1120_v26 = vmul.f32 %v3808_v49, %v3807_v40  ;;  %v3809_v52 = vld [vmem:[#allocation43_spill] sm:$0xff]  ;;  %v3812_v23 = vld [vmem:[#allocation82_spill] sm:$0xff]  ;;  %v2752_v31 = vld [vmem:[#allocation2 + $0x96] sm:$0xff] }
  0xf3   : > { %v1068_v32 = vadd.f32 %v1060_v5, %v974_v27  ;;  %v1140_v57 = vmul.f32 %v3810_v0, %v3809_v52  ;;  %v1088_v34 = vadd.f32 %v1080_v19, %v994_v22  ;;  %v1160_v44 = vmul.f32 %v3812_v23, %v3811_v60  ;;  %v3813_v29 = vld [vmem:[#allocation83_spill] sm:$0xff]  ;;  %3814 = vst [vmem:[#allocation39_spill] sm:$0xff] %v2752_v31  ;;  %v3816_v27 = vld [vmem:[#allocation85_spill] sm:$0xff]  ;;  %v3817_v5 = vld [vmem:[#allocation88_spill] sm:$0xff] }
  0xf4   : > { %v1108_v4 = vadd.f32 %v1100_v48, %v1014_v62  ;;  %v1180_v30 = vmul.f32 %v3813_v29, %v2736_v45  ;;  %v1128_v41 = vadd.f32 %v1120_v26, %v1034_v17  ;;  %v3815_v14 = vld [vmem:[#allocation87_spill] sm:$0xff]  ;;  %v3818_v49 = vld [vmem:[#allocation86_spill] sm:$0xff]  ;;  %v3820_v48 = vld [vmem:[#allocation89_spill] sm:$0xff] }
  0xf5   : > { %v1148_v54 = vadd.f32 %v1140_v57, %v1068_v32  ;;  %v1214_v18 = vmul.f32 %v3816_v27, %v3815_v14  ;;  %v1234_v51 = vmul.f32 %v3818_v49, %v3817_v5  ;;  %v1168_v40 = vadd.f32 %v1160_v44, %v1088_v34  ;;  %v3819_v22 = vld [vmem:[#allocation91_spill] sm:$0xff]  ;;  %v3821_v19 = vld [vmem:[#allocation92_spill] sm:$0xff]  ;;  %v3822_v23 = vld [vmem:[#allocation93_spill] sm:$0xff] }
  0xf6   : > { %v1188_v0 = vadd.f32 %v1180_v30, %v1108_v4  ;;  %v1254_v62 = vmul.f32 %v3820_v48, %v3819_v22  ;;  %v1274_v60 = vmul.f32 %v3822_v23, %v3821_v19  ;;  %v3823_v17 = vld [vmem:[#allocation46_spill] sm:$0xff]  ;;  %v3825_v26 = vld [vmem:[#allocation95_spill] sm:$0xff]  ;;  %v3828_v44 = vld [vmem:[#allocation53_spill] sm:$0xff] }
  0xf7   : > { %v1222_v52 = vadd.f32 %v1214_v18, %v1128_v41  ;;  %v1242_v29 = vadd.f32 %v1234_v51, %v1148_v54  ;;  %v3824_v32 = vld [vmem:[#allocation94_spill] sm:$0xff]  ;;  %v1314_v45 = vmul.f32 %v3825_v26, %v2640_v59  ;;  %v3829_v30 = vld [vmem:[#allocation13_spill] sm:$0xff]  ;;  %v3830_v41 = vld [vmem:[#allocation56_spill] sm:$0xff] }
  0xf8   : > { %v1294_v57 = vmul.f32 %v3824_v32, %v3823_v17  ;;  %v2766_v14 = vld [vmem:[#allocation2 + $0xa0] sm:$0xff]  ;;  %v1262_v27 = vadd.f32 %v1254_v62, %v1168_v40  ;;  %v1282_v49 = vadd.f32 %v1274_v60, %v1188_v0  ;;  %v291_v48 = vmul.f32 %v3829_v30, %v3828_v44  ;;  %v3831_v54 = vld [vmem:[#allocation15_spill] sm:$0xff]  ;;  %v3834_v26 = vld [vmem:[#allocation96_spill] sm:$0xff] }
  0xf9   : > { %3826 = vst [vmem:[#allocation60_spill] sm:$0xff] %v2766_v14  ;;  %v3827_v4 = vld [vmem:[#allocation90_spill] sm:$0xff]  ;;  %v1322_v23 = vadd.f32 %v1314_v45, %v1242_v29  ;;  %v311_v51 = vmul.f32 %v3831_v54, %v3830_v41  ;;  %v3832_v18 = vld [vmem:[#allocation59_spill] sm:$0xff]  ;;  %v3835_v59 = vld [vmem:[#allocation32_spill] sm:$0xff]  ;;  %v445_v29 = vmul.f32 %v3779_v33, %v3780_v43 }
  0xfa   : > { %v1334_v34 = vmul.f32 %v3827_v4, %v2752_v31  ;;  %v1302_v22 = vadd.f32 %v1294_v57, %v1222_v52  ;;  %v3833_v32 = vld [vmem:[#allocation31_spill] sm:$0xff]  ;;  %v351_v5 = vmul.f32 %v3835_v59, %v3834_v26  ;;  %v3837_v60 = vld [vmem:[#allocation14_spill] sm:$0xff]  ;;  %v3838_v62 = vld [vmem:[#allocation37_spill] sm:$0xff]  ;;  %v465_v57 = vmul.f32 %v3781_v11, %v3717_v24 }
  0xfb   : > { %v331_v17 = vmul.f32 %v3833_v32, %v3832_v18  ;;  %v3836_v40 = vld [vmem:[#allocation55_spill] sm:$0xff]  ;;  %v391_v4 = vmul.f32 %v3838_v62, %v2652_v9  ;;  %v3839_v52 = vld [vmem:[#allocation38_spill] sm:$0xff]  ;;  %v485_v18 = vmul.f32 %v3782_v3, %v3719_v38 }
  0xfc   : > { %v1342_v19 = vadd.f32 %v1334_v34, %v1262_v27  ;;  %v371_v0 = vmul.f32 %v3837_v60, %v3836_v40  ;;  %v1358_v31 = vadd.f32 %v1322_v23, %v1302_v22  ;;  %v411_v45 = vmul.f32 %v3839_v52, %v2766_v14  ;;  %v2788_v27 = vld [vmem:[#allocation2 + $0xa1] sm:$0xff] }
  0xfd   : > { %v399_v41 = vadd.f32 %v391_v4, %v311_v51  ;;  %v453_v62 = vadd.f32 %v445_v29, %v351_v5  ;;  %v505_v23 = vmul.f32 %v3718_v46, %v3721_v15  ;;  %v525_v22 = vmul.f32 %v3720_v21, %v2565_v36 }
  0xfe   : > { %v1350_v34 = vadd.f32 %v1342_v19, %v1282_v49  ;;  %v379_v44 = vadd.f32 %v371_v0, %v291_v48  ;;  %v419_v60 = vadd.f32 %v411_v45, %v331_v17  ;;  %v545_v49 = vmul.f32 %v3722_v61, %v2674_v63  ;;  %v2800_v17 = vld [vmem:[#allocation2 + $0xa2] sm:$0xff]  ;;  %v3842_v45 = vld [vmem:[#allocation48_spill] sm:$0xff] }
  0xff   : > { %v493_v24 = vadd.f32 %v485_v18, %v399_v41  ;;  %v533_v19 = vadd.f32 %v525_v22, %v453_v62  ;;  %v565_v38 = vmul.f32 %v3724_v25, %v2788_v27  ;;  %3840 = vst [vmem:[#allocation18_spill] sm:$0xff] %v2800_v17  ;;  %v599_v5 = vmul.f32 %v3664_v42, %v3669_v1  ;;  %v3844_v18 = vld [vmem:[#allocation50_spill] sm:$0xff] }
 0x100   : > { %v1366_v43 = vadd.f32 %v1358_v31, %v1350_v34  ;;  %v473_v33 = vadd.f32 %v465_v57, %v379_v44  ;;  %v513_v48 = vadd.f32 %v505_v23, %v419_v60  ;;  %v3841_v31 = vld [vmem:[#allocation47_spill] sm:$0xff]  ;;  %v639_v29 = vmul.f32 %v3842_v45, %v3673_v53  ;;  %v3843_v34 = vld [vmem:[#allocation20_spill] sm:$0xff] }
 0x101   : > { %v619_v0 = vmul.f32 %v3841_v31, %v3726_v6  ;;  %v573_v57 = vadd.f32 %v565_v38, %v493_v24  ;;  %v659_v62 = vmul.f32 %v3785_v10, %v3729_v28  ;;  %v679_v44 = vmul.f32 %v3843_v34, %v3786_v13  ;;  %v3845_v23 = vld [vmem:[#allocation51_spill] sm:$0xff]  ;;  %v2821_v38 = vld [vmem:[#allocation2 + $0x53] sm:$0xff] }
 0x102   : > { %v1380_v4 = vadd.f32 %v2451_v58, %v1366_v43  ;;  %v553_v51 = vadd.f32 %v545_v49, %v473_v33  ;;  %v607_v60 = vadd.f32 %v599_v5, %v513_v48  ;;  %v699_v33 = vmul.f32 %v3844_v18, %v2690_v8  ;;  %v2818_v53 = vld [vmem:[#allocation2 + $0xa3] sm:$0xff]  ;;  %v3847_v49 = vld [vmem:[#allocation21_spill] sm:$0xff] }
 0x103   : > { %v627_v41 = vadd.f32 %v619_v0, %v533_v19  ;;  %v719_v6 = vmul.f32 %v3845_v23, %v2800_v17  ;;  %v667_v22 = vadd.f32 %v659_v62, %v573_v57  ;;  %3846 = vst [vmem:[#allocation97_spill] sm:$0xff] %v2818_v53  ;;  %v1593_v24 = vld [vmem:[#allocation2 + $0x43] sm:$0xff]  ;;  %v2829_v23 = vld [vmem:[#allocation2 + $0x73] sm:$0xff] }
 0x104   : > { %1388 = vst [vmem:[%s2476_s18 + $0x18] sm:$0xff] %v1380_v4  ;;  %v647_v1 = vadd.f32 %v639_v29, %v553_v51  ;;  %v687_v43 = vadd.f32 %v679_v44, %v607_v60  ;;  %v753_v48 = vmul.f32 %v1593_v24, %v3847_v49  ;;  %v3848_v5 = vld [vmem:[#allocation62_spill] sm:$0xff]  ;;  %3850 = vst [vmem:[#allocation35_spill] sm:$0xff] %v2829_v23 }
 0x105   : > { %v773_v4 = vmul.f32 %v2821_v38, %v3848_v5  ;;  %v707_v19 = vadd.f32 %v699_v33, %v627_v41  ;;  %v2825_v0 = vld [vmem:[#allocation2 + $0x63] sm:$0xff]  ;;  %v813_v57 = vmul.f32 %v2829_v23, %v3792_v56  ;;  %v2837_v5 = vld [vmem:[#allocation2 + $0x93] sm:$0xff] }
 0x106   : > { %v727_v51 = vadd.f32 %v719_v6, %v647_v1  ;;  %3849 = vst [vmem:[#allocation58_spill] sm:$0xff] %v2825_v0  ;;  %v793_v29 = vmul.f32 %v2825_v0, %v3791_v47  ;;  %v761_v60 = vadd.f32 %v753_v48, %v667_v22  ;;  %v2833_v44 = vld [vmem:[#allocation2 + $0x83] sm:$0xff]  ;;  %3852 = vst [vmem:[#allocation24_spill] sm:$0xff] %v2837_v5 }
 0x107   : > { %v781_v62 = vadd.f32 %v773_v4, %v687_v43  ;;  %3851 = vst [vmem:[#allocation17_spill] sm:$0xff] %v2833_v44  ;;  %v833_v24 = vmul.f32 %v2833_v44, %v3793_v50  ;;  %v853_v41 = vmul.f32 %v2837_v5, %v3794_v12  ;;  %v873_v6 = vmul.f32 %v3796_v2, %v2818_v53  ;;  %v2843_v47 = vld [vmem:[#allocation2 + $0xa4] sm:$0xff]  ;;  %v3854_v50 = vld [vmem:[#allocation68_spill] sm:$0xff] }
 0x108   : > { %v801_v1 = vadd.f32 %v793_v29, %v707_v19  ;;  %v821_v33 = vadd.f32 %v813_v57, %v727_v51  ;;  %3853 = vst [vmem:[#allocation25_spill] sm:$0xff] %v2843_v47  ;;  %v907_v22 = vmul.f32 %v3798_v20, %v2291_v37  ;;  %v927_v4 = vmul.f32 %v3799_v16, %v3686_v35  ;;  %v3855_v19 = vld [vmem:[#allocation42_spill] sm:$0xff]  ;;  %v3857_v57 = vld [vmem:[#allocation52_spill] sm:$0xff]  ;;  %v3858_v2 = vld [vmem:[#allocation71_spill] sm:$0xff] }
 0x109   : > { %v841_v43 = vadd.f32 %v833_v24, %v761_v60  ;;  %v861_v48 = vadd.f32 %v853_v41, %v781_v62  ;;  %v947_v44 = vmul.f32 %v3854_v50, %v3688_v7  ;;  %v3856_v51 = vld [vmem:[#allocation30_spill] sm:$0xff]  ;;  %v987_v53 = vmul.f32 %v3858_v2, %v3857_v57  ;;  %v3860_v37 = vld [vmem:[#allocation72_spill] sm:$0xff]  ;;  %v3861_v62 = vld [vmem:[#allocation73_spill] sm:$0xff] }
 0x10a   : > { %v881_v56 = vadd.f32 %v873_v6, %v801_v1  ;;  %v915_v12 = vadd.f32 %v907_v22, %v821_v33  ;;  %v967_v29 = vmul.f32 %v3856_v51, %v3855_v19  ;;  %v3859_v0 = vld [vmem:[#allocation22_spill] sm:$0xff]  ;;  %v1027_v24 = vmul.f32 %v3861_v62, %v2843_v47  ;;  %v3864_v33 = vld [vmem:[#allocation76_spill] sm:$0xff]  ;;  %v3884_v50 = vld [vmem:[#allocation39_spill] sm:$0xff] }
 0x10b   : > { %v935_v5 = vadd.f32 %v927_v4, %v841_v43  ;;  %v955_v23 = vadd.f32 %v947_v44, %v861_v48  ;;  %v1007_v60 = vmul.f32 %v3860_v37, %v3859_v0  ;;  %v2859_v16 = vld [vmem:[#allocation2 + $0xa5] sm:$0xff]  ;;  %v1081_v6 = vmul.f32 %v3864_v33, %v3805_v55  ;;  %v3865_v43 = vld [vmem:[#allocation81_spill] sm:$0xff] }
 0x10c   : > { %v975_v35 = vadd.f32 %v967_v29, %v881_v56  ;;  %v995_v41 = vadd.f32 %v987_v53, %v915_v12  ;;  %3862 = vst [vmem:[#allocation84_spill] sm:$0xff] %v2859_v16  ;;  %v3863_v7 = vld [vmem:[#allocation74_spill] sm:$0xff]  ;;  %v3866_v44 = vld [vmem:[#allocation77_spill] sm:$0xff]  ;;  %v3867_v4 = vld [vmem:[#allocation43_spill] sm:$0xff] }
 0x10d   : > { %v1061_v1 = vmul.f32 %v3863_v7, %v3803_v39  ;;  %v1015_v22 = vadd.f32 %v1007_v60, %v935_v5  ;;  %v1035_v2 = vadd.f32 %v1027_v24, %v955_v23  ;;  %v1101_v48 = vmul.f32 %v3866_v44, %v3865_v43  ;;  %v3868_v37 = vld [vmem:[#allocation78_spill] sm:$0xff]  ;;  %v3870_v12 = vld [vmem:[#allocation79_spill] sm:$0xff]  ;;  %v3871_v29 = vld [vmem:[#allocation57_spill] sm:$0xff] }
 0x10e   : > { %v1121_v0 = vmul.f32 %v3868_v37, %v3867_v4  ;;  %v1089_v62 = vadd.f32 %v1081_v6, %v995_v41  ;;  %v3869_v56 = vld [vmem:[#allocation66_spill] sm:$0xff]  ;;  %v3873_v55 = vld [vmem:[#allocation83_spill] sm:$0xff]  ;;  %v3874_v60 = vld [vmem:[#allocation88_spill] sm:$0xff] }
 0x10f   : > { %v1069_v51 = vadd.f32 %v1061_v1, %v975_v35  ;;  %v1141_v53 = vmul.f32 %v3870_v12, %v3869_v56  ;;  %v3872_v47 = vld [vmem:[#allocation82_spill] sm:$0xff]  ;;  %v1109_v39 = vadd.f32 %v1101_v48, %v1015_v22  ;;  %v1181_v5 = vmul.f32 %v3873_v55, %v2859_v16  ;;  %v3875_v24 = vld [vmem:[#allocation85_spill] sm:$0xff]  ;;  %v3876_v35 = vld [vmem:[#allocation91_spill] sm:$0xff] }
 0x110   : > { %v1161_v57 = vmul.f32 %v3872_v47, %v3871_v29  ;;  %v1129_v7 = vadd.f32 %v1121_v0, %v1035_v2  ;;  %v2875_v23 = vld [vmem:[#allocation2 + $0xa6] sm:$0xff]  ;;  %v1215_v43 = vmul.f32 %v3875_v24, %v3874_v60  ;;  %v3878_v6 = vld [vmem:[#allocation92_spill] sm:$0xff]  ;;  %v3879_v12 = vld [vmem:[#allocation89_spill] sm:$0xff] }
 0x111   : > { %v1149_v44 = vadd.f32 %v1141_v53, %v1069_v51  ;;  %v3877_v41 = vld [vmem:[#allocation86_spill] sm:$0xff]  ;;  %v1255_v56 = vmul.f32 %v3879_v12, %v3878_v6  ;;  %v1189_v4 = vadd.f32 %v1181_v5, %v1109_v39  ;;  %v3881_v2 = vld [vmem:[#allocation93_spill] sm:$0xff]  ;;  %v3885_v60 = vld [vmem:[#allocation95_spill] sm:$0xff] }
 0x112   : > { %v1169_v37 = vadd.f32 %v1161_v57, %v1089_v62  ;;  %v1235_v1 = vmul.f32 %v3877_v41, %v3876_v35  ;;  %v1223_v47 = vadd.f32 %v1215_v43, %v1129_v7  ;;  %v3880_v22 = vld [vmem:[#allocation46_spill] sm:$0xff]  ;;  %v3882_v48 = vld [vmem:[#allocation69_spill] sm:$0xff]  ;;  %v1315_v51 = vmul.f32 %v3885_v60, %v3884_v50  ;;  %v1599_v41 = vld [vmem:[#allocation2 + $0x50] sm:$0xff] }
 0x113   : > { %v1275_v0 = vmul.f32 %v3881_v2, %v3880_v22  ;;  %v3883_v55 = vld [vmem:[#allocation94_spill] sm:$0xff]  ;;  %v292_v39 = vmul.f32 %v1599_v41, %v3829_v30 }
 0x114   : > { %v1295_v16 = vmul.f32 %v3883_v55, %v3882_v48  ;;  %v1243_v29 = vadd.f32 %v1235_v1, %v1149_v44  ;;  %v1263_v33 = vadd.f32 %v1255_v56, %v1169_v37  ;;  %v3886_v57 = vld [vmem:[#allocation90_spill] sm:$0xff]  ;;  %v332_v37 = vmul.f32 %v3833_v32, %v3834_v26 }
 0x115   : > { %v1335_v62 = vmul.f32 %v3886_v57, %v2875_v23  ;;  %v1283_v53 = vadd.f32 %v1275_v0, %v1189_v4  ;;  %v2892_v7 = vld [vmem:[#allocation2 + $0x60] sm:$0xff]  ;;  %v352_v44 = vmul.f32 %v3835_v59, %v3836_v40 }
 0x116   : > { %v1303_v35 = vadd.f32 %v1295_v16, %v1223_v47  ;;  %v312_v5 = vmul.f32 %v2892_v7, %v3831_v54  ;;  %v1323_v43 = vadd.f32 %v1315_v51, %v1243_v29  ;;  %v3887_v56 = vld [vmem:[#allocation14_spill] sm:$0xff]  ;;  %v3888_v47 = vld [vmem:[#allocation37_spill] sm:$0xff]  ;;  %v1602_v29 = vld [vmem:[#allocation2 + $0x51] sm:$0xff] }
 0x117   : > { %v1343_v6 = vadd.f32 %v1335_v62, %v1263_v33  ;;  %v372_v4 = vmul.f32 %v3887_v56, %v2652_v9  ;;  %v392_v16 = vmul.f32 %v3888_v47, %v2766_v14  ;;  %v2904_v41 = vld [vmem:[#allocation2] sm:$0xff]  ;;  %v3890_v33 = vld [vmem:[#allocation16_spill] sm:$0xff]  ;;  %v486_v56 = vmul.f32 %v3782_v3, %v3721_v15 }
 0x118   : > { %3889 = vst [vmem:[#allocation44_spill] sm:$0xff] %v2904_v41  ;;  %v2908_v1 = vmul.f32 %v2904_v41, %v3839_v52  ;;  %v446_v0 = vmul.f32 %v1602_v29, %v3890_v33  ;;  %v1359_v26 = vadd.f32 %v1323_v43, %v1303_v35  ;;  %v2911_v57 = vld [vmem:[#allocation2 + $0x61] sm:$0xff]  ;;  %v2918_v41 = vld [vmem:[#allocation2 + $0xb1] sm:$0xff]  ;;  %v526_v35 = vmul.f32 %v3720_v21, %v2674_v63 }
 0x119   : > { %v1351_v51 = vadd.f32 %v1343_v6, %v1283_v53  ;;  %v466_v62 = vmul.f32 %v2911_v57, %v3781_v11  ;;  %v380_v47 = vadd.f32 %v372_v4, %v292_v39  ;;  %v400_v14 = vadd.f32 %v392_v16, %v312_v5  ;;  %v1604_v5 = vld [vmem:[#allocation2 + $0x52] sm:$0xff] }
 0x11a   : > { %v420_v59 = vadd.f32 %v2908_v1, %v332_v37  ;;  %v454_v9 = vadd.f32 %v446_v0, %v352_v44  ;;  %v506_v53 = vmul.f32 %v3718_v46, %v2565_v36  ;;  %v546_v43 = vmul.f32 %v3722_v61, %v2788_v27  ;;  %v2930_v29 = vld [vmem:[#allocation2 + $0xb2] sm:$0xff]  ;;  %v2932_v0 = vld [vmem:[#allocation2 + $0x62] sm:$0xff] }
 0x11b   : > { %v1367_v52 = vadd.f32 %v1359_v26, %v1351_v51  ;;  %v474_v6 = vadd.f32 %v466_v62, %v380_v47  ;;  %v494_v15 = vadd.f32 %v486_v56, %v400_v14  ;;  %v566_v39 = vmul.f32 %v3724_v25, %v2918_v41  ;;  %3891 = vst [vmem:[#allocation45_spill] sm:$0xff] %v2930_v29 }
 0x11c   : > { %v600_v37 = vmul.f32 %v1604_v5, %v3664_v42  ;;  %v514_v4 = vadd.f32 %v506_v53, %v420_v59  ;;  %v534_v16 = vadd.f32 %v526_v35, %v454_v9  ;;  %v620_v51 = vmul.f32 %v2932_v0, %v3841_v31  ;;  %v3892_v35 = vld [vmem:[#allocation51_spill] sm:$0xff]  ;;  %v3894_v5 = vld [vmem:[#allocation62_spill] sm:$0xff] }
 0x11d   : > { %v1381_v44 = vadd.f32 %v2451_v58, %v1367_v52  ;;  %v554_v26 = vadd.f32 %v546_v43, %v474_v6  ;;  %v574_v47 = vadd.f32 %v566_v39, %v494_v15  ;;  %v640_v14 = vmul.f32 %v3842_v45, %v3729_v28  ;;  %v2947_v6 = vld [vmem:[#allocation2 + $0xb3] sm:$0xff] }
 0x11e   : > { %v660_v56 = vmul.f32 %v3785_v10, %v3786_v13  ;;  %v608_v62 = vadd.f32 %v600_v37, %v514_v4  ;;  %v628_v58 = vadd.f32 %v620_v51, %v534_v16  ;;  %v680_v9 = vmul.f32 %v3843_v34, %v2690_v8  ;;  %3893 = vst [vmem:[#allocation54_spill] sm:$0xff] %v2947_v6  ;;  %v3895_v37 = vld [vmem:[#allocation58_spill] sm:$0xff]  ;;  %v3896_v4 = vld [vmem:[#allocation63_spill] sm:$0xff]  ;;  %v3902_v8 = vld [vmem:[#allocation97_spill] sm:$0xff] }
 0x11f   : > { %1389 = vst [vmem:[%s2476_s18 + $0x20] sm:$0xff] %v1381_v44  ;;  %v700_v59 = vmul.f32 %v3844_v18, %v2800_v17  ;;  %v648_v52 = vadd.f32 %v640_v14, %v554_v26  ;;  %v720_v43 = vmul.f32 %v3892_v35, %v2930_v29  ;;  %v754_v28 = vmul.f32 %v2821_v38, %v3847_v49  ;;  %v3897_v16 = vld [vmem:[#allocation35_spill] sm:$0xff]  ;;  %v3901_v35 = vld [vmem:[#allocation24_spill] sm:$0xff] }
 0x120   : > { %v668_v53 = vadd.f32 %v660_v56, %v574_v47  ;;  %v688_v15 = vadd.f32 %v680_v9, %v608_v62  ;;  %v774_v44 = vmul.f32 %v3895_v37, %v3894_v5  ;;  %v794_v51 = vmul.f32 %v3897_v16, %v3896_v4  ;;  %v3898_v26 = vld [vmem:[#allocation27_spill] sm:$0xff]  ;;  %v3899_v47 = vld [vmem:[#allocation17_spill] sm:$0xff]  ;;  %v3900_v56 = vld [vmem:[#allocation28_spill] sm:$0xff] }
 0x121   : > { %v708_v39 = vadd.f32 %v700_v59, %v628_v58  ;;  %v728_v34 = vadd.f32 %v720_v43, %v648_v52  ;;  %v814_v14 = vmul.f32 %v3899_v47, %v3898_v26  ;;  %v834_v29 = vmul.f32 %v3901_v35, %v3900_v56  ;;  %v3903_v38 = vld [vmem:[#allocation64_spill] sm:$0xff]  ;;  %v3904_v58 = vld [vmem:[#allocation65_spill] sm:$0xff]  ;;  %v2966_v43 = vld [vmem:[#allocation2 + $0x64] sm:$0xff] }
 0x122   : > { %v762_v18 = vadd.f32 %v754_v28, %v668_v53  ;;  %v782_v17 = vadd.f32 %v774_v44, %v688_v15  ;;  %v854_v62 = vmul.f32 %v3903_v38, %v3902_v8  ;;  %v874_v9 = vmul.f32 %v3904_v58, %v2947_v6  ;;  %v2963_v37 = vld [vmem:[#allocation2 + $0xb4] sm:$0xff]  ;;  %3906 = vst [vmem:[#allocation61_spill] sm:$0xff] %v2966_v43  ;;  %v3907_v28 = vld [vmem:[#allocation67_spill] sm:$0xff]  ;;  %v3910_v8 = vld [vmem:[#allocation30_spill] sm:$0xff] }
 0x123   : > { %v802_v10 = vadd.f32 %v794_v51, %v708_v39  ;;  %v822_v59 = vadd.f32 %v814_v14, %v728_v34  ;;  %3905 = vst [vmem:[#allocation34_spill] sm:$0xff] %v2963_v37  ;;  %v1606_v52 = vld [vmem:[#allocation2 + $0x54] sm:$0xff]  ;;  %v928_v56 = vmul.f32 %v2966_v43, %v3907_v28  ;;  %v3912_v14 = vld [vmem:[#allocation71_spill] sm:$0xff] }
 0x124   : > { %v842_v5 = vadd.f32 %v834_v29, %v762_v18  ;;  %v908_v53 = vmul.f32 %v1606_v52, %v3798_v20  ;;  %v862_v15 = vadd.f32 %v854_v62, %v782_v17  ;;  %v3908_v44 = vld [vmem:[#allocation68_spill] sm:$0xff]  ;;  %v3911_v29 = vld [vmem:[#allocation22_spill] sm:$0xff]  ;;  %v3913_v35 = vld [vmem:[#allocation25_spill] sm:$0xff] }
 0x125   : > { %v882_v39 = vadd.f32 %v874_v9, %v802_v10  ;;  %v948_v51 = vmul.f32 %v3908_v44, %v3855_v19  ;;  %v3909_v38 = vld [vmem:[#allocation52_spill] sm:$0xff]  ;;  %v988_v6 = vmul.f32 %v3912_v14, %v3911_v29  ;;  %v3915_v28 = vld [vmem:[#allocation73_spill] sm:$0xff]  ;;  %v3916_v19 = vld [vmem:[#allocation74_spill] sm:$0xff] }
 0x126   : > { %v968_v58 = vmul.f32 %v3910_v8, %v3909_v38  ;;  %v916_v34 = vadd.f32 %v908_v53, %v822_v59  ;;  %v936_v18 = vadd.f32 %v928_v56, %v842_v5  ;;  %v3914_v52 = vld [vmem:[#allocation72_spill] sm:$0xff]  ;;  %v1028_v17 = vmul.f32 %v3915_v28, %v2963_v37  ;;  %v2983_v59 = vld [vmem:[#allocation2 + $0x65] sm:$0xff]  ;;  %v3920_v14 = vld [vmem:[#allocation77_spill] sm:$0xff] }
 0x127   : > { %v1008_v20 = vmul.f32 %v3914_v52, %v3913_v35  ;;  %v956_v26 = vadd.f32 %v948_v51, %v862_v15  ;;  %v2980_v10 = vld [vmem:[#allocation2 + $0xb5] sm:$0xff]  ;;  %3917 = vst [vmem:[#allocation26_spill] sm:$0xff] %v2983_v59  ;;  %v3919_v53 = vld [vmem:[#allocation43_spill] sm:$0xff]  ;;  %v3922_v51 = vld [vmem:[#allocation78_spill] sm:$0xff] }
 0x128   : > { %v976_v47 = vadd.f32 %v968_v58, %v882_v39  ;;  %v1608_v62 = vld [vmem:[#allocation2 + $0x55] sm:$0xff]  ;;  %v996_v44 = vadd.f32 %v988_v6, %v916_v34  ;;  %v1102_v52 = vmul.f32 %v3920_v14, %v3919_v53  ;;  %v3921_v39 = vld [vmem:[#allocation66_spill] sm:$0xff]  ;;  %v3924_v35 = vld [vmem:[#allocation79_spill] sm:$0xff] }
 0x129   : > { %v1062_v9 = vmul.f32 %v1608_v62, %v3916_v19  ;;  %v1016_v8 = vadd.f32 %v1008_v20, %v936_v18  ;;  %v3918_v5 = vld [vmem:[#allocation76_spill] sm:$0xff]  ;;  %v1036_v15 = vadd.f32 %v1028_v17, %v956_v26  ;;  %v1122_v28 = vmul.f32 %v3922_v51, %v3921_v39  ;;  %v3923_v37 = vld [vmem:[#allocation57_spill] sm:$0xff]  ;;  %v3926_v20 = vld [vmem:[#allocation82_spill] sm:$0xff] }
 0x12a   : > { %v1082_v56 = vmul.f32 %v2983_v59, %v3918_v5  ;;  %v1142_v29 = vmul.f32 %v3924_v35, %v3923_v37  ;;  %v3925_v6 = vld [vmem:[#allocation84_spill] sm:$0xff]  ;;  %v3927_v18 = vld [vmem:[#allocation83_spill] sm:$0xff] }
 0x12b   : > { %v1070_v58 = vadd.f32 %v1062_v9, %v976_v47  ;;  %v1110_v62 = vadd.f32 %v1102_v52, %v1016_v8  ;;  %v1162_v34 = vmul.f32 %v3926_v20, %v3925_v6  ;;  %v1182_v19 = vmul.f32 %v3927_v18, %v2980_v10  ;;  %v2997_v43 = vld [vmem:[#allocation2 + $0xb6] sm:$0xff]  ;;  %v3000_v17 = vld [vmem:[#allocation2 + $0x66] sm:$0xff]  ;;  %v3012_v18 = vld [vmem:[#allocation6 + $0x30] ss:$0 sm:$0xff] }
 0x12c   : > { %v1090_v38 = vadd.f32 %v1082_v56, %v996_v44  ;;  %v1130_v5 = vadd.f32 %v1122_v28, %v1036_v15  ;;  %3928 = vst [vmem:[#allocation75_spill] sm:$0xff] %v2997_v43  ;;  %v1610_v26 = vld [vmem:[#allocation2 + $0x56] sm:$0xff]  ;;  %v3929_v9 = vld [vmem:[#allocation86_spill] sm:$0xff]  ;;  %v1256_v52 = vmul.f32 %v3879_v12, %v3880_v22  ;;  %v1276_v56 = vmul.f32 %v3881_v2, %v3882_v48 }
 0x12d   : > { %v1150_v59 = vadd.f32 %v1142_v29, %v1070_v58  ;;  %v1216_v47 = vmul.f32 %v1610_v26, %v3875_v24  ;;  %v1236_v53 = vmul.f32 %v3000_v17, %v3929_v9  ;;  %v1190_v8 = vadd.f32 %v1182_v19, %v1110_v62  ;;  %3930 = vst [vmem:[#allocation80_spill] sm:$0xff] %v3012_v18 }
 0x12e   : > { %v1170_v44 = vadd.f32 %v1162_v34, %v1090_v38  ;;  %v1296_v15 = vmul.f32 %v3883_v55, %v3884_v50  ;;  %v1316_v58 = vmul.f32 %v3885_v60, %v2875_v23  ;;  %v1336_v38 = vmul.f32 %v3012_v18, %v2997_v43  ;;  %v3935_v60 = vld [vmem:[#allocation37_spill] sm:$0xff]  ;;  %v3936_v43 = vld [vmem:[#allocation44_spill] sm:$0xff] }
 0x12f   : > { %v1224_v28 = vadd.f32 %v1216_v47, %v1130_v5  ;;  %v1244_v29 = vadd.f32 %v1236_v53, %v1150_v59  ;;  %v1284_v24 = vadd.f32 %v1276_v56, %v1190_v8  ;;  %v293_v22 = vmul.f32 %v2892_v7, %v3829_v30  ;;  %v3018_v5 = vld [vmem:[#allocation2 + $0x70] sm:$0xff]  ;;  %v3931_v53 = vld [vmem:[#allocation70_spill] sm:$0xff] }
 0x130   : > { %v1264_v26 = vadd.f32 %v1256_v52, %v1170_v44  ;;  %v313_v59 = vmul.f32 %v3018_v5, %v3831_v54  ;;  %v333_v34 = vmul.f32 %v3833_v32, %v3836_v40  ;;  %v3932_v44 = vld [vmem:[#allocation32_spill] sm:$0xff]  ;;  %v3934_v56 = vld [vmem:[#allocation14_spill] sm:$0xff]  ;;  %v3030_v7 = vmul.f32 %v3936_v43, %v3935_v60 }
 0x131   : > { %v1304_v19 = vadd.f32 %v1296_v15, %v1224_v28  ;;  %v1324_v62 = vadd.f32 %v1316_v58, %v1244_v29  ;;  %v353_v8 = vmul.f32 %v3932_v44, %v3931_v53  ;;  %v3933_v52 = vld [vmem:[#allocation60_spill] sm:$0xff]  ;;  %v3033_v15 = vld [vmem:[#allocation2 + $0xc1] sm:$0xff]  ;;  %v447_v58 = vmul.f32 %v2911_v57, %v3890_v33 }
 0x132   : > { %v1344_v47 = vadd.f32 %v1336_v38, %v1264_v26  ;;  %v373_v18 = vmul.f32 %v3934_v56, %v3933_v52  ;;  %v421_v29 = vadd.f32 %v2908_v1, %v333_v34  ;;  %v3037_v40 = vld [vmem:[#allocation2 + $0x71] sm:$0xff]  ;;  %v401_v56 = vadd.f32 %v3030_v7, %v313_v59 }
 0x133   : > { %v1360_v28 = vadd.f32 %v1324_v62, %v1304_v19  ;;  %v467_v26 = vmul.f32 %v3037_v40, %v3781_v11  ;;  %v487_v60 = vmul.f32 %v3782_v3, %v2565_v36  ;;  %v455_v43 = vadd.f32 %v447_v58, %v353_v8  ;;  %v3052_v36 = vld [vmem:[#allocation2 + $0xc2] sm:$0xff]  ;;  %v3060_v58 = vld [vmem:[#allocation8] ss:$0 sm:$0xff] }
 0x134   : > { %v1352_v38 = vadd.f32 %v1344_v47, %v1284_v24  ;;  %v381_v44 = vadd.f32 %v373_v18, %v293_v22  ;;  %v507_v19 = vmul.f32 %v3718_v46, %v2674_v63  ;;  %v527_v62 = vmul.f32 %v3720_v21, %v2788_v27  ;;  %3937 = vst [vmem:[#allocation87_spill] sm:$0xff] %v3052_v36  ;;  %v3056_v47 = vld [vmem:[#allocation2 + $0x72] sm:$0xff] }
 0x135   : > { %v547_v57 = vmul.f32 %v3722_v61, %v2918_v41  ;;  %v495_v11 = vadd.f32 %v487_v60, %v401_v56  ;;  %v567_v24 = vmul.f32 %v3724_v25, %v3033_v15  ;;  %v601_v59 = vmul.f32 %v2932_v0, %v3664_v42  ;;  %3938 = vst [vmem:[#allocation53_spill] sm:$0xff] %v3056_v47  ;;  %v3939_v60 = vld [vmem:[#allocation36_spill] sm:$0xff]  ;;  %v3941_v0 = vld [vmem:[#allocation18_spill] sm:$0xff] }
 0x136   : > { %v1368_v34 = vadd.f32 %v1360_v28, %v1352_v38  ;;  %v475_v33 = vadd.f32 %v467_v26, %v381_v44  ;;  %v515_v18 = vadd.f32 %v507_v19, %v421_v29  ;;  %v535_v22 = vadd.f32 %v527_v62, %v455_v43  ;;  %v3940_v43 = vld [vmem:[#allocation49_spill] sm:$0xff]  ;;  %v3942_v62 = vld [vmem:[#allocation20_spill] sm:$0xff] }
 0x137   : > { %v621_v8 = vmul.f32 %v3056_v47, %v3841_v31  ;;  %v575_v26 = vadd.f32 %v567_v24, %v495_v11  ;;  %v641_v29 = vmul.f32 %v3842_v45, %v3786_v13  ;;  %v661_v19 = vmul.f32 %v3940_v43, %v3939_v60  ;;  %v3943_v31 = vld [vmem:[#allocation45_spill] sm:$0xff]  ;;  %v3944_v47 = vld [vmem:[#allocation50_spill] sm:$0xff] }
 0x138   : > { %v1382_v44 = vadd.f32 %v3060_v58, %v1368_v34  ;;  %v555_v28 = vadd.f32 %v547_v57, %v475_v33  ;;  %v609_v38 = vadd.f32 %v601_v59, %v515_v18  ;;  %v681_v42 = vmul.f32 %v3942_v62, %v3941_v0  ;;  %v3945_v34 = vld [vmem:[#allocation51_spill] sm:$0xff]  ;;  %v3947_v13 = vld [vmem:[#allocation58_spill] sm:$0xff]  ;;  %v3952_v43 = vld [vmem:[#allocation97_spill] sm:$0xff] }
 0x139   : > { %v629_v56 = vadd.f32 %v621_v8, %v535_v22  ;;  %v701_v61 = vmul.f32 %v3944_v47, %v3943_v31  ;;  %v721_v33 = vmul.f32 %v3945_v34, %v3052_v36  ;;  %v3074_v11 = vld [vmem:[#allocation2 + $0xc3] sm:$0xff]  ;;  %v755_v57 = vmul.f32 %v3947_v13, %v3847_v49  ;;  %v3949_v8 = vld [vmem:[#allocation17_spill] sm:$0xff]  ;;  %v3951_v47 = vld [vmem:[#allocation24_spill] sm:$0xff] }
 0x13a   : > { %1390 = vst [vmem:[%s2476_s18 + $0x28] sm:$0xff] %v1382_v44  ;;  %v649_v25 = vadd.f32 %v641_v29, %v555_v28  ;;  %3946 = vst [vmem:[#allocation13_spill] sm:$0xff] %v3074_v11  ;;  %v669_v24 = vadd.f32 %v661_v19, %v575_v26  ;;  %v689_v18 = vadd.f32 %v681_v42, %v609_v38  ;;  %v3948_v22 = vld [vmem:[#allocation62_spill] sm:$0xff]  ;;  %v3950_v62 = vld [vmem:[#allocation27_spill] sm:$0xff] }
 0x13b   : > { %v775_v59 = vmul.f32 %v3897_v16, %v3948_v22  ;;  %v795_v44 = vmul.f32 %v3949_v8, %v3896_v4  ;;  %v709_v28 = vadd.f32 %v701_v61, %v629_v56  ;;  %v815_v31 = vmul.f32 %v3951_v47, %v3950_v62  ;;  %v3953_v34 = vld [vmem:[#allocation28_spill] sm:$0xff]  ;;  %v3954_v60 = vld [vmem:[#allocation54_spill] sm:$0xff]  ;;  %v3956_v42 = vld [vmem:[#allocation65_spill] sm:$0xff] }
 0x13c   : > { %v729_v29 = vadd.f32 %v721_v33, %v649_v25  ;;  %v835_v36 = vmul.f32 %v3953_v34, %v3952_v43  ;;  %v763_v0 = vadd.f32 %v755_v57, %v669_v24  ;;  %v3955_v13 = vld [vmem:[#allocation64_spill] sm:$0xff]  ;;  %v875_v38 = vmul.f32 %v3956_v42, %v3074_v11  ;;  %v3090_v16 = vld [vmem:[#allocation2 + $0xc4] sm:$0xff]  ;;  %v3957_v61 = vld [vmem:[#allocation29_spill] sm:$0xff] }
 0x13d   : > { %v783_v45 = vadd.f32 %v775_v59, %v689_v18  ;;  %v855_v26 = vmul.f32 %v3955_v13, %v3954_v60  ;;  %v803_v19 = vadd.f32 %v795_v44, %v709_v28  ;;  %v3958_v25 = vld [vmem:[#allocation61_spill] sm:$0xff]  ;;  %v3959_v62 = vld [vmem:[#allocation67_spill] sm:$0xff]  ;;  %v3960_v18 = vld [vmem:[#allocation52_spill] sm:$0xff] }
 0x13e   : > { %v823_v22 = vadd.f32 %v815_v31, %v729_v29  ;;  %v909_v56 = vmul.f32 %v3958_v25, %v3957_v61  ;;  %v3094_v33 = vld [vmem:[#allocation2 + $0x74] sm:$0xff]  ;;  %v843_v57 = vadd.f32 %v835_v36, %v763_v0  ;;  %v3962_v60 = vld [vmem:[#allocation22_spill] sm:$0xff]  ;;  %v3965_v29 = vld [vmem:[#allocation71_spill] sm:$0xff] }
 0x13f   : > { %v929_v34 = vmul.f32 %v3094_v33, %v3959_v62  ;;  %v863_v24 = vadd.f32 %v855_v26, %v783_v45  ;;  %v3961_v59 = vld [vmem:[#allocation68_spill] sm:$0xff]  ;;  %v3963_v43 = vld [vmem:[#allocation30_spill] sm:$0xff]  ;;  %v883_v44 = vadd.f32 %v875_v38, %v803_v19  ;;  %v3964_v28 = vld [vmem:[#allocation25_spill] sm:$0xff] }
 0x140   : > { %v949_v13 = vmul.f32 %v3961_v59, %v3960_v18  ;;  %v969_v42 = vmul.f32 %v3963_v43, %v3962_v60  ;;  %v917_v31 = vadd.f32 %v909_v56, %v823_v22  ;;  %v989_v11 = vmul.f32 %v3965_v29, %v3964_v28  ;;  %v3966_v47 = vld [vmem:[#allocation34_spill] sm:$0xff]  ;;  %v3967_v25 = vld [vmem:[#allocation72_spill] sm:$0xff]  ;;  %v3968_v62 = vld [vmem:[#allocation73_spill] sm:$0xff] }
 0x141   : > { %v1009_v61 = vmul.f32 %v3967_v25, %v3966_v47  ;;  %v937_v4 = vadd.f32 %v929_v34, %v843_v57  ;;  %v1029_v36 = vmul.f32 %v3968_v62, %v3090_v16  ;;  %v3108_v45 = vld [vmem:[#allocation2 + $0xc5] sm:$0xff]  ;;  %v3112_v38 = vld [vmem:[#allocation2 + $0x75] sm:$0xff]  ;;  %v1103_v56 = vmul.f32 %v3920_v14, %v3921_v39 }
 0x142   : > { %v957_v8 = vadd.f32 %v949_v13, %v863_v24  ;;  %v3969_v0 = vld [vmem:[#allocation74_spill] sm:$0xff]  ;;  %v977_v59 = vadd.f32 %v969_v42, %v883_v44  ;;  %v997_v43 = vadd.f32 %v989_v11, %v917_v31  ;;  %3971 = vst [vmem:[#allocation56_spill] sm:$0xff] %v3112_v38  ;;  %v3972_v22 = vld [vmem:[#allocation76_spill] sm:$0xff]  ;;  %v1123_v57 = vmul.f32 %v3922_v51, %v3923_v37  ;;  %v3973_v42 = vld [vmem:[#allocation83_spill] sm:$0xff] }
 0x143   : > { %v3970_v26 = vld [vmem:[#allocation26_spill] sm:$0xff]  ;;  %v1083_v19 = vmul.f32 %v3112_v38, %v3972_v22  ;;  %v1017_v34 = vadd.f32 %v1009_v61, %v937_v4  ;;  %v1143_v24 = vmul.f32 %v3924_v35, %v3925_v6  ;;  %v1163_v11 = vmul.f32 %v3926_v20, %v2980_v10  ;;  %v3974_v4 = vld [vmem:[#allocation85_spill] sm:$0xff] }
 0x144   : > { %v1063_v18 = vmul.f32 %v3970_v26, %v3969_v0  ;;  %v1037_v13 = vadd.f32 %v1029_v36, %v957_v8  ;;  %v1183_v44 = vmul.f32 %v3973_v42, %v3108_v45  ;;  %v3126_v38 = vld [vmem:[#allocation2 + $0xc6] sm:$0xff]  ;;  %v1217_v39 = vmul.f32 %v3000_v17, %v3974_v4  ;;  %v3130_v8 = vld [vmem:[#allocation2 + $0x76] sm:$0xff] }
 0x145   : > { %v1091_v26 = vadd.f32 %v1083_v19, %v997_v43  ;;  %v1111_v31 = vadd.f32 %v1103_v56, %v1017_v34  ;;  %v1237_v61 = vmul.f32 %v3130_v8, %v3929_v9  ;;  %v1257_v36 = vmul.f32 %v3879_v12, %v3882_v48  ;;  %v3976_v17 = vld [vmem:[#allocation95_spill] sm:$0xff]  ;;  %v3977_v9 = vld [vmem:[#allocation80_spill] sm:$0xff] }
 0x146   : > { %v1071_v62 = vadd.f32 %v1063_v18, %v977_v59  ;;  %v1131_v22 = vadd.f32 %v1123_v57, %v1037_v13  ;;  %v1277_v18 = vmul.f32 %v3881_v2, %v3884_v50  ;;  %v1297_v34 = vmul.f32 %v3883_v55, %v2875_v23  ;;  %v3975_v13 = vld [vmem:[#allocation75_spill] sm:$0xff]  ;;  %v3978_v2 = vld [vmem:[#allocation32_spill] sm:$0xff] }
 0x147   : > { %v1171_v43 = vadd.f32 %v1163_v11, %v1091_v26  ;;  %v1191_v19 = vadd.f32 %v1183_v44, %v1111_v31  ;;  %v1317_v57 = vmul.f32 %v3976_v17, %v3975_v13  ;;  %v1620_v11 = vld [vmem:[#allocation2 + $0x80] sm:$0xff] }
 0x148   : > { %v1151_v59 = vadd.f32 %v1143_v24, %v1071_v62  ;;  %v1225_v56 = vadd.f32 %v1217_v39, %v1131_v22  ;;  %v1337_v62 = vmul.f32 %v3977_v9, %v3126_v38  ;;  %v294_v24 = vmul.f32 %v3018_v5, %v3829_v30  ;;  %v436_v30 = vld [vmem:[#allocation2 + $0xd1] sm:$0xff] }
 0x149   : > { %v1265_v42 = vadd.f32 %v1257_v36, %v1171_v43  ;;  %v1285_v48 = vadd.f32 %v1277_v18, %v1191_v19  ;;  %v314_v44 = vmul.f32 %v1620_v11, %v3831_v54  ;;  %v334_v22 = vmul.f32 %v3833_v32, %v3931_v53  ;;  %v3980_v5 = vld [vmem:[#allocation16_spill] sm:$0xff]  ;;  %v1621_v19 = vld [vmem:[#allocation2 + $0x81] sm:$0xff] }
 0x14a   : > { %v1245_v4 = vadd.f32 %v1237_v61, %v1151_v59  ;;  %v1305_v26 = vadd.f32 %v1297_v34, %v1225_v56  ;;  %v354_v61 = vmul.f32 %v3978_v2, %v3933_v52  ;;  %v3979_v59 = vld [vmem:[#allocation23_spill] sm:$0xff]  ;;  %v448_v18 = vmul.f32 %v3037_v40, %v3980_v5  ;;  %v3981_v54 = vld [vmem:[#allocation33_spill] sm:$0xff] }
 0x14b   : > { %v1345_v39 = vadd.f32 %v1337_v62, %v1265_v42  ;;  %v382_v43 = vadd.f32 %v3979_v59, %v294_v24  ;;  %v402_v36 = vadd.f32 %v3030_v7, %v314_v44  ;;  %v422_v9 = vadd.f32 %v2908_v1, %v334_v22  ;;  %v3982_v7 = vld [vmem:[#allocation40_spill] sm:$0xff]  ;;  %v3983_v24 = vld [vmem:[#allocation41_spill] sm:$0xff]  ;;  %v3986_v22 = vld [vmem:[#allocation47_spill] sm:$0xff] }
 0x14c   : > { %v1325_v31 = vadd.f32 %v1317_v57, %v1245_v4  ;;  %v468_v56 = vmul.f32 %v1621_v19, %v3981_v54  ;;  %v488_v53 = vmul.f32 %v3782_v3, %v2674_v63  ;;  %v508_v2 = vmul.f32 %v3718_v46, %v2788_v27  ;;  %v590_v3 = vld [vmem:[#allocation2 + $0xd2] sm:$0xff]  ;;  %v3984_v63 = vld [vmem:[#allocation19_spill] sm:$0xff]  ;;  %v3985_v44 = vld [vmem:[#allocation53_spill] sm:$0xff] }
 0x14d   : > { %v1353_v34 = vadd.f32 %v1345_v39, %v1285_v48  ;;  %v456_v52 = vadd.f32 %v448_v18, %v354_v61  ;;  %v528_v1 = vmul.f32 %v3720_v21, %v2918_v41  ;;  %v548_v4 = vmul.f32 %v3982_v7, %v3033_v15  ;;  %v1622_v27 = vld [vmem:[#allocation2 + $0x82] sm:$0xff]  ;;  %v3987_v39 = vld [vmem:[#allocation36_spill] sm:$0xff]  ;;  %v3991_v5 = vld [vmem:[#allocation45_spill] sm:$0xff] }
 0x14e   : > { %v1361_v32 = vadd.f32 %v1325_v31, %v1305_v26  ;;  %v476_v42 = vadd.f32 %v468_v56, %v382_v43  ;;  %v496_v57 = vadd.f32 %v488_v53, %v402_v36  ;;  %v516_v62 = vadd.f32 %v508_v2, %v422_v9  ;;  %v3988_v15 = vld [vmem:[#allocation48_spill] sm:$0xff]  ;;  %v3989_v59 = vld [vmem:[#allocation18_spill] sm:$0xff]  ;;  %v3990_v9 = vld [vmem:[#allocation49_spill] sm:$0xff] }
 0x14f   : > { %v568_v48 = vmul.f32 %v3983_v24, %v436_v30  ;;  %v536_v26 = vadd.f32 %v528_v1, %v456_v52  ;;  %v602_v46 = vmul.f32 %v3985_v44, %v3984_v63  ;;  %v622_v31 = vmul.f32 %v1622_v27, %v3986_v22  ;;  %v3992_v18 = vld [vmem:[#allocation20_spill] sm:$0xff]  ;;  %v3993_v54 = vld [vmem:[#allocation87_spill] sm:$0xff]  ;;  %v3994_v56 = vld [vmem:[#allocation50_spill] sm:$0xff] }
 0x150   : > { %v1369_v40 = vadd.f32 %v1361_v32, %v1353_v34  ;;  %v556_v11 = vadd.f32 %v548_v4, %v476_v42  ;;  %v642_v61 = vmul.f32 %v3988_v15, %v3987_v39  ;;  %v662_v43 = vmul.f32 %v3990_v9, %v3989_v59  ;;  %v3995_v2 = vld [vmem:[#allocation51_spill] sm:$0xff]  ;;  %v744_v42 = vld [vmem:[#allocation2 + $0xd3] sm:$0xff] }
 0x151   : > { %v576_v41 = vadd.f32 %v568_v48, %v496_v57  ;;  %v610_v36 = vadd.f32 %v602_v46, %v516_v62  ;;  %v630_v30 = vadd.f32 %v622_v31, %v536_v26  ;;  %v682_v19 = vmul.f32 %v3992_v18, %v3991_v5  ;;  %v3996_v1 = vld [vmem:[#allocation35_spill] sm:$0xff]  ;;  %v3997_v57 = vld [vmem:[#allocation62_spill] sm:$0xff]  ;;  %v3998_v62 = vld [vmem:[#allocation17_spill] sm:$0xff] }
 0x152   : > { %v1383_v21 = vadd.f32 %v3060_v58, %v1369_v40  ;;  %v702_v34 = vmul.f32 %v3994_v56, %v3993_v54  ;;  %v650_v32 = vadd.f32 %v642_v61, %v556_v11  ;;  %v722_v52 = vmul.f32 %v3995_v2, %v590_v3  ;;  %v3999_v48 = vld [vmem:[#allocation63_spill] sm:$0xff]  ;;  %v4000_v26 = vld [vmem:[#allocation24_spill] sm:$0xff]  ;;  %v4001_v27 = vld [vmem:[#allocation97_spill] sm:$0xff] }
 0x153   : > { %v670_v53 = vadd.f32 %v662_v43, %v576_v41  ;;  %v756_v7 = vmul.f32 %v3996_v1, %v3847_v49  ;;  %v690_v4 = vadd.f32 %v682_v19, %v610_v36  ;;  %v776_v24 = vmul.f32 %v3998_v62, %v3997_v57  ;;  %v4002_v22 = vld [vmem:[#allocation27_spill] sm:$0xff]  ;;  %v4003_v31 = vld [vmem:[#allocation54_spill] sm:$0xff]  ;;  %v4005_v15 = vld [vmem:[#allocation13_spill] sm:$0xff] }
 0x154   : > { %1391 = vst [vmem:[%s2476_s18 + $0x30] sm:$0xff] %v1383_v21  ;;  %v710_v40 = vadd.f32 %v702_v34, %v630_v30  ;;  %v796_v63 = vmul.f32 %v4000_v26, %v3999_v48  ;;  %v730_v44 = vadd.f32 %v722_v52, %v650_v32  ;;  %v816_v11 = vmul.f32 %v4002_v22, %v4001_v27  ;;  %v4004_v21 = vld [vmem:[#allocation28_spill] sm:$0xff]  ;;  %v4007_v59 = vld [vmem:[#allocation65_spill] sm:$0xff]  ;;  %v1623_v19 = vld [vmem:[#allocation2 + $0x84] sm:$0xff] }
 0x155   : > { %v764_v46 = vadd.f32 %v756_v7, %v670_v53  ;;  %v836_v3 = vmul.f32 %v4004_v21, %v4003_v31  ;;  %v784_v41 = vadd.f32 %v776_v24, %v690_v4  ;;  %v4006_v49 = vld [vmem:[#allocation64_spill] sm:$0xff]  ;;  %v876_v9 = vmul.f32 %v4007_v59, %v744_v42  ;;  %v4008_v5 = vld [vmem:[#allocation29_spill] sm:$0xff]  ;;  %v4009_v54 = vld [vmem:[#allocation67_spill] sm:$0xff] }
 0x156   : > { %v804_v39 = vadd.f32 %v796_v63, %v710_v40  ;;  %v856_v61 = vmul.f32 %v4006_v49, %v4005_v15  ;;  %v824_v43 = vadd.f32 %v816_v11, %v730_v44  ;;  %v898_v30 = vld [vmem:[#allocation2 + $0xd4] sm:$0xff]  ;;  %v910_v18 = vmul.f32 %v3094_v33, %v4008_v5  ;;  %v4011_v52 = vld [vmem:[#allocation30_spill] sm:$0xff]  ;;  %v4015_v21 = vld [vmem:[#allocation83_spill] sm:$0xff] }
 0x157   : > { %v844_v36 = vadd.f32 %v836_v3, %v764_v46  ;;  %v930_v56 = vmul.f32 %v1623_v19, %v4009_v54  ;;  %v4010_v53 = vld [vmem:[#allocation68_spill] sm:$0xff]  ;;  %v970_v1 = vmul.f32 %v4011_v52, %v3964_v28  ;;  %v990_v42 = vmul.f32 %v3965_v29, %v3966_v47  ;;  %v4012_v62 = vld [vmem:[#allocation73_spill] sm:$0xff]  ;;  %v1624_v46 = vld [vmem:[#allocation2 + $0x85] sm:$0xff] }
 0x158   : > { %v864_v34 = vadd.f32 %v856_v61, %v784_v41  ;;  %v884_v32 = vadd.f32 %v876_v9, %v804_v39  ;;  %v950_v2 = vmul.f32 %v4010_v53, %v3962_v60  ;;  %v918_v7 = vadd.f32 %v910_v18, %v824_v43  ;;  %v1052_v48 = vld [vmem:[#allocation2 + $0xd5] sm:$0xff]  ;;  %v4017_v61 = vld [vmem:[#allocation86_spill] sm:$0xff] }
 0x159   : > { %v938_v4 = vadd.f32 %v930_v56, %v844_v36  ;;  %v1010_v40 = vmul.f32 %v3967_v25, %v3090_v16  ;;  %v1030_v24 = vmul.f32 %v4012_v62, %v898_v30  ;;  %v4013_v26 = vld [vmem:[#allocation56_spill] sm:$0xff]  ;;  %v1104_v22 = vmul.f32 %v3920_v14, %v3923_v37  ;;  %v4016_v49 = vld [vmem:[#allocation85_spill] sm:$0xff]  ;;  %v1625_v14 = vld [vmem:[#allocation2 + $0x86] sm:$0xff] }
 0x15a   : > { %v958_v33 = vadd.f32 %v950_v2, %v864_v34  ;;  %v978_v57 = vadd.f32 %v970_v1, %v884_v32  ;;  %v1064_v63 = vmul.f32 %v4013_v26, %v3969_v0  ;;  %v998_v60 = vadd.f32 %v990_v42, %v918_v7  ;;  %v4014_v28 = vld [vmem:[#allocation76_spill] sm:$0xff]  ;;  %v4018_v43 = vld [vmem:[#allocation93_spill] sm:$0xff] }
 0x15b   : > { %v1018_v44 = vadd.f32 %v1010_v40, %v938_v4  ;;  %v1084_v27 = vmul.f32 %v1624_v46, %v4014_v28  ;;  %v1124_v16 = vmul.f32 %v3922_v51, %v3925_v6  ;;  %v1144_v25 = vmul.f32 %v3924_v35, %v2980_v10  ;;  %v1206_v15 = vld [vmem:[#allocation2 + $0xd6] sm:$0xff] }
 0x15c   : > { %v1038_v47 = vadd.f32 %v1030_v24, %v958_v33  ;;  %v1072_v29 = vadd.f32 %v1064_v63, %v978_v57  ;;  %v1164_v0 = vmul.f32 %v3926_v20, %v3108_v45  ;;  %v1184_v3 = vmul.f32 %v4015_v21, %v1052_v48  ;;  %v4019_v30 = vld [vmem:[#allocation80_spill] sm:$0xff] }
 0x15d   : > { %v1092_v11 = vadd.f32 %v1084_v27, %v998_v60  ;;  %v1112_v31 = vadd.f32 %v1104_v22, %v1018_v44  ;;  %v1218_v37 = vmul.f32 %v3130_v8, %v4016_v49  ;;  %v1238_v51 = vmul.f32 %v1625_v14, %v4017_v61 }
 0x15e   : > { %v1132_v41 = vadd.f32 %v1124_v16, %v1038_v47  ;;  %v1152_v39 = vadd.f32 %v1144_v25, %v1072_v29  ;;  %v1258_v35 = vmul.f32 %v3879_v12, %v3884_v50  ;;  %v1298_v45 = vmul.f32 %v3883_v55, %v3975_v13 }
 0x15f   : > { %v1172_v6 = vadd.f32 %v1164_v0, %v1092_v11  ;;  %v1192_v59 = vadd.f32 %v1184_v3, %v1112_v31  ;;  %v1318_v9 = vmul.f32 %v3976_v17, %v3126_v38  ;;  %v1278_v36 = vmul.f32 %v4018_v43, %v2875_v23 }
 0x160   : > { %v1226_v10 = vadd.f32 %v1218_v37, %v1132_v41  ;;  %v1246_v20 = vadd.f32 %v1238_v51, %v1152_v39  ;;  %v1338_v5 = vmul.f32 %v4019_v30, %v1206_v15 }
 0x161   : > { %v1266_v8 = vadd.f32 %v1258_v35, %v1172_v6  ;;  %v1286_v50 = vadd.f32 %v1278_v36, %v1192_v59 }
 0x162   : > { %v1306_v18 = vadd.f32 %v1298_v45, %v1226_v10  ;;  %v1326_v19 = vadd.f32 %v1318_v9, %v1246_v20 }
 0x163   : > { %v1346_v12 = vadd.f32 %v1338_v5, %v1266_v8 }
 0x164   : > { %v1362_v56 = vadd.f32 %v1326_v19, %v1306_v18 }
 0x165   : > { %v1354_v54 = vadd.f32 %v1346_v12, %v1286_v50 }
 0x167   : > { %v1370_v55 = vadd.f32 %v1362_v56, %v1354_v54 }
 0x169   : > { %v1384_v23 = vadd.f32 %v3060_v58, %v1370_v55 }
 0x16b   : > { %1392 = vst [vmem:[%s2476_s18 + $0x38] sm:$0xff] %v1384_v23 }
 0x16c   : > { %1725 = shalt.err (!%p1722_p1)
}
 0x16d   : > { %s1726_s11 = scalar_lea.hbm %s3236_s28, 1024  ;;  %s1730_s27 = scalar_lea.hbm %s3285_s3, 2048 }
 0x16e   : > { %p1727_p13 = scmp.ne.s32.totalorder %s3236_s28, %s1726_s11  ;;  %p1731_p4 = scmp.lt.u32.totalorder %s3236_s28, %s3285_s3 }
 0x16f   : > { %p1732_p5 = scmp.lt.u32.totalorder %s1730_s27, %s1726_s11  ;;  %p1734_p11 = scmp.lt.u32.totalorder %s1726_s11, %s3236_s28 }
 0x170   : > { %p1728_p6 = pnand %p1727_p13, %p4020_p0 }
 0x171   : > { %p1733_p8 = por %p1732_p5, %p1731_p4 }
 0x172   : > { %p1729_p10 = pneg %p1728_p6 }
 0x173   : > { %p1735_p2 = por %p1734_p11, %p1733_p8 }
 0x175   : > { %p1736_p3 = pnand %p1735_p2, %p1729_p10 }
 0x177   : > { %1739 = shalt.err (!%p1736_p3)
}
 0x178   : > { %s1791_s22 = smov 128   ;;  %s1792_s18 = smov 8  }
 0x179   : > { %1531 = dma.vmem_to_hbm [thread:$0]  (%p4020_p0), %s3231_s20, 1024, %s3236_s28, %s1394_s29, %s1791_s22, %s1791_s22, %s1792_s18  }
 0x17a PF: > { %s1422_s7 = sand.u32 1, %s1770_s12   ;;  %p4021_p7 = scmp.ne.s32.totalorder %s3554_s19, 0 }
 0x17b   : > { %p4022_p9 = scmp.ge.s32.totalorder %s1782_s15, 2  ;;  %s1423_s8 = scalar_lea.sflag [#allocation5], %s1422_s7 }
 0x17d   : > { %p1545_p12 = pnand %p4022_p9, %p4021_p7 }
 0x17f   : > { %1765 = dma.done.wait (!%p1545_p12), %s1423_s8, 1024  }
 0x180   : > { %1767 = vsyncadd (!%p1545_p12), %s1423_s8, 4294966272  ;;  %p17_p1 = scmp.ge.s32.totalorder %s1927_s5, 4   ;;  %s4023_s12 = smov %s1774_s13 }
 0x181   : > { %s4024_s13 = smov %s1778_s14  ;;  %s4025_s14 = smov %s1943_s10 }
 0x182   : > { %s4026_s15 = smov %s1927_s5  ;;  %19 = sbr.rel (!%p17_p1) target bundleno = 6 (0x6), region = 86 }
 0x189   :  { %1428 = vsyncpa [#allocation4], 1 }
 0x18a   :  { %1430 = vsyncpa [#allocation4 + $0x1], 1 }
 0x18b   :  { %1431 = vsyncpa [#allocation7], 1 }
 0x18c   :  { %1432 = vsyncpa [#allocation5], 1 }
 0x18d   :  { %1434 = vsyncpa [#allocation5 + $0x1], 1 }

</bundles_post_ra>
